<compile_context>
chip_gen: v5e
topology: v5e:2x2
jax: 0.10.0
libtpu: 0.0.40
codegen_flags: <defaults>
</compile_context>

<pallas_src>
import jax
import jax.numpy as jnp
from jax.experimental import pallas as pl
from jax.experimental.pallas import tpu as pltpu

INPUT_SIZE = 28 * 28      # 784
OUTPUT_SIZE = 62
OUTPUT_PAD = 128          # lane-dense output tile; sliced back to 62 in wrapper
HIDDEN = (1024, 512, 256, 128)
BN_EPS = 1e-5


# ----------------------------------------------------------------------------
# Kernel
# ----------------------------------------------------------------------------
def _mlp_kernel(x_ref,
                w1, b1, w2, b2, w3, b3, w4, b4, w5, b5,
                o_ref):
    """One batch tile of the fused MLP. All weights are VMEM-resident."""

    def hidden(h, w_ref, b_ref):
        # bf16 x bf16 matmul on the MXU, f32 accumulate, bias add, ReLU.
        z = jnp.dot(h, w_ref[...], preferred_element_type=jnp.float32) + b_ref[...]
        return jnp.maximum(z, 0.0).astype(jnp.bfloat16)   # bf16 feed for next MXU op

    # f32 -> bf16 cast fused into the kernel (no separate XLA pad/cast pass).
    h = x_ref[...].astype(jnp.bfloat16)                   # (TM, 784)
    # Eval-mode Dropout == identity; eval-mode BN already folded into weights.
    h = hidden(h, w1, b1)
    h = hidden(h, w2, b2)
    h = hidden(h, w3, b3)
    h = hidden(h, w4, b4)
    logits = jnp.dot(h, w5[...], preferred_element_type=jnp.float32) + b5[...]
    o_ref[...] = logits.astype(o_ref.dtype)


# ----------------------------------------------------------------------------
# Parameters
# ----------------------------------------------------------------------------
def init_params(key):
    """PyTorch-default-like init (uniform +-1/sqrt(fan_in)) + non-trivial BN stats."""
    dims = (INPUT_SIZE,) + HIDDEN + (OUTPUT_SIZE,)
    params = {}
    for i in range(5):
        fan_in, fan_out = dims[i], dims[i + 1]
        key, kw, kb = jax.random.split(key, 3)
        bound = 1.0 / float(fan_in) ** 0.5
        params[f"w{i+1}"] = jax.random.uniform(
            kw, (fan_in, fan_out), jnp.float32, -bound, bound)
        params[f"b{i+1}"] = jax.random.uniform(
            kb, (1, fan_out), jnp.float32, -bound, bound)
    # Eval-mode BatchNorm1d with NON-trivial stats so the weight fold is exercised.
    for i, n_feat in enumerate(HIDDEN, start=1):
        key, kg, kbe, km, kv = jax.random.split(key, 5)
        gamma = jax.random.uniform(kg, (1, n_feat), jnp.float32, 0.5, 1.5)
        beta = jax.random.uniform(kbe, (1, n_feat), jnp.float32, -0.2, 0.2)
        running_mean = jax.random.uniform(km, (1, n_feat), jnp.float32, -0.2, 0.2)
        running_var = jax.random.uniform(kv, (1, n_feat), jnp.float32, 0.5, 1.5)
        scale = gamma * jax.lax.rsqrt(running_var + BN_EPS)
        shift = beta - running_mean * scale
        params[f"s{i}"] = scale
        params[f"t{i}"] = shift
    return params


def fold_params(params):
    """Fold eval-BN affines into the following Linear; pad + cast for the kernel.

    (ReLU(h W_i + b_i) * s_i + t_i) @ W_{i+1} + b_{i+1}
      == ReLU(h W_i + b_i) @ (diag(s_i) W_{i+1}) + (t_i @ W_{i+1} + b_{i+1})
    """
    ws = [params[f"w{i}"] for i in range(1, 6)]
    bs = [params[f"b{i}"] for i in range(1, 6)]
    for i in range(1, 5):                      # BN after hidden layer i -> layer i+1
        s = params[f"s{i}"].reshape(-1)        # (n_i,)
        t = params[f"t{i}"].reshape(1, -1)     # (1, n_i)
        bs[i] = bs[i] + t @ ws[i]              # uses the un-scaled W_{i+1}
        ws[i] = s[:, None] * ws[i]

    # Lane-pad the output layer: 62 -> 128 (unmasked lane-dense stores).
    ws[4] = jnp.pad(ws[4], ((0, 0), (0, OUTPUT_PAD - OUTPUT_SIZE)))
    bs[4] = jnp.pad(bs[4], ((0, 0), (0, OUTPUT_PAD - OUTPUT_SIZE)))

    folded = {}
    for i in range(5):
        folded[f"w{i+1}"] = ws[i].astype(jnp.bfloat16)   # bf16 weights (halve HBM traffic)
        folded[f"b{i+1}"] = bs[i].astype(jnp.float32)    # f32 biases (added post-accumulate)
    return folded


# ----------------------------------------------------------------------------
# Tiling / VMEM sizing
# ----------------------------------------------------------------------------
def _pick_tm(n):
    """Batch tile: large enough to fill the MXU and amortize the ~0.35us/step
    overhead, small enough to keep >=2 grid steps (v7x has 2 TCs) when batch allows."""
    if n >= 1024:
        return 512          # multiple of 256 (v6e/v7x MXU rows) and 128 (v5e)
    if n >= 512:
        return 256
    if n >= 256:
        return 128
    return max(8, (n + 7) // 8 * 8)   # small batch: single sublane-aligned tile


def _vmem_limit_bytes(tm, weight_bytes):
    """Size the VMEM limit from the real footprint (double-buffered x/out tiles,
    resident weights, f32 intermediates) with headroom; cap at 48 MiB for v7x."""
    x_tiles = 2 * tm * INPUT_SIZE * 4          # f32 input tile, double-buffered
    out_tiles = 2 * tm * OUTPUT_PAD * 4        # f32 output tile, double-buffered
    interm = tm * sum(HIDDEN) * 4              # rough bound on live f32 intermediates
    total = 2 * weight_bytes + x_tiles + out_tiles + interm
    total = int(total * 1.5) + (4 << 20)       # Mosaic scratch headroom
    return max(16 << 20, min(total, 48 << 20))


# ----------------------------------------------------------------------------
# Wrapper
# ----------------------------------------------------------------------------
def neural_network_forward(x_nchw, folded):
    """x_nchw: (N, 1, 28, 28) f32 -> logits (N, 62) f32."""
    n = x_nchw.shape[0]
    x = x_nchw.reshape(n, -1).astype(jnp.float32)        # nn.Flatten (row-major)
    tm = _pick_tm(n)
    n_pad = pl.cdiv(n, tm) * tm
    if n_pad != n:
        x = jnp.pad(x, ((0, n_pad - n), (0, 0)))

    order = []
    for i in range(1, 6):
        order += [folded[f"w{i}"], folded[f"b{i}"]]
    weight_bytes = sum(int(a.size) * a.dtype.itemsize for a in order)

    def resident_spec(arr):
        # Whole-array block, same block index every grid step -> stays VMEM-resident.
        return pl.BlockSpec(arr.shape, lambda i: (0, 0))

    grid_spec = pltpu.PrefetchScalarGridSpec(
        num_scalar_prefetch=0,
        grid=(n_pad // tm,),
        in_specs=[pl.BlockSpec((tm, INPUT_SIZE), lambda i: (i, 0))]   # full-last-dim block
                 + [resident_spec(a) for a in order],
        out_specs=pl.BlockSpec((tm, OUTPUT_PAD), lambda i: (i, 0)),
    )

    out = pl.pallas_call(
        _mlp_kernel,
        out_shape=jax.ShapeDtypeStruct((n_pad, OUTPUT_PAD), jnp.float32),
        grid_spec=grid_spec,
        compiler_params=pltpu.CompilerParams(
            dimension_semantics=("parallel",),            # v7x: 2 TCs split the batch grid
            vmem_limit_bytes=_vmem_limit_bytes(tm, weight_bytes),
        ),
    )(x, *order)
    return out[:n, :OUTPUT_SIZE]


# ----------------------------------------------------------------------------
# References
# ----------------------------------------------------------------------------
def reference_forward_folded(x_nchw, folded):
    """Plain-JAX reference mirroring the kernel's bf16-in / f32-accumulate math."""
    n = x_nchw.shape[0]
    h = x_nchw.reshape(n, -1).astype(jnp.float32).astype(jnp.bfloat16)
    for i in range(1, 5):
        z = jnp.dot(h, folded[f"w{i}"],
                    preferred_element_type=jnp.float32) + folded[f"b{i}"]
        h = jnp.maximum(z, 0.0).astype(jnp.bfloat16)
    logits = jnp.dot(h, folded["w5"],
                     preferred_element_type=jnp.float32) + folded["b5"]
    return logits[:, :OUTPUT_SIZE]


def reference_forward_f32(x_nchw, params):
    """Unfolded f32 reference: [Linear -> ReLU -> BN(eval) -> Dropout(eval)] x4 -> Linear."""
    n = x_nchw.shape[0]
    h = x_nchw.reshape(n, -1).astype(jnp.float32)
    for i in range(1, 5):
        h = jnp.maximum(h @ params[f"w{i}"] + params[f"b{i}"], 0.0)   # Linear + ReLU
        h = h * params[f"s{i}"] + params[f"t{i}"]                     # eval BatchNorm1d
        # Dropout(p=0.5) is identity in eval mode.
    return h @ params["w5"] + params["b5"]


# ----------------------------------------------------------------------------
# Self-test
# ----------------------------------------------------------------------------
if __name__ == "__main__":
    key = jax.random.PRNGKey(0)
    kp, kx1, kx2 = jax.random.split(key, 3)
    params = init_params(kp)
    folded = fold_params(params)

    # Small MNIST-like batch (single-tile path): (N, C, H, W) = (8, 1, 28, 28).
    x_small = jax.random.normal(kx1, (8, 1, 28, 28), jnp.float32)
    out_small = jax.block_until_ready(neural_network_forward(x_small, folded))
    assert out_small.shape == (8, OUTPUT_SIZE)
    # Tight check vs the same bf16 folded math (validates kernel plumbing).
    ref_folded = reference_forward_folded(x_small, folded)
    assert jnp.allclose(out_small, ref_folded, atol=1e-2, rtol=1e-2), \
        "mismatch vs folded bf16 reference"
    # Loose check vs the original f32 Linear+BatchNorm math (validates the BN fold
    # and bf16 quantization against the true module semantics).
    ref_f32 = reference_forward_f32(x_small, params)
    assert jnp.allclose(out_small, ref_f32, atol=5e-2, rtol=5e-2), \
        "mismatch vs unfolded f32 reference"

    # Multi-tile path: grid > 1, batch not a multiple of the tile (exercises padding).
    x_big = jax.random.normal(kx2, (300, 1, 28, 28), jnp.float32)
    out_big = jax.block_until_ready(neural_network_forward(x_big, folded))
    assert out_big.shape == (300, OUTPUT_SIZE)
    ref_big = reference_forward_folded(x_big, folded)
    assert jnp.allclose(out_big, ref_big, atol=1e-2, rtol=1e-2), \
        "mismatch vs folded bf16 reference (multi-tile)"

    print("KERNEL_OK")
</pallas_src>

<mosaic_0001>
module attributes {stable_mosaic.version = 11 : i64} {
  func.func @_mlp_kernel(%arg0: i32, %arg1: memref<8x784xf32, #tpu.memory_space<vmem>>, %arg2: memref<784x1024xbf16, #tpu.memory_space<vmem>>, %arg3: memref<1x1024xf32, #tpu.memory_space<vmem>>, %arg4: memref<1024x512xbf16, #tpu.memory_space<vmem>>, %arg5: memref<1x512xf32, #tpu.memory_space<vmem>>, %arg6: memref<512x256xbf16, #tpu.memory_space<vmem>>, %arg7: memref<1x256xf32, #tpu.memory_space<vmem>>, %arg8: memref<256x128xbf16, #tpu.memory_space<vmem>>, %arg9: memref<1x128xf32, #tpu.memory_space<vmem>>, %arg10: memref<128x128xbf16, #tpu.memory_space<vmem>>, %arg11: memref<1x128xf32, #tpu.memory_space<vmem>>, %arg12: memref<8x128xf32, #tpu.memory_space<vmem>>) attributes {dimension_semantics = [#tpu.dimension_semantics<parallel>], iteration_bounds = array<i64: 1>, scalar_prefetch = 0 : i64, scratch_operands = 0 : i64, tpu.core_type = #tpu.core_type<tc>, window_params = [{transform_indices = @transform_0, window_bounds = array<i64: 8, 784>}, {pipeline_mode = #tpu.pipeline_mode<synchronous>, transform_indices = @transform_1, window_bounds = array<i64: 784, 1024>}, {pipeline_mode = #tpu.pipeline_mode<synchronous>, transform_indices = @transform_2, window_bounds = array<i64: 1, 1024>}, {pipeline_mode = #tpu.pipeline_mode<synchronous>, transform_indices = @transform_3, window_bounds = array<i64: 1024, 512>}, {pipeline_mode = #tpu.pipeline_mode<synchronous>, transform_indices = @transform_4, window_bounds = array<i64: 1, 512>}, {pipeline_mode = #tpu.pipeline_mode<synchronous>, transform_indices = @transform_5, window_bounds = array<i64: 512, 256>}, {pipeline_mode = #tpu.pipeline_mode<synchronous>, transform_indices = @transform_6, window_bounds = array<i64: 1, 256>}, {pipeline_mode = #tpu.pipeline_mode<synchronous>, transform_indices = @transform_7, window_bounds = array<i64: 256, 128>}, {pipeline_mode = #tpu.pipeline_mode<synchronous>, transform_indices = @transform_8, window_bounds = array<i64: 1, 128>}, {pipeline_mode = #tpu.pipeline_mode<synchronous>, transform_indices = @transform_9, window_bounds = array<i64: 128, 128>}, {pipeline_mode = #tpu.pipeline_mode<synchronous>, transform_indices = @transform_10, window_bounds = array<i64: 1, 128>}, {transform_indices = @transform_11, window_bounds = array<i64: 8, 128>}]} {
    %c0 = arith.constant 0 : index
    %c0_0 = arith.constant 0 : index
    %0 = vector.load %arg1[%c0, %c0_0] : memref<8x784xf32, #tpu.memory_space<vmem>>, vector<8x784xf32>
    %1 = arith.truncf %0 : vector<8x784xf32> to vector<8x784xbf16>
    %c0_1 = arith.constant 0 : index
    %c0_2 = arith.constant 0 : index
    %2 = vector.load %arg2[%c0_1, %c0_2] : memref<784x1024xbf16, #tpu.memory_space<vmem>>, vector<784x1024xbf16>
    %cst = arith.constant dense<0.000000e+00> : vector<8x1024xf32>
    %3 = tpu.matmul %1, %2, %cst {dimension_numbers = #tpu.dot_dimension_numbers<[1], [0], [0], [1], [0, 0, 1, 1], [], []>} : vector<8x784xbf16>, vector<784x1024xbf16>, vector<8x1024xf32> -> vector<8x1024xf32>
    %c0_3 = arith.constant 0 : index
    %c0_4 = arith.constant 0 : index
    %4 = vector.load %arg3[%c0_3, %c0_4] : memref<1x1024xf32, #tpu.memory_space<vmem>>, vector<1x1024xf32>
    %5 = vector.broadcast %4 : vector<1x1024xf32> to vector<8x1024xf32>
    %6 = arith.addf %3, %5 : vector<8x1024xf32>
    %cst_5 = arith.constant 0.000000e+00 : f32
    %7 = vector.broadcast %cst_5 : f32 to vector<8x1024xf32>
    %8 = arith.maximumf %6, %7 : vector<8x1024xf32>
    %9 = arith.truncf %8 : vector<8x1024xf32> to vector<8x1024xbf16>
    %c0_6 = arith.constant 0 : index
    %c0_7 = arith.constant 0 : index
    %10 = vector.load %arg4[%c0_6, %c0_7] : memref<1024x512xbf16, #tpu.memory_space<vmem>>, vector<1024x512xbf16>
    %cst_8 = arith.constant dense<0.000000e+00> : vector<8x512xf32>
    %11 = tpu.matmul %9, %10, %cst_8 {dimension_numbers = #tpu.dot_dimension_numbers<[1], [0], [0], [1], [0, 0, 1, 1], [], []>} : vector<8x1024xbf16>, vector<1024x512xbf16>, vector<8x512xf32> -> vector<8x512xf32>
    %c0_9 = arith.constant 0 : index
    %c0_10 = arith.constant 0 : index
    %12 = vector.load %arg5[%c0_9, %c0_10] : memref<1x512xf32, #tpu.memory_space<vmem>>, vector<1x512xf32>
    %13 = vector.broadcast %12 : vector<1x512xf32> to vector<8x512xf32>
    %14 = arith.addf %11, %13 : vector<8x512xf32>
    %cst_11 = arith.constant 0.000000e+00 : f32
    %15 = vector.broadcast %cst_11 : f32 to vector<8x512xf32>
    %16 = arith.maximumf %14, %15 : vector<8x512xf32>
    %17 = arith.truncf %16 : vector<8x512xf32> to vector<8x512xbf16>
    %c0_12 = arith.constant 0 : index
    %c0_13 = arith.constant 0 : index
    %18 = vector.load %arg6[%c0_12, %c0_13] : memref<512x256xbf16, #tpu.memory_space<vmem>>, vector<512x256xbf16>
    %cst_14 = arith.constant dense<0.000000e+00> : vector<8x256xf32>
    %19 = tpu.matmul %17, %18, %cst_14 {dimension_numbers = #tpu.dot_dimension_numbers<[1], [0], [0], [1], [0, 0, 1, 1], [], []>} : vector<8x512xbf16>, vector<512x256xbf16>, vector<8x256xf32> -> vector<8x256xf32>
    %c0_15 = arith.constant 0 : index
    %c0_16 = arith.constant 0 : index
    %20 = vector.load %arg7[%c0_15, %c0_16] : memref<1x256xf32, #tpu.memory_space<vmem>>, vector<1x256xf32>
    %21 = vector.broadcast %20 : vector<1x256xf32> to vector<8x256xf32>
    %22 = arith.addf %19, %21 : vector<8x256xf32>
    %cst_17 = arith.constant 0.000000e+00 : f32
    %23 = vector.broadcast %cst_17 : f32 to vector<8x256xf32>
    %24 = arith.maximumf %22, %23 : vector<8x256xf32>
    %25 = arith.truncf %24 : vector<8x256xf32> to vector<8x256xbf16>
    %c0_18 = arith.constant 0 : index
    %c0_19 = arith.constant 0 : index
    %26 = vector.load %arg8[%c0_18, %c0_19] : memref<256x128xbf16, #tpu.memory_space<vmem>>, vector<256x128xbf16>
    %cst_20 = arith.constant dense<0.000000e+00> : vector<8x128xf32>
    %27 = tpu.matmul %25, %26, %cst_20 {dimension_numbers = #tpu.dot_dimension_numbers<[1], [0], [0], [1], [0, 0, 1, 1], [], []>} : vector<8x256xbf16>, vector<256x128xbf16>, vector<8x128xf32> -> vector<8x128xf32>
    %c0_21 = arith.constant 0 : index
    %c0_22 = arith.constant 0 : index
    %28 = vector.load %arg9[%c0_21, %c0_22] : memref<1x128xf32, #tpu.memory_space<vmem>>, vector<1x128xf32>
    %29 = vector.broadcast %28 : vector<1x128xf32> to vector<8x128xf32>
    %30 = arith.addf %27, %29 : vector<8x128xf32>
    %cst_23 = arith.constant 0.000000e+00 : f32
    %31 = vector.broadcast %cst_23 : f32 to vector<8x128xf32>
    %32 = arith.maximumf %30, %31 : vector<8x128xf32>
    %33 = arith.truncf %32 : vector<8x128xf32> to vector<8x128xbf16>
    %c0_24 = arith.constant 0 : index
    %c0_25 = arith.constant 0 : index
    %34 = vector.load %arg10[%c0_24, %c0_25] : memref<128x128xbf16, #tpu.memory_space<vmem>>, vector<128x128xbf16>
    %cst_26 = arith.constant dense<0.000000e+00> : vector<8x128xf32>
    %35 = tpu.matmul %33, %34, %cst_26 {dimension_numbers = #tpu.dot_dimension_numbers<[1], [0], [0], [1], [0, 0, 1, 1], [], []>} : vector<8x128xbf16>, vector<128x128xbf16>, vector<8x128xf32> -> vector<8x128xf32>
    %c0_27 = arith.constant 0 : index
    %c0_28 = arith.constant 0 : index
    %36 = vector.load %arg11[%c0_27, %c0_28] : memref<1x128xf32, #tpu.memory_space<vmem>>, vector<1x128xf32>
    %37 = vector.broadcast %36 : vector<1x128xf32> to vector<8x128xf32>
    %38 = arith.addf %35, %37 : vector<8x128xf32>
    %c0_29 = arith.constant 0 : index
    %c0_30 = arith.constant 0 : index
    %39 = vector.load %arg12[%c0_29, %c0_30] : memref<8x128xf32, #tpu.memory_space<vmem>>, vector<8x128xf32>
    tpu.vector_store %arg12[%c0_29, %c0_30], %38 {strides = array<i32>} : memref<8x128xf32, #tpu.memory_space<vmem>>, vector<8x128xf32>,
    return
  }
  func.func @transform_0(%arg0: i32) -> (i32, i32) {
    %c0_i32 = arith.constant 0 : i32
    %c0_i32_0 = arith.constant 0 : i32
    return %arg0, %c0_i32 : i32, i32
  }
  func.func @transform_1(%arg0: i32) -> (i32, i32) {
    %c0_i32 = arith.constant 0 : i32
    %c0_i32_0 = arith.constant 0 : i32
    %c0_i32_1 = arith.constant 0 : i32
    return %c0_i32, %c0_i32_0 : i32, i32
  }
  func.func @transform_2(%arg0: i32) -> (i32, i32) {
    %c0_i32 = arith.constant 0 : i32
    %c0_i32_0 = arith.constant 0 : i32
    %c0_i32_1 = arith.constant 0 : i32
    return %c0_i32, %c0_i32_0 : i32, i32
  }
  func.func @transform_3(%arg0: i32) -> (i32, i32) {
    %c0_i32 = arith.constant 0 : i32
    %c0_i32_0 = arith.constant 0 : i32
    %c0_i32_1 = arith.constant 0 : i32
    return %c0_i32, %c0_i32_0 : i32, i32
  }
  func.func @transform_4(%arg0: i32) -> (i32, i32) {
    %c0_i32 = arith.constant 0 : i32
    %c0_i32_0 = arith.constant 0 : i32
    %c0_i32_1 = arith.constant 0 : i32
    return %c0_i32, %c0_i32_0 : i32, i32
  }
  func.func @transform_5(%arg0: i32) -> (i32, i32) {
    %c0_i32 = arith.constant 0 : i32
    %c0_i32_0 = arith.constant 0 : i32
    %c0_i32_1 = arith.constant 0 : i32
    return %c0_i32, %c0_i32_0 : i32, i32
  }
  func.func @transform_6(%arg0: i32) -> (i32, i32) {
    %c0_i32 = arith.constant 0 : i32
    %c0_i32_0 = arith.constant 0 : i32
    %c0_i32_1 = arith.constant 0 : i32
    return %c0_i32, %c0_i32_0 : i32, i32
  }
  func.func @transform_7(%arg0: i32) -> (i32, i32) {
    %c0_i32 = arith.constant 0 : i32
    %c0_i32_0 = arith.constant 0 : i32
    %c0_i32_1 = arith.constant 0 : i32
    return %c0_i32, %c0_i32_0 : i32, i32
  }
  func.func @transform_8(%arg0: i32) -> (i32, i32) {
    %c0_i32 = arith.constant 0 : i32
    %c0_i32_0 = arith.constant 0 : i32
    %c0_i32_1 = arith.constant 0 : i32
    return %c0_i32, %c0_i32_0 : i32, i32
  }
  func.func @transform_9(%arg0: i32) -> (i32, i32) {
    %c0_i32 = arith.constant 0 : i32
    %c0_i32_0 = arith.constant 0 : i32
    %c0_i32_1 = arith.constant 0 : i32
    return %c0_i32, %c0_i32_0 : i32, i32
  }
  func.func @transform_10(%arg0: i32) -> (i32, i32) {
    %c0_i32 = arith.constant 0 : i32
    %c0_i32_0 = arith.constant 0 : i32
    %c0_i32_1 = arith.constant 0 : i32
    return %c0_i32, %c0_i32_0 : i32, i32
  }
  func.func @transform_11(%arg0: i32) -> (i32, i32) {
    %c0_i32 = arith.constant 0 : i32
    %c0_i32_0 = arith.constant 0 : i32
    return %arg0, %c0_i32 : i32, i32
  }
}

</mosaic_0001>

<bundles_post_ra>
// kernel: tpu_custom_call.1
= control target key start
LH: loop header
LB: loop body
LE: loop exit
PB: predicated region body
PF: predicated region fallthrough
CT: control target
= control target key end

     0   :  { %16 = vsyncpa [#allocation3], 0  ;;  %s10465_s0 = inlined_call_operand.hbm [shape: f32[8,784], index: 0, kind: input, shape index: {}]   ;;  %s10466_s1 = inlined_call_operand.hbm [shape: bf16[784,1024], index: 1, kind: input, shape index: {}]   ;;  %s10467_s2 = inlined_call_operand.hbm [shape: f32[1,1024], index: 2, kind: input, shape index: {}]   ;;  %s10468_s3 = inlined_call_operand.hbm [shape: bf16[1024,512], index: 3, kind: input, shape index: {}]   ;;  %s10469_s4 = inlined_call_operand.hbm [shape: f32[1,512], index: 4, kind: input, shape index: {}]   ;;  %s10470_s5 = inlined_call_operand.hbm [shape: bf16[512,256], index: 5, kind: input, shape index: {}]   ;;  %s10471_s6 = inlined_call_operand.hbm [shape: f32[1,256], index: 6, kind: input, shape index: {}]   ;;  %s10472_s7 = inlined_call_operand.hbm [shape: bf16[256,128], index: 7, kind: input, shape index: {}]   ;;  %s10473_s8 = inlined_call_operand.hbm [shape: f32[1,128], index: 8, kind: input, shape index: {}]   ;;  %s10474_s9 = inlined_call_operand.hbm [shape: bf16[128,128], index: 9, kind: input, shape index: {}]   ;;  %s10475_s10 = inlined_call_operand.hbm [shape: f32[1,128], index: 10, kind: input, shape index: {}]   ;;  %s10476_s11 = inlined_call_operand.hbm [shape: f32[8,128], index: 11, kind: output, shape index: {}]  }
   0x1   :  { %17 = vsyncpa [#allocation6], 0 }
   0x2   :  { %18 = vsyncpa [#allocation9], 0 }
   0x3   :  { %19 = vsyncpa [#allocation12], 0 }
   0x4   :  { %20 = vsyncpa [#allocation15], 0 }
   0x5   :  { %21 = vsyncpa [#allocation18], 0  ;;  %s38_s19 = sshll.u32 %s10466_s1, 4  ;;  %s39_s19 = int_to_ptr.hbm [resolvable:$true] %s38_s19 }
   0x6   :  { %22 = vsyncpa [#allocation4], 0  ;;  %s10078_s20 = smov [#allocation5]   ;;  %s62_s24 = sshll.u32 %s10468_s3, 4  ;;  %s63_s24 = int_to_ptr.hbm [resolvable:$true] %s62_s24 }
   0x7   :  { %s40_s21 = sshll.u32 %s10078_s20, 4  ;;  %s10079_s25 = smov 512   ;;  %s41_s21 = int_to_ptr.vmem [resolvable:$true] %s40_s21 }
   0x8   :  { %s10080_s26 = smov 32   ;;  %s10081_s27 = smov [#allocation8]  }
   0x9   :  { %46 = dma.hbm_to_vmem [thread:$0]  %s39_s19, 50176, %s41_s21, [#allocation6], %s10079_s25, %s10079_s25, %s10080_s26  }
   0xa   :  { %s64_s28 = sshll.u32 %s10081_s27, 4  ;;  %s10082_s29 = smov 256   ;;  %s65_s28 = int_to_ptr.vmem [resolvable:$true] %s64_s28 }
   0xb   :  { %s10083_s30 = smov 16   ;;  %s86_s13 = sshll.u32 %s10470_s5, 4  ;;  %s87_s13 = int_to_ptr.hbm [resolvable:$true] %s86_s13 }
   0xc   :  { %70 = dma.hbm_to_vmem [thread:$0]  %s63_s24, 32768, %s65_s28, [#allocation9], %s10082_s29, %s10082_s29, %s10083_s30  }
   0xd   :  { %s10084_s14 = smov [#allocation11]   ;;  %s110_s17 = sshll.u32 %s10472_s7, 4  ;;  %s111_s17 = int_to_ptr.hbm [resolvable:$true] %s110_s17 }
   0xe   :  { %s88_s15 = sshll.u32 %s10084_s14, 4  ;;  %s10085_s18 = smov 128   ;;  %s89_s15 = int_to_ptr.vmem [resolvable:$true] %s88_s15 }
   0xf   :  { %s10086_s19 = smov 8   ;;  %s10087_s20 = smov [#allocation14]  }
  0x10   :  { %94 = dma.hbm_to_vmem [thread:$0]  %s87_s13, 8192, %s89_s15, [#allocation12], %s10085_s18, %s10085_s18, %s10086_s19  }
  0x11   :  { %s112_s21 = sshll.u32 %s10087_s20, 4  ;;  %s10088_s22 = smov 64   ;;  %s113_s21 = int_to_ptr.vmem [resolvable:$true] %s112_s21 }
  0x12   :  { %s10089_s23 = smov 4   ;;  %s134_s25 = sshll.u32 %s10474_s9, 4  ;;  %s135_s25 = int_to_ptr.hbm [resolvable:$true] %s134_s25 }
  0x13   :  { %118 = dma.hbm_to_vmem [thread:$0]  %s111_s17, 2048, %s113_s21, [#allocation15], %s10088_s22, %s10088_s22, %s10089_s23  }
  0x14   :  { %s10090_s26 = smov [#allocation17]   ;;  %s28_s29 = sshll.u32 %s10465_s0, 4  ;;  %s29_s29 = int_to_ptr.hbm [resolvable:$true] %s28_s29 }
  0x15   :  { %s136_s27 = sshll.u32 %s10090_s26, 4  ;;  %s10091_s30 = smov [#allocation2]   ;;  %s137_s27 = int_to_ptr.vmem [resolvable:$true] %s136_s27 }
  0x16   :  { %142 = dma.hbm_to_vmem [thread:$0]  %s135_s25, 1024, %s137_s27, [#allocation18], %s10088_s22, %s10088_s22, %s10089_s23  }
  0x17   :  { %s30_s1 = sshll.u32 %s10091_s30, 4  ;;  %s52_s14 = sshll.u32 %s10467_s2, 4  ;;  %s31_s1 = int_to_ptr.vmem [resolvable:$true] %s30_s1  ;;  %s53_s14 = int_to_ptr.hbm [resolvable:$true] %s52_s14 }
  0x18   :  { %33 = dma.hbm_to_vmem [thread:$0]  %s29_s29, 896, %s31_s1, [#allocation3]  }
  0x19   :  { %s76_s16 = sshll.u32 %s10469_s4, 4  ;;  %s10092_s3 = smov [#allocation7]   ;;  %s77_s16 = int_to_ptr.hbm [resolvable:$true] %s76_s16 }
  0x1a   :  { %s54_s17 = sshll.u32 %s10092_s3, 4  ;;  %s10093_s0 = smov [#allocation10]   ;;  %s55_s17 = int_to_ptr.vmem [resolvable:$true] %s54_s17 }
  0x1b   :  { %57 = dma.hbm_to_vmem [thread:$0]  %s53_s14, 128, %s55_s17, [#allocation6]  }
  0x1c   :  { %s78_s18 = sshll.u32 %s10093_s0, 4  ;;  %s100_s21 = sshll.u32 %s10471_s6, 4  ;;  %s79_s18 = int_to_ptr.vmem [resolvable:$true] %s78_s18  ;;  %s101_s21 = int_to_ptr.hbm [resolvable:$true] %s100_s21 }
  0x1d   :  { %81 = dma.hbm_to_vmem [thread:$0]  %s77_s16, 64, %s79_s18, [#allocation9]  }
  0x1e   :  { %s124_s23 = sshll.u32 %s10473_s8, 4  ;;  %s10094_s24 = smov [#allocation13]   ;;  %s125_s23 = int_to_ptr.hbm [resolvable:$true] %s124_s23 }
  0x1f   :  { %s102_s4 = sshll.u32 %s10094_s24, 4  ;;  %s10095_s5 = smov [#allocation16]   ;;  %s103_s4 = int_to_ptr.vmem [resolvable:$true] %s102_s4 }
  0x20   :  { %105 = dma.hbm_to_vmem [thread:$0]  %s101_s21, 32, %s103_s4, [#allocation12]  }
  0x21   :  { %s126_s25 = sshll.u32 %s10095_s5, 4  ;;  %s148_s28 = sshll.u32 %s10475_s10, 4  ;;  %s127_s25 = int_to_ptr.vmem [resolvable:$true] %s126_s25  ;;  %s149_s28 = int_to_ptr.hbm [resolvable:$true] %s148_s28 }
  0x22   :  { %129 = dma.hbm_to_vmem [thread:$0]  %s125_s23, 16, %s127_s25, [#allocation15]  }
  0x23   :  { %s10096_s6 = smov [#allocation19]  }
  0x24   :  { %s150_s7 = sshll.u32 %s10096_s6, 4  ;;  %s151_s7 = int_to_ptr.vmem [resolvable:$true] %s150_s7 }
  0x25   :  { %153 = dma.hbm_to_vmem [thread:$0]  %s149_s28, 16, %s151_s7, [#allocation18]  }
  0x26   :  { %10064 = dma.done.wait [#allocation3], 896  }
  0x27   :  { %10065 = vsyncadd [#allocation3], 4294966400 }
  0x28   :  { %10066 = dma.done.wait [#allocation6], 50304  }
  0x29   :  { %10067 = vsyncadd [#allocation6], 4294916992 }
  0x2a   :  { %10068 = dma.done.wait [#allocation9], 32832  }
  0x2b   :  { %10069 = vsyncadd [#allocation9], 4294934464 }
  0x2c   :  { %10070 = dma.done.wait [#allocation12], 8224  }
  0x2d   :  { %10071 = vsyncadd [#allocation12], 4294959072 }
  0x2e   :  { %10072 = dma.done.wait [#allocation15], 2064  }
  0x2f   :  { %10073 = vsyncadd [#allocation15], 4294965232 }
  0x30   :  { %10074 = dma.done.wait [#allocation18], 1040  }
  0x31   :  { %10075 = vsyncadd [#allocation18], 4294966256  ;;  %v6289_v0 = vld [vmem:[#allocation5 + $0x1c0] sm:$0xf]  ;;  %vm2583_vm0 = vcmask 130048   ;;  %s10097_s8 = smov [#allocation20]  }
  0x32   :  { %v9075_v1 = vld [vmem:[#allocation5 + $0x1dc] sm:$0xf0]  ;;  %s6046_s10 = sshll.u32 %s10097_s8, 4  ;;  %s6048_s1 = sshll.u32 %s10476_s11, 4  ;;  %s6047_s10 = int_to_ptr.vmem [resolvable:$true] %s6046_s10  ;;  %s6049_s1 = int_to_ptr.hbm [resolvable:$true] %s6048_s1 }
  0x33   :  { %v6545_v2 = vld [vmem:[#allocation5 + $0x3c0] sm:$0xf]  ;;  %v6290_v3 = vor.u32 %v9075_v1, %v6289_v0 }
  0x34   :  { %v9139_v4 = vld [vmem:[#allocation5 + $0x3dc] sm:$0xf0] }
  0x35   :  { %v6801_v5 = vld [vmem:[#allocation5 + $0x5c0] sm:$0xf]  ;;  %v6546_v7 = vor.u32 %v9139_v4, %v6545_v2  ;;  %2587 = vmatpush.bf16.msra.mxu0 %v6290_v3 }
  0x36   :  { %v9203_v6 = vld [vmem:[#allocation5 + $0x5dc] sm:$0xf0] }
  0x37   :  { %v6802_v8 = vor.u32 %v9203_v6, %v6801_v5  ;;  %v7057_v9 = vld [vmem:[#allocation5 + $0x7c0] sm:$0xf]  ;;  %2600 = vmatpush.bf16.msra.mxu1 %v6546_v7 }
  0x38   :  { %v9267_v10 = vld [vmem:[#allocation5 + $0x7dc] sm:$0xf0] }
  0x39   :  { %v6257_v11 = vld [vmem:[#allocation5 + $0x180] sm:$0xf]  ;;  %v7058_v12 = vor.u32 %v9267_v10, %v7057_v9  ;;  %2613 = vmatpush.bf16.msra.mxu2 %v6802_v8 }
  0x3a   :  { %v9067_v13 = vld [vmem:[#allocation5 + $0x19c] sm:$0xf0] }
  0x3b   :  { %v6513_v14 = vld [vmem:[#allocation5 + $0x380] sm:$0xf]  ;;  %v6258_v16 = vor.u32 %v9067_v13, %v6257_v11  ;;  %2626 = vmatpush.bf16.msra.mxu3 %v7058_v12 }
  0x3c   :  { %v9131_v15 = vld [vmem:[#allocation5 + $0x39c] sm:$0xf0] }
  0x3d   :  { %v6514_v17 = vor.u32 %v9131_v15, %v6513_v14  ;;  %v6769_v18 = vld [vmem:[#allocation5 + $0x580] sm:$0xf]  ;;  %2588 = vmatpush.bf16.msra.mxu0 %v6258_v16 }
  0x3e   :  { %v9195_v19 = vld [vmem:[#allocation5 + $0x59c] sm:$0xf0] }
  0x3f   :  { %v7025_v20 = vld [vmem:[#allocation5 + $0x780] sm:$0xf]  ;;  %v6770_v21 = vor.u32 %v9195_v19, %v6769_v18  ;;  %2601 = vmatpush.bf16.msra.mxu1 %v6514_v17 }
  0x40   :  { %v9259_v22 = vld [vmem:[#allocation5 + $0x79c] sm:$0xf0] }
  0x41   :  { %v6225_v23 = vld [vmem:[#allocation5 + $0x140] sm:$0xf]  ;;  %v7026_v25 = vor.u32 %v9259_v22, %v7025_v20  ;;  %2614 = vmatpush.bf16.msra.mxu2 %v6770_v21 }
  0x42   :  { %v9059_v24 = vld [vmem:[#allocation5 + $0x15c] sm:$0xf0] }
  0x43   :  { %v6481_v26 = vld [vmem:[#allocation5 + $0x340] sm:$0xf]  ;;  %v6226_v29 = vor.u32 %v9059_v24, %v6225_v23  ;;  %2627 = vmatpush.bf16.msra.mxu3 %v7026_v25 }
  0x44   :  { %v9123_v27 = vld [vmem:[#allocation5 + $0x35c] sm:$0xf0] }
  0x45   :  { %v6737_v28 = vld [vmem:[#allocation5 + $0x540] sm:$0xf]  ;;  %v6482_v33 = vor.u32 %v9123_v27, %v6481_v26  ;;  %2589 = vmatpush.bf16.msra.mxu0 %v6226_v29 }
  0x46   :  { %v9187_v30 = vld [vmem:[#allocation5 + $0x55c] sm:$0xf0] }
  0x47   :  { %v6993_v31 = vld [vmem:[#allocation5 + $0x740] sm:$0xf]  ;;  %v6738_v34 = vor.u32 %v9187_v30, %v6737_v28  ;;  %2602 = vmatpush.bf16.msra.mxu1 %v6482_v33  ;;  %v9071_v33 = vld [vmem:[#allocation5 + $0x1c4] sm:$0xf] }
  0x48   :  { %v9251_v32 = vld [vmem:[#allocation5 + $0x75c] sm:$0xf0] }
  0x49   :  { %v6193_v35 = vld [vmem:[#allocation5 + $0x100] sm:$0xf]  ;;  %v6994_v38 = vor.u32 %v9251_v32, %v6993_v31  ;;  %2615 = vmatpush.bf16.msra.mxu2 %v6738_v34  ;;  %v6291_v34 = vld [vmem:[#allocation5 + $0x1e0] sm:$0xf0] }
  0x4a   :  { %v9051_v36 = vld [vmem:[#allocation5 + $0x11c] sm:$0xf0] }
  0x4b   :  { %v6449_v37 = vld [vmem:[#allocation5 + $0x300] sm:$0xf]  ;;  %v6194_v44 = vor.u32 %v9051_v36, %v6193_v35  ;;  %2628 = vmatpush.bf16.msra.mxu3 %v6994_v38  ;;  %v201_v35 = vld [vmem:[#allocation2 + $0x10] sm:$0xff] }
  0x4c   :  { %v9115_v39 = vld [vmem:[#allocation5 + $0x31c] sm:$0xf0] }
  0x4d   :  { %v6705_v40 = vld [vmem:[#allocation5 + $0x500] sm:$0xf]  ;;  %v6450_v45 = vor.u32 %v9115_v39, %v6449_v37  ;;  %2590 = vmatpush.bf16.msra.mxu0 %v6194_v44  ;;  %v6547_v44 = vld [vmem:[#allocation5 + $0x3e0] sm:$0xf0] }
  0x4e   :  { %v9179_v41 = vld [vmem:[#allocation5 + $0x51c] sm:$0xf0] }
  0x4f   :  { %v6961_v42 = vld [vmem:[#allocation5 + $0x700] sm:$0xf]  ;;  %v6706_v46 = vor.u32 %v9179_v41, %v6705_v40  ;;  %2603 = vmatpush.bf16.msra.mxu1 %v6450_v45  ;;  %v199_v40 = vld [vmem:[#allocation2] sm:$0xff] }
  0x50   :  { %v9243_v43 = vld [vmem:[#allocation5 + $0x71c] sm:$0xf0] }
  0x51   :  { %v6161_v47 = vld [vmem:[#allocation5 + $0xc0] sm:$0xf]  ;;  %v6962_v50 = vor.u32 %v9243_v43, %v6961_v42  ;;  %2616 = vmatpush.bf16.msra.mxu2 %v6706_v46  ;;  %v9135_v43 = vld [vmem:[#allocation5 + $0x3c4] sm:$0xf] }
  0x52   :  { %v9043_v48 = vld [vmem:[#allocation5 + $0xdc] sm:$0xf0] }
  0x53   :  { %v6417_v49 = vld [vmem:[#allocation5 + $0x2c0] sm:$0xf]  ;;  %v6162_v56 = vor.u32 %v9043_v48, %v6161_v47  ;;  %2629 = vmatpush.bf16.msra.mxu3 %v6962_v50  ;;  %v6294_v47 = vor.u32 %v9071_v33, %v6291_v34 }
  0x54   :  { %v9107_v51 = vld [vmem:[#allocation5 + $0x2dc] sm:$0xf0] }
  0x55   :  { %v6673_v52 = vld [vmem:[#allocation5 + $0x4c0] sm:$0xf]  ;;  %v6418_v57 = vor.u32 %v9107_v51, %v6417_v49  ;;  %2591 = vmatpush.bf16.msra.mxu0 %v6162_v56  ;;  %v10191_v51 = vpack.c.bf16 %v201_v35, %v201_v35  ;;  %v9103_v35 = vld [vmem:[#allocation5 + $0x2c4] sm:$0xf] }
  0x56   :  { %v9171_v53 = vld [vmem:[#allocation5 + $0x4dc] sm:$0xf0] }
  0x57   :  { %v6929_v54 = vld [vmem:[#allocation5 + $0x6c0] sm:$0xf]  ;;  %v6674_v58 = vor.u32 %v9171_v53, %v6673_v52  ;;  %2604 = vmatpush.bf16.msra.mxu1 %v6418_v57  ;;  %v9063_v53 = vld [vmem:[#allocation5 + $0x184] sm:$0xf] }
  0x58   :  { %v9235_v55 = vld [vmem:[#allocation5 + $0x6dc] sm:$0xf0] }
  0x59   :  { %v6129_v59 = vld [vmem:[#allocation5 + $0x80] sm:$0xf]  ;;  %v6930_v62 = vor.u32 %v9235_v55, %v6929_v54  ;;  %2617 = vmatpush.bf16.msra.mxu2 %v6674_v58  ;;  %v6259_v54 = vld [vmem:[#allocation5 + $0x1a0] sm:$0xf0]  ;;  %v10193_v55 = vpack.c.bf16 %v199_v40, %v199_v40  ;;  %v200_v58 = vld [vmem:[#allocation2 + $0x8] sm:$0xff] }
  0x5a   :  { %v9035_v60 = vld [vmem:[#allocation5 + $0x9c] sm:$0xf0] }
  0x5b   :  { %v6385_v61 = vld [vmem:[#allocation5 + $0x280] sm:$0xf]  ;;  %v6130_v4 = vor.u32 %v9035_v60, %v6129_v59  ;;  %2630 = vmatpush.bf16.msra.mxu3 %v6930_v62  ;;  %v6550_v59 = vor.u32 %v9135_v43, %v6547_v44  ;;  %v6515_v62 = vld [vmem:[#allocation5 + $0x3a0] sm:$0xf0] }
  0x5c   :  { %v9099_v63 = vld [vmem:[#allocation5 + $0x29c] sm:$0xf0]  ;;  %v9031_v43 = vld [vmem:[#allocation5 + $0x84] sm:$0xf] }
  0x5d   :  { %v6641_v0 = vld [vmem:[#allocation5 + $0x480] sm:$0xf]  ;;  %v6386_v5 = vor.u32 %v9099_v63, %v6385_v61  ;;  %2592 = vmatpush.bf16.msra.mxu0 %v6130_v4  ;;  %v9127_v61 = vld [vmem:[#allocation5 + $0x384] sm:$0xf] }
  0x5e   :  { %v9163_v1 = vld [vmem:[#allocation5 + $0x49c] sm:$0xf0]  ;;  %v6131_v44 = vld [vmem:[#allocation5 + $0xa0] sm:$0xf0] }
  0x5f   :  { %v6897_v2 = vld [vmem:[#allocation5 + $0x680] sm:$0xf]  ;;  %v6642_v6 = vor.u32 %v9163_v1, %v6641_v0  ;;  %2605 = vmatpush.bf16.msra.mxu1 %v6386_v5  ;;  %v6262_v0 = vor.u32 %v9063_v53, %v6259_v54  ;;  %v9055_v5 = vld [vmem:[#allocation5 + $0x144] sm:$0xf] }
  0x60   :  { %v9227_v3 = vld [vmem:[#allocation5 + $0x69c] sm:$0xf0] }
  0x61   :  { %v6097_v7 = vld [vmem:[#allocation5 + $0x40] sm:$0xf]  ;;  %v6898_v10 = vor.u32 %v9227_v3, %v6897_v2  ;;  %2618 = vmatpush.bf16.msra.mxu2 %v6642_v6  ;;  %v6227_v6 = vld [vmem:[#allocation5 + $0x160] sm:$0xf0] }
  0x62   :  { %v9027_v8 = vld [vmem:[#allocation5 + $0x5c] sm:$0xf0] }
  0x63   :  { %v6353_v9 = vld [vmem:[#allocation5 + $0x240] sm:$0xf]  ;;  %v6098_v16 = vor.u32 %v9027_v8, %v6097_v7  ;;  %2631 = vmatpush.bf16.msra.mxu3 %v6898_v10  ;;  %v10199_v7 = vpack.c.bf16 %v200_v58, %v200_v58  ;;  %v6518_v8 = vor.u32 %v9127_v61, %v6515_v62  ;;  %v9119_v10 = vld [vmem:[#allocation5 + $0x344] sm:$0xf] }
  0x64   :  { %v9091_v11 = vld [vmem:[#allocation5 + $0x25c] sm:$0xf0] }
  0x65   :  { %v6609_v12 = vld [vmem:[#allocation5 + $0x440] sm:$0xf]  ;;  %v6354_v20 = vor.u32 %v9091_v11, %v6353_v9  ;;  %2593 = vmatpush.bf16.msra.mxu0 %v6098_v16  ;;  %v6483_v11 = vld [vmem:[#allocation5 + $0x360] sm:$0xf0] }
  0x66   :  { %v9155_v13 = vld [vmem:[#allocation5 + $0x45c] sm:$0xf0] }
  0x67   :  { %v6865_v14 = vld [vmem:[#allocation5 + $0x640] sm:$0xf]  ;;  %v6610_v21 = vor.u32 %v9155_v13, %v6609_v12  ;;  %2606 = vmatpush.bf16.msra.mxu1 %v6354_v20  ;;  %v6230_v13 = vor.u32 %v9055_v5, %v6227_v6  ;;  %v6486_v20 = vor.u32 %v9119_v10, %v6483_v11  ;;  %v9199_v10 = vld [vmem:[#allocation5 + $0x5c4] sm:$0xf] }
  0x68   :  { %v9219_v15 = vld [vmem:[#allocation5 + $0x65c] sm:$0xf0]  ;;  %v6803_v11 = vld [vmem:[#allocation5 + $0x5e0] sm:$0xf0] }
  0x69   :  { %v6065_v17 = vld [vmem:[#allocation5] sm:$0xf]  ;;  %v6866_v25 = vor.u32 %v9219_v15, %v6865_v14  ;;  %2619 = vmatpush.bf16.msra.mxu2 %v6610_v21 }
  0x6a   :  { %v9019_v18 = vld [vmem:[#allocation5 + $0x1c] sm:$0xf0] }
  0x6b   :  { %v6321_v19 = vld [vmem:[#allocation5 + $0x200] sm:$0xf]  ;;  %v6066_v32 = vor.u32 %v9019_v18, %v6065_v17  ;;  %2632 = vmatpush.bf16.msra.mxu3 %v6866_v25  ;;  %v9047_v18 = vld [vmem:[#allocation5 + $0x104] sm:$0xf] }
  0x6c   :  { %v9083_v22 = vld [vmem:[#allocation5 + $0x21c] sm:$0xf0] }
  0x6d   :  { %v6577_v23 = vld [vmem:[#allocation5 + $0x400] sm:$0xf]  ;;  %v6322_v36 = vor.u32 %v9083_v22, %v6321_v19  ;;  %2594 = vmatpush.bf16.msra.mxu0 %v6066_v32  ;;  %v6195_v19 = vld [vmem:[#allocation5 + $0x120] sm:$0xf0]  ;;  %v205_v32 = vld [vmem:[#allocation2 + $0x30] sm:$0xff] }
  0x6e   :  { %v9147_v24 = vld [vmem:[#allocation5 + $0x41c] sm:$0xf0]  ;;  %v9111_v22 = vld [vmem:[#allocation5 + $0x304] sm:$0xf]  ;;  %v6198_v25 = vor.u32 %v9047_v18, %v6195_v19  ;;  %v203_v18 = vld [vmem:[#allocation2 + $0x20] sm:$0xff] }
  0x6f   :  { %v6833_v26 = vld [vmem:[#allocation5 + $0x600] sm:$0xf]  ;;  %v6578_v37 = vor.u32 %v9147_v24, %v6577_v23  ;;  %2607 = vmatpush.bf16.msra.mxu1 %v6322_v36  ;;  %v6451_v23 = vld [vmem:[#allocation5 + $0x320] sm:$0xf0] }
  0x70   :  { %v9211_v27 = vld [vmem:[#allocation5 + $0x61c] sm:$0xf0]  ;;  %2595 = vmatmul.bf16.vlgmr.msra.gmra.mxu0 %v10193_v55  ;;  %v6454_v33 = vor.u32 %v9111_v22, %v6451_v23  ;;  %v6419_v36 = vld [vmem:[#allocation5 + $0x2e0] sm:$0xf0]  ;;  %v204_v23 = vld [vmem:[#allocation2 + $0x28] sm:$0xff] }
  0x71   :  { %v7313_v28 = vld [vmem:[#allocation5 + $0x9c0] sm:$0xf]  ;;  %v6834_v41 = vor.u32 %v9211_v27, %v6833_v26  ;;  %2620 = vmatpush.bf16.msra.mxu2 %v6578_v37  ;;  %v6323_v22 = vld [vmem:[#allocation5 + $0x220] sm:$0xf0] }
  0x72   :  { %v9331_v29 = vld [vmem:[#allocation5 + $0x9dc] sm:$0xf0]  ;;  %2608 = vmatmul.bf16.vlgmr.msra.gmra.mxu1 %v10199_v7 }
  0x73   :  { %v7569_v30 = vld [vmem:[#allocation5 + $0xbc0] sm:$0xf]  ;;  %v7314_v42 = vor.u32 %v9331_v29, %v7313_v28  ;;  %2633 = vmatpush.bf16.msra.mxu3 %v6834_v41 }
  0x74   :  { %v9395_v31 = vld [vmem:[#allocation5 + $0xbdc] sm:$0xf0]  ;;  %2621 = vmatmul.bf16.vlgmr.msra.gmra.mxu2 %v10191_v51 }
  0x75   :  { %v7601_v38 = vld [vmem:[#allocation5 + $0xc00] sm:$0xf]  ;;  %v7570_v46 = vor.u32 %v9395_v31, %v7569_v30  ;;  %2639 = vmatpush.bf16.msrb.mxu0 %v7314_v42  ;;  %v9039_v30 = vld [vmem:[#allocation5 + $0xc4] sm:$0xf] }
  0x76   :  { %v9403_v39 = vld [vmem:[#allocation5 + $0xc1c] sm:$0xf0]  ;;  %v6163_v31 = vld [vmem:[#allocation5 + $0xe0] sm:$0xf0] }
  0x77   :  { %v202_v45 = vld [vmem:[#allocation2 + $0x18] sm:$0xff]  ;;  %v7602_v56 = vor.u32 %v9403_v39, %v7601_v38  ;;  %2652 = vmatpush.bf16.msrb.mxu1 %v7570_v46  ;;  %2678 = vmatpush.bf16.msrb.mxu3 %v6294_v47  ;;  %v6166_v38 = vor.u32 %v9039_v30, %v6163_v31  ;;  %v6422_v46 = vor.u32 %v9103_v35, %v6419_v36 }
  0x78   :  { %v7281_v48 = vld [vmem:[#allocation5 + $0x980] sm:$0xf]  ;;  %v10195_v57 = vpack.c.bf16 %v202_v45, %v202_v45  ;;  %v10203_v45 = vpack.c.bf16 %v205_v32, %v205_v32  ;;  %v10207_v30 = vpack.c.bf16 %v203_v18, %v203_v18  ;;  %v6771_v31 = vld [vmem:[#allocation5 + $0x5a0] sm:$0xf0]  ;;  %v10209_v35 = vpack.c.bf16 %v204_v23, %v204_v23 }
  0x79   :  { %v9323_v49 = vld [vmem:[#allocation5 + $0x99c] sm:$0xf0]  ;;  %2672 = vmatpush.bf16.msrb.mxu2 %v7602_v56  ;;  %v9255_v32 = vld [vmem:[#allocation5 + $0x784] sm:$0xf] }
  0x7a   :  { %v7537_v50 = vld [vmem:[#allocation5 + $0xb80] sm:$0xf]  ;;  %v7282_v60 = vor.u32 %v9323_v49, %v7281_v48  ;;  %2634 = vmatmul.bf16.vlgmr.msra.gmra.mxu3 %v10195_v57  ;;  %v9095_v48 = vld [vmem:[#allocation5 + $0x284] sm:$0xf] }
  0x7b   :  { %v9387_v52 = vld [vmem:[#allocation5 + $0xb9c] sm:$0xf0]  ;;  %2679 = vmatpush.bf16.msrb.mxu3 %v6262_v0  ;;  %v6387_v49 = vld [vmem:[#allocation5 + $0x2a0] sm:$0xf0] }
  0x7c   :  { %v7538_v63 = vor.u32 %v9387_v52, %v7537_v50  ;;  %v7249_v1 = vld [vmem:[#allocation5 + $0x940] sm:$0xf]  ;;  %2640 = vmatpush.bf16.msrb.mxu0 %v7282_v60  ;;  %v6134_v52 = vor.u32 %v9031_v43, %v6131_v44  ;;  %v6099_v60 = vld [vmem:[#allocation5 + $0x60] sm:$0xf0]  ;;  %v6390_v61 = vor.u32 %v9095_v48, %v6387_v49 }
  0x7d   :  { %v9315_v2 = vld [vmem:[#allocation5 + $0x95c] sm:$0xf0]  ;;  %2691 = vmatpush.bf16.msra.mxu2 %v6550_v59  ;;  %v9023_v59 = vld [vmem:[#allocation5 + $0x44] sm:$0xf] }
  0x7e   :  { %v7505_v3 = vld [vmem:[#allocation5 + $0xb40] sm:$0xf]  ;;  %v7250_v9 = vor.u32 %v9315_v2, %v7249_v1  ;;  %2653 = vmatpush.bf16.msrb.mxu1 %v7538_v63  ;;  %v9087_v63 = vld [vmem:[#allocation5 + $0x244] sm:$0xf] }
  0x7f   :  { %v9379_v4 = vld [vmem:[#allocation5 + $0xb5c] sm:$0xf0]  ;;  %2680 = vmatpush.bf16.msrb.mxu3 %v6230_v13  ;;  %v6355_v0 = vld [vmem:[#allocation5 + $0x260] sm:$0xf0] }
  0x80   :  { %v7506_v12 = vor.u32 %v9379_v4, %v7505_v3  ;;  %v7217_v14 = vld [vmem:[#allocation5 + $0x900] sm:$0xf]  ;;  %2641 = vmatpush.bf16.msrb.mxu0 %v7250_v9  ;;  %v6102_v3 = vor.u32 %v9023_v59, %v6099_v60  ;;  %v6067_v9 = vld [vmem:[#allocation5 + $0x20] sm:$0xf0] }
  0x81   :  { %v9307_v15 = vld [vmem:[#allocation5 + $0x91c] sm:$0xf0]  ;;  %2692 = vmatpush.bf16.msra.mxu2 %v6518_v8  ;;  %v9015_v8 = vld [vmem:[#allocation5 + $0x4] sm:$0xf] }
  0x82   :  { %v7473_v16 = vld [vmem:[#allocation5 + $0xb00] sm:$0xf]  ;;  %v7218_v21 = vor.u32 %v9307_v15, %v7217_v14  ;;  %2654 = vmatpush.bf16.msrb.mxu1 %v7506_v12  ;;  %v9263_v12 = vld [vmem:[#allocation5 + $0x7c4] sm:$0xf]  ;;  %v6358_v14 = vor.u32 %v9087_v63, %v6355_v0 }
  0x83   :  { %v9371_v17 = vld [vmem:[#allocation5 + $0xb1c] sm:$0xf0]  ;;  %2681 = vmatpush.bf16.msrb.mxu3 %v6198_v25  ;;  %v7059_v13 = vld [vmem:[#allocation5 + $0x7e0] sm:$0xf0] }
  0x84   :  { %v7474_v24 = vor.u32 %v9371_v17, %v7473_v16  ;;  %v7185_v26 = vld [vmem:[#allocation5 + $0x8c0] sm:$0xf]  ;;  %2642 = vmatpush.bf16.msrb.mxu0 %v7218_v21  ;;  %7631 = vmatmul.msk.bf16.vlgmr.msrb.gmra.mxu2 %vm2583_vm0, %v10203_v45  ;;  %v9327_v16 = vld [vmem:[#allocation5 + $0x9c4] sm:$0xf]  ;;  %v7062_v25 = vor.u32 %v9263_v12, %v7059_v13 }
  0x85   :  { %v9299_v27 = vld [vmem:[#allocation5 + $0x8dc] sm:$0xf0]  ;;  %2693 = vmatpush.bf16.msra.mxu2 %v6486_v20  ;;  %v7315_v17 = vld [vmem:[#allocation5 + $0x9e0] sm:$0xf0]  ;;  %v6070_v20 = vor.u32 %v9015_v8, %v6067_v9 }
  0x86   :  { %v7441_v28 = vld [vmem:[#allocation5 + $0xac0] sm:$0xf]  ;;  %v7186_v34 = vor.u32 %v9299_v27, %v7185_v26  ;;  %2655 = vmatpush.bf16.msrb.mxu1 %v7474_v24  ;;  %v9079_v21 = vld [vmem:[#allocation5 + $0x204] sm:$0xf]  ;;  %v6806_v24 = vor.u32 %v9199_v10, %v6803_v11 }
  0x87   :  { %v9363_v29 = vld [vmem:[#allocation5 + $0xadc] sm:$0xf0]  ;;  %2682 = vmatpush.bf16.msrb.mxu3 %v6166_v38  ;;  %v9391_v26 = vld [vmem:[#allocation5 + $0xbc4] sm:$0xf] }
  0x88   :  { %v7442_v37 = vor.u32 %v9363_v29, %v7441_v28  ;;  %v7153_v39 = vld [vmem:[#allocation5 + $0x880] sm:$0xf]  ;;  %2643 = vmatpush.bf16.msrb.mxu0 %v7186_v34  ;;  %v7571_v27 = vld [vmem:[#allocation5 + $0xbe0] sm:$0xf0]  ;;  %v7318_v29 = vor.u32 %v9327_v16, %v7315_v17  ;;  %v6326_v34 = vor.u32 %v9079_v21, %v6323_v22 }
  0x89   :  { %v9291_v40 = vld [vmem:[#allocation5 + $0x89c] sm:$0xf0]  ;;  %2694 = vmatpush.bf16.msra.mxu2 %v6454_v33  ;;  %v9191_v28 = vld [vmem:[#allocation5 + $0x584] sm:$0xf]  ;;  %v7574_v38 = vor.u32 %v9391_v26, %v7571_v27 }
  0x8a   :  { %v7409_v41 = vld [vmem:[#allocation5 + $0xa80] sm:$0xf]  ;;  %v7154_v47 = vor.u32 %v9291_v40, %v7153_v39  ;;  %2656 = vmatpush.bf16.msrb.mxu1 %v7442_v37  ;;  %v7027_v33 = vld [vmem:[#allocation5 + $0x7a0] sm:$0xf0]  ;;  %v6774_v39 = vor.u32 %v9191_v28, %v6771_v31 }
  0x8b   :  { %v9355_v42 = vld [vmem:[#allocation5 + $0xa9c] sm:$0xf0]  ;;  %2683 = vmatpush.bf16.msrb.mxu3 %v6134_v52  ;;  %v9319_v36 = vld [vmem:[#allocation5 + $0x984] sm:$0xf]  ;;  %v7030_v40 = vor.u32 %v9255_v32, %v7027_v33 }
  0x8c   :  { %v7410_v50 = vor.u32 %v9355_v42, %v7409_v41  ;;  %v7121_v53 = vld [vmem:[#allocation5 + $0x840] sm:$0xf]  ;;  %2644 = vmatpush.bf16.msrb.mxu0 %v7154_v47  ;;  %v7283_v37 = vld [vmem:[#allocation5 + $0x9a0] sm:$0xf0] }
  0x8d   :  { %v9283_v54 = vld [vmem:[#allocation5 + $0x85c] sm:$0xf0]  ;;  %2695 = vmatpush.bf16.msra.mxu2 %v6422_v46  ;;  %v9383_v41 = vld [vmem:[#allocation5 + $0xb84] sm:$0xf]  ;;  %v7286_v44 = vor.u32 %v9319_v36, %v7283_v37 }
  0x8e   :  { %v7377_v56 = vld [vmem:[#allocation5 + $0xa40] sm:$0xf]  ;;  %v7122_v62 = vor.u32 %v9283_v54, %v7121_v53  ;;  %2657 = vmatpush.bf16.msrb.mxu1 %v7410_v50  ;;  %v7539_v42 = vld [vmem:[#allocation5 + $0xba0] sm:$0xf0] }
  0x8f   :  { %v9347_v58 = vld [vmem:[#allocation5 + $0xa5c] sm:$0xf0]  ;;  %2684 = vmatpush.bf16.msrb.mxu3 %v6102_v3  ;;  %v9183_v43 = vld [vmem:[#allocation5 + $0x544] sm:$0xf]  ;;  %v7542_v52 = vor.u32 %v9383_v41, %v7539_v42 }
  0x90   :  { %v7089_v1 = vld [vmem:[#allocation5 + $0x800] sm:$0xf]  ;;  %v7378_v2 = vor.u32 %v9347_v58, %v7377_v56  ;;  %2645 = vmatpush.bf16.msrb.mxu0 %v7122_v62  ;;  %v6739_v46 = vld [vmem:[#allocation5 + $0x560] sm:$0xf0] }
  0x91   :  { %v9275_v4 = vld [vmem:[#allocation5 + $0x81c] sm:$0xf0]  ;;  %2696 = vmatpush.bf16.msra.mxu2 %v6390_v61  ;;  %v9247_v47 = vld [vmem:[#allocation5 + $0x744] sm:$0xf]  ;;  %v6742_v53 = vor.u32 %v9183_v43, %v6739_v46 }
  0x92   :  { %v7345_v5 = vld [vmem:[#allocation5 + $0xa00] sm:$0xf]  ;;  %v7090_v15 = vor.u32 %v9275_v4, %v7089_v1  ;;  %2658 = vmatpush.bf16.msrb.mxu1 %v7378_v2  ;;  %v6995_v48 = vld [vmem:[#allocation5 + $0x760] sm:$0xf0] }
  0x93   :  { %v9339_v6 = vld [vmem:[#allocation5 + $0xa1c] sm:$0xf0]  ;;  %2685 = vmatpush.bf16.msrb.mxu3 %v6070_v20  ;;  %v9311_v49 = vld [vmem:[#allocation5 + $0x944] sm:$0xf]  ;;  %v6998_v54 = vor.u32 %v9247_v47, %v6995_v48 }
  0x94   :  { %v7346_v19 = vor.u32 %v9339_v6, %v7345_v5  ;;  %2646 = vmatpush.bf16.msrb.mxu0 %v7090_v15  ;;  %v7251_v50 = vld [vmem:[#allocation5 + $0x960] sm:$0xf0] }
  0x95   :  { %2697 = vmatpush.bf16.msra.mxu2 %v6358_v14  ;;  %v9375_v56 = vld [vmem:[#allocation5 + $0xb44] sm:$0xf]  ;;  %v7254_v60 = vor.u32 %v9311_v49, %v7251_v50 }
  0x96   :  { %2659 = vmatpush.bf16.msrb.mxu1 %v7346_v19  ;;  %2686 = vmatmul.bf16.vlgmr.msrb.gmra.mxu3 %v10193_v55  ;;  %v7507_v58 = vld [vmem:[#allocation5 + $0xb60] sm:$0xf0] }
  0x97   :  { %2730 = vmatpush.bf16.msra.mxu3 %v7318_v29  ;;  %2647 = vmatmul.bf16.vlgmr.msrb.gmra.mxu0 %v10207_v30  ;;  %v9175_v59 = vld [vmem:[#allocation5 + $0x504] sm:$0xf]  ;;  %v7510_v2 = vor.u32 %v9375_v56, %v7507_v58  ;;  %v6297_v56 = vld [vmem:[#allocation5 + $0x1c8] sm:$0xf] }
  0x98   :  { %2704 = vmatpush.bf16.msra.mxu0 %v6806_v24  ;;  %v6707_v61 = vld [vmem:[#allocation5 + $0x520] sm:$0xf0]  ;;  %v9076_v58 = vld [vmem:[#allocation5 + $0x1e4] sm:$0xf0] }
  0x99   :  { %2698 = vmatpush.bf16.msra.mxu2 %v6326_v34  ;;  %2660 = vmatmul.bf16.vlgmr.msrb.gmra.mxu1 %v10209_v35  ;;  %v9239_v62 = vld [vmem:[#allocation5 + $0x704] sm:$0xf]  ;;  %v6710_v3 = vor.u32 %v9175_v59, %v6707_v61  ;;  %v6553_v59 = vld [vmem:[#allocation5 + $0x3c8] sm:$0xf] }
  0x9a   :  { %2717 = vmatpush.bf16.msra.mxu1 %v7062_v25  ;;  %v6963_v63 = vld [vmem:[#allocation5 + $0x720] sm:$0xf0]  ;;  %v9140_v61 = vld [vmem:[#allocation5 + $0x3e4] sm:$0xf0] }
  0x9b   :  { %2731 = vmatpush.bf16.msra.mxu3 %v7286_v44  ;;  %v9303_v0 = vld [vmem:[#allocation5 + $0x904] sm:$0xf]  ;;  %v6966_v4 = vor.u32 %v9239_v62, %v6963_v63 }
  0x9c   :  { %2705 = vmatpush.bf16.msra.mxu0 %v6774_v39  ;;  %2699 = vmatmul.bf16.vlgmr.msra.gmra.mxu2 %v10199_v7  ;;  %v7219_v1 = vld [vmem:[#allocation5 + $0x920] sm:$0xf0] }
  0x9d   :  { %2743 = vmatpush.bf16.msrb.mxu2 %v7574_v38  ;;  %v9367_v5 = vld [vmem:[#allocation5 + $0xb04] sm:$0xf]  ;;  %v7222_v9 = vor.u32 %v9303_v0, %v7219_v1 }
  0x9e   :  { %2718 = vmatpush.bf16.msra.mxu1 %v7030_v40  ;;  %v7475_v6 = vld [vmem:[#allocation5 + $0xb20] sm:$0xf0] }
  0x9f   :  { %v9167_v8 = vld [vmem:[#allocation5 + $0x4c4] sm:$0xf]  ;;  %2732 = vmatpush.bf16.msra.mxu3 %v7254_v60  ;;  %v7478_v15 = vor.u32 %v9367_v5, %v7475_v6  ;;  %v6298_v6 = vor.u32 %v9076_v58, %v6297_v56  ;;  %v9044_v56 = vld [vmem:[#allocation5 + $0xe4] sm:$0xf0] }
  0xa0   :  { %2706 = vmatpush.bf16.msra.mxu0 %v6742_v53  ;;  %v6675_v10 = vld [vmem:[#allocation5 + $0x4e0] sm:$0xf0]  ;;  %v6425_v58 = vld [vmem:[#allocation5 + $0x2c8] sm:$0xf] }
  0xa1   :  { %2744 = vmatpush.bf16.msrb.mxu2 %v7542_v52  ;;  %v9231_v11 = vld [vmem:[#allocation5 + $0x6c4] sm:$0xf]  ;;  %v6678_v16 = vor.u32 %v9167_v8, %v6675_v10  ;;  %v9204_v8 = vld [vmem:[#allocation5 + $0x5e4] sm:$0xf0] }
  0xa2   :  { %2719 = vmatpush.bf16.msra.mxu1 %v6998_v54  ;;  %v6931_v12 = vld [vmem:[#allocation5 + $0x6e0] sm:$0xf0]  ;;  %v9268_v10 = vld [vmem:[#allocation5 + $0x7e4] sm:$0xf0] }
  0xa3   :  { %v9295_v13 = vld [vmem:[#allocation5 + $0x8c4] sm:$0xf]  ;;  %v6934_v17 = vor.u32 %v9231_v11, %v6931_v12  ;;  %2733 = vmatpush.bf16.msra.mxu3 %v7222_v9  ;;  %v7065_v9 = vld [vmem:[#allocation5 + $0x7c8] sm:$0xf]  ;;  %v6554_v11 = vor.u32 %v9140_v61, %v6553_v59 }
  0xa4   :  { %v7187_v14 = vld [vmem:[#allocation5 + $0x8e0] sm:$0xf0]  ;;  %2707 = vmatpush.bf16.msra.mxu0 %v6710_v3  ;;  %v9108_v59 = vld [vmem:[#allocation5 + $0x2e4] sm:$0xf0] }
  0xa5   :  { %2745 = vmatpush.bf16.msrb.mxu2 %v7510_v2  ;;  %v9359_v18 = vld [vmem:[#allocation5 + $0xac4] sm:$0xf]  ;;  %v7190_v21 = vor.u32 %v9295_v13, %v7187_v14  ;;  %v6265_v13 = vld [vmem:[#allocation5 + $0x188] sm:$0xf] }
  0xa6   :  { %2720 = vmatpush.bf16.msra.mxu1 %v6966_v4  ;;  %v7443_v19 = vld [vmem:[#allocation5 + $0xae0] sm:$0xf0]  ;;  %v6809_v4 = vld [vmem:[#allocation5 + $0x5c8] sm:$0xf] }
  0xa7   :  { %v9159_v20 = vld [vmem:[#allocation5 + $0x484] sm:$0xf]  ;;  %v7446_v27 = vor.u32 %v9359_v18, %v7443_v19  ;;  %2734 = vmatpush.bf16.msra.mxu3 %v7190_v21  ;;  %v9068_v14 = vld [vmem:[#allocation5 + $0x1a4] sm:$0xf0]  ;;  %v6810_v18 = vor.u32 %v9204_v8, %v6809_v4  ;;  %v7066_v19 = vor.u32 %v9268_v10, %v7065_v9 }
  0xa8   :  { %v6643_v22 = vld [vmem:[#allocation5 + $0x4a0] sm:$0xf0]  ;;  %2708 = vmatpush.bf16.msra.mxu0 %v6678_v16  ;;  %v6521_v16 = vld [vmem:[#allocation5 + $0x388] sm:$0xf]  ;;  %v6266_v21 = vor.u32 %v9068_v14, %v6265_v13 }
  0xa9   :  { %v9223_v23 = vld [vmem:[#allocation5 + $0x684] sm:$0xf]  ;;  %2746 = vmatpush.bf16.msrb.mxu2 %v7478_v15  ;;  %v6646_v28 = vor.u32 %v9159_v20, %v6643_v22  ;;  %v6777_v20 = vld [vmem:[#allocation5 + $0x588] sm:$0xf] }
  0xaa   :  { %v6899_v24 = vld [vmem:[#allocation5 + $0x6a0] sm:$0xf0]  ;;  %2721 = vmatpush.bf16.msra.mxu1 %v6934_v17  ;;  %v9132_v17 = vld [vmem:[#allocation5 + $0x3a4] sm:$0xf0] }
  0xab   :  { %v9287_v25 = vld [vmem:[#allocation5 + $0x884] sm:$0xf]  ;;  %v6902_v29 = vor.u32 %v9223_v23, %v6899_v24  ;;  %v9196_v22 = vld [vmem:[#allocation5 + $0x5a4] sm:$0xf0] }
  0xac   :  { %v7155_v26 = vld [vmem:[#allocation5 + $0x8a0] sm:$0xf0]  ;;  %2709 = vmatpush.bf16.msra.mxu0 %v6646_v28  ;;  %v7033_v23 = vld [vmem:[#allocation5 + $0x788] sm:$0xf] }
  0xad   :  { %v9351_v31 = vld [vmem:[#allocation5 + $0xa84] sm:$0xf]  ;;  %v7158_v34 = vor.u32 %v9287_v25, %v7155_v26  ;;  %2747 = vmatpush.bf16.msrb.mxu2 %v7446_v27  ;;  %v9260_v24 = vld [vmem:[#allocation5 + $0x7a4] sm:$0xf0]  ;;  %v6522_v25 = vor.u32 %v9132_v17, %v6521_v16 }
  0xae   :  { %v7411_v32 = vld [vmem:[#allocation5 + $0xaa0] sm:$0xf0]  ;;  %2722 = vmatpush.bf16.msra.mxu1 %v6902_v29  ;;  %v6233_v26 = vld [vmem:[#allocation5 + $0x148] sm:$0xf] }
  0xaf   :  { %v9151_v33 = vld [vmem:[#allocation5 + $0x444] sm:$0xf]  ;;  %v7414_v41 = vor.u32 %v9351_v31, %v7411_v32  ;;  %2735 = vmatpush.bf16.msra.mxu3 %v7158_v34  ;;  %v9060_v27 = vld [vmem:[#allocation5 + $0x164] sm:$0xf0]  ;;  %v6778_v31 = vor.u32 %v9196_v22, %v6777_v20  ;;  %v7034_v32 = vor.u32 %v9260_v24, %v7033_v23 }
  0xb0   :  { %v6611_v36 = vld [vmem:[#allocation5 + $0x460] sm:$0xf0]  ;;  %v6489_v28 = vld [vmem:[#allocation5 + $0x348] sm:$0xf]  ;;  %v6234_v34 = vor.u32 %v9060_v27, %v6233_v26 }
  0xb1   :  { %v9215_v37 = vld [vmem:[#allocation5 + $0x644] sm:$0xf]  ;;  %v6614_v44 = vor.u32 %v9151_v33, %v6611_v36  ;;  %2748 = vmatpush.bf16.msrb.mxu2 %v7414_v41  ;;  %v9124_v29 = vld [vmem:[#allocation5 + $0x364] sm:$0xf0] }
  0xb2   :  { %v6867_v38 = vld [vmem:[#allocation5 + $0x660] sm:$0xf0]  ;;  %v6745_v33 = vld [vmem:[#allocation5 + $0x548] sm:$0xf] }
  0xb3   :  { %v9279_v39 = vld [vmem:[#allocation5 + $0x844] sm:$0xf]  ;;  %v6870_v46 = vor.u32 %v9215_v37, %v6867_v38  ;;  %2710 = vmatpush.bf16.msra.mxu0 %v6614_v44  ;;  %v9188_v36 = vld [vmem:[#allocation5 + $0x564] sm:$0xf0] }
  0xb4   :  { %v7123_v40 = vld [vmem:[#allocation5 + $0x860] sm:$0xf0]  ;;  %v7001_v37 = vld [vmem:[#allocation5 + $0x748] sm:$0xf]  ;;  %v6746_v44 = vor.u32 %v9188_v36, %v6745_v33 }
  0xb5   :  { %v9343_v42 = vld [vmem:[#allocation5 + $0xa44] sm:$0xf]  ;;  %v7126_v50 = vor.u32 %v9279_v39, %v7123_v40  ;;  %2723 = vmatpush.bf16.msra.mxu1 %v6870_v46  ;;  %v9252_v38 = vld [vmem:[#allocation5 + $0x764] sm:$0xf0]  ;;  %v6490_v39 = vor.u32 %v9124_v29, %v6489_v28 }
  0xb6   :  { %v7379_v43 = vld [vmem:[#allocation5 + $0xa60] sm:$0xf0]  ;;  %v6201_v40 = vld [vmem:[#allocation5 + $0x108] sm:$0xf]  ;;  %v7002_v46 = vor.u32 %v9252_v38, %v7001_v37 }
  0xb7   :  { %v9143_v47 = vld [vmem:[#allocation5 + $0x404] sm:$0xf]  ;;  %v7382_v60 = vor.u32 %v9343_v42, %v7379_v43  ;;  %2736 = vmatpush.bf16.msra.mxu3 %v7126_v50  ;;  %v9052_v41 = vld [vmem:[#allocation5 + $0x124] sm:$0xf0] }
  0xb8   :  { %v6579_v48 = vld [vmem:[#allocation5 + $0x420] sm:$0xf0]  ;;  %v6457_v42 = vld [vmem:[#allocation5 + $0x308] sm:$0xf] }
  0xb9   :  { %v9207_v49 = vld [vmem:[#allocation5 + $0x604] sm:$0xf]  ;;  %v6582_v0 = vor.u32 %v9143_v47, %v6579_v48  ;;  %2749 = vmatpush.bf16.msrb.mxu2 %v7382_v60  ;;  %v9116_v43 = vld [vmem:[#allocation5 + $0x324] sm:$0xf0]  ;;  %v6202_v48 = vor.u32 %v9052_v41, %v6201_v40 }
  0xba   :  { %v6835_v52 = vld [vmem:[#allocation5 + $0x620] sm:$0xf0]  ;;  %v6713_v47 = vld [vmem:[#allocation5 + $0x508] sm:$0xf] }
  0xbb   :  { %v9271_v53 = vld [vmem:[#allocation5 + $0x804] sm:$0xf]  ;;  %v6838_v1 = vor.u32 %v9207_v49, %v6835_v52  ;;  %2711 = vmatpush.bf16.msra.mxu0 %v6582_v0  ;;  %v9180_v49 = vld [vmem:[#allocation5 + $0x524] sm:$0xf0] }
  0xbc   :  { %v7091_v54 = vld [vmem:[#allocation5 + $0x820] sm:$0xf0]  ;;  %v6969_v50 = vld [vmem:[#allocation5 + $0x708] sm:$0xf]  ;;  %v6714_v60 = vor.u32 %v9180_v49, %v6713_v47  ;;  %v9072_v47 = vld [vmem:[#allocation5 + $0x1cc] sm:$0xf] }
  0xbd   :  { %v9399_v62 = vld [vmem:[#allocation5 + $0xc04] sm:$0xf]  ;;  %v7094_v5 = vor.u32 %v9271_v53, %v7091_v54  ;;  %2724 = vmatpush.bf16.msra.mxu1 %v6838_v1  ;;  %v9244_v52 = vld [vmem:[#allocation5 + $0x724] sm:$0xf0]  ;;  %v6458_v53 = vor.u32 %v9116_v43, %v6457_v42 }
  0xbe   :  { %v7603_v63 = vld [vmem:[#allocation5 + $0xc20] sm:$0xf0]  ;;  %2712 = vmatmul.bf16.vlgmr.msra.gmra.mxu0 %v10191_v51  ;;  %v6169_v54 = vld [vmem:[#allocation5 + $0xc8] sm:$0xf]  ;;  %v6970_v61 = vor.u32 %v9244_v52, %v6969_v50  ;;  %v6299_v50 = vld [vmem:[#allocation5 + $0x1e8] sm:$0xf0] }
  0xbf   :  { %v9335_v2 = vld [vmem:[#allocation5 + $0xa04] sm:$0xf]  ;;  %v7606_v12 = vor.u32 %v9399_v62, %v7603_v63  ;;  %2737 = vmatpush.bf16.msra.mxu3 %v7094_v5  ;;  %v6681_v62 = vld [vmem:[#allocation5 + $0x4c8] sm:$0xf]  ;;  %v6170_v63 = vor.u32 %v9044_v56, %v6169_v54 }
  0xc0   :  { %v7347_v3 = vld [vmem:[#allocation5 + $0xa20] sm:$0xf0]  ;;  %2725 = vmatmul.bf16.vlgmr.msra.gmra.mxu1 %v10195_v57  ;;  %v9172_v0 = vld [vmem:[#allocation5 + $0x4e4] sm:$0xf0] }
  0xc1   :  { %v7350_v15 = vor.u32 %v9335_v2, %v7347_v3  ;;  %2769 = vmatpush.bf16.msrb.mxu1 %v6298_v6  ;;  %2763 = vmatpush.bf16.msrb.mxu0 %v7606_v12  ;;  %v6937_v1 = vld [vmem:[#allocation5 + $0x6c8] sm:$0xf]  ;;  %v6426_v3 = vor.u32 %v9108_v59, %v6425_v58  ;;  %v6682_v9 = vor.u32 %v9172_v0, %v6681_v62 }
  0xc2   :  { %2738 = vmatmul.bf16.vlgmr.msra.gmra.mxu3 %v10207_v30  ;;  %v9236_v2 = vld [vmem:[#allocation5 + $0x6e4] sm:$0xf0] }
  0xc3   :  { %2782 = vmatpush.bf16.msrb.mxu3 %v6554_v11  ;;  %2750 = vmatpush.bf16.msrb.mxu2 %v7350_v15  ;;  %v6137_v4 = vld [vmem:[#allocation5 + $0x88] sm:$0xf]  ;;  %v6938_v10 = vor.u32 %v9236_v2, %v6937_v1  ;;  %v9136_v1 = vld [vmem:[#allocation5 + $0x3cc] sm:$0xf] }
  0xc4   :  { %v9036_v5 = vld [vmem:[#allocation5 + $0xa4] sm:$0xf0]  ;;  %v6555_v2 = vld [vmem:[#allocation5 + $0x3e8] sm:$0xf0] }
  0xc5   :  { %2795 = vmatpush.bf16.msra.mxu0 %v6810_v18  ;;  %2770 = vmatpush.bf16.msrb.mxu1 %v6266_v21  ;;  %v6393_v6 = vld [vmem:[#allocation5 + $0x288] sm:$0xf]  ;;  %v6138_v12 = vor.u32 %v9036_v5, %v6137_v4  ;;  %v9064_v4 = vld [vmem:[#allocation5 + $0x18c] sm:$0xf] }
  0xc6   :  { %2751 = vmatmul.bf16.vlgmr.msrb.gmra.mxu2 %v10209_v35  ;;  %v9100_v8 = vld [vmem:[#allocation5 + $0x2a4] sm:$0xf0]  ;;  %v6267_v5 = vld [vmem:[#allocation5 + $0x1a8] sm:$0xf0] }
  0xc7   :  { %2808 = vmatpush.bf16.msra.mxu2 %v7066_v19  ;;  %2783 = vmatpush.bf16.msrb.mxu3 %v6522_v25  ;;  %v6649_v11 = vld [vmem:[#allocation5 + $0x488] sm:$0xf]  ;;  %v6394_v16 = vor.u32 %v9100_v8, %v6393_v6 }
  0xc8   :  { %v9164_v13 = vld [vmem:[#allocation5 + $0x4a4] sm:$0xf0] }
  0xc9   :  { %2796 = vmatpush.bf16.msra.mxu0 %v6778_v31  ;;  %2771 = vmatpush.bf16.msrb.mxu1 %v6234_v34  ;;  %v6905_v14 = vld [vmem:[#allocation5 + $0x688] sm:$0xf]  ;;  %v6650_v21 = vor.u32 %v9164_v13, %v6649_v11  ;;  %v6270_v13 = vor.u32 %v9064_v4, %v6267_v5  ;;  %v9096_v4 = vld [vmem:[#allocation5 + $0x28c] sm:$0xf] }
  0xca   :  { %v9228_v15 = vld [vmem:[#allocation5 + $0x6a4] sm:$0xf0]  ;;  %v6395_v5 = vld [vmem:[#allocation5 + $0x2a8] sm:$0xf0] }
  0xcb   :  { %2809 = vmatpush.bf16.msra.mxu2 %v7034_v32  ;;  %2784 = vmatpush.bf16.msrb.mxu3 %v6490_v39  ;;  %v6105_v17 = vld [vmem:[#allocation5 + $0x48] sm:$0xf]  ;;  %v6906_v22 = vor.u32 %v9228_v15, %v6905_v14  ;;  %v9128_v14 = vld [vmem:[#allocation5 + $0x38c] sm:$0xf] }
  0xcc   :  { %v9028_v18 = vld [vmem:[#allocation5 + $0x64] sm:$0xf0]  ;;  %v6523_v15 = vld [vmem:[#allocation5 + $0x3a8] sm:$0xf0] }
  0xcd   :  { %2797 = vmatpush.bf16.msra.mxu0 %v6746_v44  ;;  %2772 = vmatpush.bf16.msrb.mxu1 %v6202_v48  ;;  %v6361_v19 = vld [vmem:[#allocation5 + $0x248] sm:$0xf]  ;;  %v6106_v25 = vor.u32 %v9028_v18, %v6105_v17  ;;  %v9056_v17 = vld [vmem:[#allocation5 + $0x14c] sm:$0xf] }
  0xce   :  { %7632 = vmatmul.msk.bf16.vlgmr.msrb.gmra.mxu0 %vm2583_vm0, %v10203_v45  ;;  %v9092_v20 = vld [vmem:[#allocation5 + $0x264] sm:$0xf0]  ;;  %v6235_v18 = vld [vmem:[#allocation5 + $0x168] sm:$0xf0] }
  0xcf   :  { %2810 = vmatpush.bf16.msra.mxu2 %v7002_v46  ;;  %2785 = vmatpush.bf16.msrb.mxu3 %v6458_v53  ;;  %v6617_v23 = vld [vmem:[#allocation5 + $0x448] sm:$0xf]  ;;  %v6362_v29 = vor.u32 %v9092_v20, %v6361_v19 }
  0xd0   :  { %v9156_v24 = vld [vmem:[#allocation5 + $0x464] sm:$0xf0] }
  0xd1   :  { %2798 = vmatpush.bf16.msra.mxu0 %v6714_v60  ;;  %2773 = vmatpush.bf16.msrb.mxu1 %v6170_v63  ;;  %v6873_v26 = vld [vmem:[#allocation5 + $0x648] sm:$0xf]  ;;  %v6618_v38 = vor.u32 %v9156_v24, %v6617_v23  ;;  %v6302_v63 = vor.u32 %v9072_v47, %v6299_v50 }
  0xd2   :  { %v9220_v27 = vld [vmem:[#allocation5 + $0x664] sm:$0xf0] }
  0xd3   :  { %2811 = vmatpush.bf16.msra.mxu2 %v6970_v61  ;;  %2786 = vmatpush.bf16.msrb.mxu3 %v6426_v3  ;;  %v6073_v28 = vld [vmem:[#allocation5 + $0x8] sm:$0xf]  ;;  %v6874_v39 = vor.u32 %v9220_v27, %v6873_v26  ;;  %v9120_v26 = vld [vmem:[#allocation5 + $0x34c] sm:$0xf] }
  0xd4   :  { %v9020_v31 = vld [vmem:[#allocation5 + $0x24] sm:$0xf0]  ;;  %v6491_v27 = vld [vmem:[#allocation5 + $0x368] sm:$0xf0] }
  0xd5   :  { %2799 = vmatpush.bf16.msra.mxu0 %v6682_v9  ;;  %2774 = vmatpush.bf16.msrb.mxu1 %v6138_v12  ;;  %v6329_v32 = vld [vmem:[#allocation5 + $0x208] sm:$0xf]  ;;  %v6074_v43 = vor.u32 %v9020_v31, %v6073_v28  ;;  %v6203_v31 = vld [vmem:[#allocation5 + $0x128] sm:$0xf0] }
  0xd6   :  { %v9084_v33 = vld [vmem:[#allocation5 + $0x224] sm:$0xf0] }
  0xd7   :  { %2812 = vmatpush.bf16.msra.mxu2 %v6938_v10  ;;  %2787 = vmatpush.bf16.msrb.mxu3 %v6394_v16  ;;  %v7321_v34 = vld [vmem:[#allocation5 + $0x9c8] sm:$0xf]  ;;  %v6330_v48 = vor.u32 %v9084_v33, %v6329_v32  ;;  %v6558_v10 = vor.u32 %v9136_v1, %v6555_v2 }
  0xd8   :  { %v9332_v36 = vld [vmem:[#allocation5 + $0x9e4] sm:$0xf0] }
  0xd9   :  { %v7577_v37 = vld [vmem:[#allocation5 + $0xbc8] sm:$0xf]  ;;  %2800 = vmatpush.bf16.msra.mxu0 %v6650_v21  ;;  %2775 = vmatpush.bf16.msrb.mxu1 %v6106_v25  ;;  %v7322_v49 = vor.u32 %v9332_v36, %v7321_v34  ;;  %v6238_v25 = vor.u32 %v9056_v17, %v6235_v18  ;;  %v6494_v36 = vor.u32 %v9120_v26, %v6491_v27  ;;  %v6811_v17 = vld [vmem:[#allocation5 + $0x5e8] sm:$0xf0] }
  0xda   :  { %v9396_v40 = vld [vmem:[#allocation5 + $0xbe4] sm:$0xf0]  ;;  %v9264_v18 = vld [vmem:[#allocation5 + $0x7cc] sm:$0xf] }
  0xdb   :  { %2813 = vmatpush.bf16.msra.mxu2 %v6906_v22  ;;  %v6585_v41 = vld [vmem:[#allocation5 + $0x408] sm:$0xf]  ;;  %2788 = vmatpush.bf16.msrb.mxu3 %v6362_v29  ;;  %v7578_v54 = vor.u32 %v9396_v40, %v7577_v37  ;;  %v6526_v22 = vor.u32 %v9128_v14, %v6523_v15  ;;  %v9048_v29 = vld [vmem:[#allocation5 + $0x10c] sm:$0xf]  ;;  %v6398_v15 = vor.u32 %v9096_v4, %v6395_v5 }
  0xdc   :  { %v9148_v42 = vld [vmem:[#allocation5 + $0x424] sm:$0xf0]  ;;  %v9112_v40 = vld [vmem:[#allocation5 + $0x30c] sm:$0xf] }
  0xdd   :  { %v6841_v44 = vld [vmem:[#allocation5 + $0x608] sm:$0xf]  ;;  %2801 = vmatpush.bf16.msra.mxu0 %v6618_v38  ;;  %v6586_v59 = vor.u32 %v9148_v42, %v6585_v41  ;;  %2776 = vmatpush.bf16.msrb.mxu1 %v6074_v43  ;;  %v6459_v41 = vld [vmem:[#allocation5 + $0x328] sm:$0xf0] }
  0xde   :  { %v9212_v46 = vld [vmem:[#allocation5 + $0x624] sm:$0xf0]  ;;  %v9040_v43 = vld [vmem:[#allocation5 + $0xcc] sm:$0xf] }
  0xdf   :  { %v7609_v52 = vld [vmem:[#allocation5 + $0xc08] sm:$0xf]  ;;  %2814 = vmatpush.bf16.msra.mxu2 %v6874_v39  ;;  %v6842_v60 = vor.u32 %v9212_v46, %v6841_v44  ;;  %2789 = vmatpush.bf16.msrb.mxu3 %v6330_v48  ;;  %v6206_v39 = vor.u32 %v9048_v29, %v6203_v31  ;;  %v6171_v44 = vld [vmem:[#allocation5 + $0xe8] sm:$0xf0] }
  0xe0   :  { %v9404_v53 = vld [vmem:[#allocation5 + $0xc24] sm:$0xf0]  ;;  %2777 = vmatmul.bf16.vlgmr.msrb.gmra.mxu1 %v10193_v55  ;;  %v7323_v29 = vld [vmem:[#allocation5 + $0x9e8] sm:$0xf0] }
  0xe1   :  { %v7289_v56 = vld [vmem:[#allocation5 + $0x988] sm:$0xf]  ;;  %v7610_v0 = vor.u32 %v9404_v53, %v7609_v52  ;;  %2821 = vmatpush.bf16.msra.mxu1 %v7322_v49  ;;  %2802 = vmatpush.bf16.msra.mxu0 %v6586_v59  ;;  %v6462_v49 = vor.u32 %v9112_v40, %v6459_v41  ;;  %v6174_v53 = vor.u32 %v9040_v43, %v6171_v44  ;;  %v9032_v59 = vld [vmem:[#allocation5 + $0x8c] sm:$0xf] }
  0xe2   :  { %v9324_v58 = vld [vmem:[#allocation5 + $0x9a4] sm:$0xf0]  ;;  %2790 = vmatmul.bf16.vlgmr.msrb.gmra.mxu3 %v10199_v7  ;;  %v6331_v40 = vld [vmem:[#allocation5 + $0x228] sm:$0xf0] }
  0xe3   :  { %v7545_v61 = vld [vmem:[#allocation5 + $0xb88] sm:$0xf]  ;;  %v7290_v3 = vor.u32 %v9324_v58, %v7289_v56  ;;  %2834 = vmatpush.bf16.msra.mxu3 %v7578_v54  ;;  %2815 = vmatpush.bf16.msra.mxu2 %v6842_v60  ;;  %v9104_v54 = vld [vmem:[#allocation5 + $0x2cc] sm:$0xf] }
  0xe4   :  { %v9388_v62 = vld [vmem:[#allocation5 + $0xba4] sm:$0xf0]  ;;  %2803 = vmatmul.bf16.vlgmr.msra.gmra.mxu0 %v10191_v51  ;;  %v6427_v56 = vld [vmem:[#allocation5 + $0x2e8] sm:$0xf0] }
  0xe5   :  { %v7546_v6 = vor.u32 %v9388_v62, %v7545_v61  ;;  %v7257_v8 = vld [vmem:[#allocation5 + $0x948] sm:$0xf]  ;;  %2854 = vmatpush.bf16.msrb.mxu0 %v7610_v0  ;;  %2822 = vmatpush.bf16.msra.mxu1 %v7290_v3  ;;  %v6139_v60 = vld [vmem:[#allocation5 + $0xa8] sm:$0xf0]  ;;  %v6430_v0 = vor.u32 %v9104_v54, %v6427_v56 }
  0xe6   :  { %v9316_v9 = vld [vmem:[#allocation5 + $0x964] sm:$0xf0]  ;;  %2816 = vmatmul.bf16.vlgmr.msra.gmra.mxu2 %v10195_v57  ;;  %v6142_v3 = vor.u32 %v9032_v59, %v6139_v60  ;;  %v7579_v43 = vld [vmem:[#allocation5 + $0xbe8] sm:$0xf0] }
  0xe7   :  { %v7513_v11 = vld [vmem:[#allocation5 + $0xb48] sm:$0xf]  ;;  %2860 = vmatpush.bf16.msrb.mxu2 %v6302_v63  ;;  %v7258_v16 = vor.u32 %v9316_v9, %v7257_v8  ;;  %2835 = vmatpush.bf16.msra.mxu3 %v7546_v6  ;;  %v9024_v8 = vld [vmem:[#allocation5 + $0x4c] sm:$0xf] }
  0xe8   :  { %v9380_v12 = vld [vmem:[#allocation5 + $0xb64] sm:$0xf0]  ;;  %v6107_v9 = vld [vmem:[#allocation5 + $0x68] sm:$0xf0] }
  0xe9   :  { %v7514_v19 = vor.u32 %v9380_v12, %v7513_v11  ;;  %v7225_v20 = vld [vmem:[#allocation5 + $0x908] sm:$0xf]  ;;  %2873 = vmatpush.bf16.msra.mxu0 %v6558_v10  ;;  %2823 = vmatpush.bf16.msra.mxu1 %v7258_v16  ;;  %v9200_v16 = vld [vmem:[#allocation5 + $0x5cc] sm:$0xf] }
  0xea   :  { %v9308_v21 = vld [vmem:[#allocation5 + $0x924] sm:$0xf0]  ;;  %v6814_v27 = vor.u32 %v9200_v16, %v6811_v17  ;;  %v9248_v54 = vld [vmem:[#allocation5 + $0x74c] sm:$0xf] }
  0xeb   :  { %v7481_v23 = vld [vmem:[#allocation5 + $0xb08] sm:$0xf]  ;;  %2861 = vmatpush.bf16.msrb.mxu2 %v6270_v13  ;;  %v7226_v28 = vor.u32 %v9308_v21, %v7225_v20  ;;  %2836 = vmatpush.bf16.msra.mxu3 %v7514_v19  ;;  %v6110_v19 = vor.u32 %v9024_v8, %v6107_v9  ;;  %v7067_v20 = vld [vmem:[#allocation5 + $0x7e8] sm:$0xf0] }
  0xec   :  { %v9372_v24 = vld [vmem:[#allocation5 + $0xb24] sm:$0xf0]  ;;  %v9088_v21 = vld [vmem:[#allocation5 + $0x24c] sm:$0xf]  ;;  %v7070_v31 = vor.u32 %v9264_v18, %v7067_v20 }
  0xed   :  { %v7482_v32 = vor.u32 %v9372_v24, %v7481_v23  ;;  %v7193_v33 = vld [vmem:[#allocation5 + $0x8c8] sm:$0xf]  ;;  %2874 = vmatpush.bf16.msra.mxu0 %v6526_v22  ;;  %2824 = vmatpush.bf16.msra.mxu1 %v7226_v28  ;;  %v6363_v22 = vld [vmem:[#allocation5 + $0x268] sm:$0xf0] }
  0xee   :  { %v9300_v34 = vld [vmem:[#allocation5 + $0x8e4] sm:$0xf0]  ;;  %v9016_v24 = vld [vmem:[#allocation5 + $0xc] sm:$0xf] }
  0xef   :  { %v7449_v37 = vld [vmem:[#allocation5 + $0xac8] sm:$0xf]  ;;  %2862 = vmatpush.bf16.msrb.mxu2 %v6238_v25  ;;  %v7194_v42 = vor.u32 %v9300_v34, %v7193_v33  ;;  %2837 = vmatpush.bf16.msra.mxu3 %v7482_v32  ;;  %v6075_v25 = vld [vmem:[#allocation5 + $0x28] sm:$0xf0]  ;;  %v6366_v32 = vor.u32 %v9088_v21, %v6363_v22  ;;  %v2596_v21 = vpop.f32.mrf.mxu0 }
  0xf0   :  { %v9364_v38 = vld [vmem:[#allocation5 + $0xae4] sm:$0xf0]  ;;  %v9328_v28 = vld [vmem:[#allocation5 + $0x9cc] sm:$0xf] }
  0xf1   :  { %v7450_v46 = vor.u32 %v9364_v38, %v7449_v37  ;;  %v7161_v47 = vld [vmem:[#allocation5 + $0x888] sm:$0xf]  ;;  %2875 = vmatpush.bf16.msra.mxu0 %v6494_v36  ;;  %2825 = vmatpush.bf16.msra.mxu1 %v7194_v42  ;;  %v9192_v33 = vld [vmem:[#allocation5 + $0x58c] sm:$0xf]  ;;  %v6078_v37 = vor.u32 %v9016_v24, %v6075_v25  ;;  %v7326_v41 = vor.u32 %v9328_v28, %v7323_v29 }
  0xf2   :  { %v9292_v48 = vld [vmem:[#allocation5 + $0x8a4] sm:$0xf0]  ;;  %v6779_v34 = vld [vmem:[#allocation5 + $0x5a8] sm:$0xf0] }
  0xf3   :  { %v7417_v50 = vld [vmem:[#allocation5 + $0xa88] sm:$0xf]  ;;  %2863 = vmatpush.bf16.msrb.mxu2 %v6206_v39  ;;  %v7162_v58 = vor.u32 %v9292_v48, %v7161_v47  ;;  %2838 = vmatpush.bf16.msra.mxu3 %v7450_v46  ;;  %v9256_v36 = vld [vmem:[#allocation5 + $0x78c] sm:$0xf]  ;;  %v6782_v44 = vor.u32 %v9192_v33, %v6779_v34  ;;  %v2609_v34 = vpop.f32.mrf.mxu1 }
  0xf4   :  { %v9356_v52 = vld [vmem:[#allocation5 + $0xaa4] sm:$0xf0]  ;;  %7633 = vmatmul.msk.bf16.vlgmr.msrb.gmra.mxu0 %vm2583_vm0, %v10203_v45  ;;  %v7035_v38 = vld [vmem:[#allocation5 + $0x7a8] sm:$0xf0] }
  0xf5   :  { %v7418_v61 = vor.u32 %v9356_v52, %v7417_v50  ;;  %v7129_v62 = vld [vmem:[#allocation5 + $0x848] sm:$0xf]  ;;  %2876 = vmatpush.bf16.msra.mxu0 %v6462_v49  ;;  %2826 = vmatpush.bf16.msra.mxu1 %v7162_v58  ;;  %v9080_v39 = vld [vmem:[#allocation5 + $0x20c] sm:$0xf]  ;;  %v7038_v48 = vor.u32 %v9256_v36, %v7035_v38 }
  0xf6   :  { %v9284_v63 = vld [vmem:[#allocation5 + $0x864] sm:$0xf0]  ;;  %v9392_v42 = vld [vmem:[#allocation5 + $0xbcc] sm:$0xf]  ;;  %v6334_v49 = vor.u32 %v9080_v39, %v6331_v40 }
  0xf7   :  { %v7385_v1 = vld [vmem:[#allocation5 + $0xa48] sm:$0xf]  ;;  %2864 = vmatpush.bf16.msrb.mxu2 %v6174_v53  ;;  %v7130_v6 = vor.u32 %v9284_v63, %v7129_v62  ;;  %2839 = vmatpush.bf16.msra.mxu3 %v7418_v61  ;;  %v9320_v46 = vld [vmem:[#allocation5 + $0x98c] sm:$0xf]  ;;  %v7582_v53 = vor.u32 %v9392_v42, %v7579_v43  ;;  %v2622_v42 = vpop.f32.mrf.mxu2 }
  0xf8   :  { %v9348_v2 = vld [vmem:[#allocation5 + $0xa64] sm:$0xf0]  ;;  %v7291_v47 = vld [vmem:[#allocation5 + $0x9a8] sm:$0xf0] }
  0xf9   :  { %v7097_v10 = vld [vmem:[#allocation5 + $0x808] sm:$0xf]  ;;  %v7386_v11 = vor.u32 %v9348_v2, %v7385_v1  ;;  %2877 = vmatpush.bf16.msra.mxu0 %v6430_v0  ;;  %2827 = vmatpush.bf16.msra.mxu1 %v7130_v6  ;;  %v9184_v50 = vld [vmem:[#allocation5 + $0x54c] sm:$0xf]  ;;  %v7294_v58 = vor.u32 %v9320_v46, %v7291_v47  ;;  %v10229_v0 = vld [vmem:[#allocation7] sm:$0xff] }
  0xfa   :  { %v9276_v12 = vld [vmem:[#allocation5 + $0x824] sm:$0xf0]  ;;  %v6747_v52 = vld [vmem:[#allocation5 + $0x568] sm:$0xf0] }
  0xfb   :  { %v7353_v13 = vld [vmem:[#allocation5 + $0xa08] sm:$0xf]  ;;  %2865 = vmatpush.bf16.msrb.mxu2 %v6142_v3  ;;  %v7098_v23 = vor.u32 %v9276_v12, %v7097_v10  ;;  %2840 = vmatpush.bf16.msra.mxu3 %v7386_v11  ;;  %v7003_v56 = vld [vmem:[#allocation5 + $0x768] sm:$0xf0]  ;;  %v6750_v61 = vor.u32 %v9184_v50, %v6747_v52  ;;  %v607_v11 = vperm.slane %v10229_v0, 0 }
  0xfc   :  { %v9340_v14 = vld [vmem:[#allocation5 + $0xa24] sm:$0xf0]  ;;  %v9384_v59 = vld [vmem:[#allocation5 + $0xb8c] sm:$0xf]  ;;  %v7006_v1 = vor.u32 %v9248_v54, %v7003_v56 }
  0xfd   :  { %v7354_v26 = vor.u32 %v9340_v14, %v7353_v13  ;;  %2878 = vmatpush.bf16.msra.mxu0 %v6398_v15  ;;  %2828 = vmatpush.bf16.msra.mxu1 %v7098_v23  ;;  %v7547_v60 = vld [vmem:[#allocation5 + $0xba8] sm:$0xf0]  ;;  %v2597_v23 = vadd.f32 %v2596_v21, %v607_v11 }
  0xfe   :  { %v9312_v62 = vld [vmem:[#allocation5 + $0x94c] sm:$0xf]  ;;  %v7550_v4 = vor.u32 %v9384_v59, %v7547_v60 }
  0xff   :  { %2866 = vmatpush.bf16.msrb.mxu2 %v6110_v19  ;;  %2841 = vmatpush.bf16.msra.mxu3 %v7354_v26  ;;  %v7259_v63 = vld [vmem:[#allocation5 + $0x968] sm:$0xf0]  ;;  %v2610_v38 = vadd.f32 %v2609_v34, %v2597_v23  ;;  %v9069_v34 = vld [vmem:[#allocation5 + $0x1ac] sm:$0xf0] }
 0x100   :  { %2829 = vmatmul.bf16.vlgmr.msra.gmra.mxu1 %v10207_v30  ;;  %v9176_v2 = vld [vmem:[#allocation5 + $0x50c] sm:$0xf]  ;;  %v7262_v8 = vor.u32 %v9312_v62, %v7259_v63 }
 0x101   :  { %2886 = vmatpush.bf16.msrb.mxu1 %v6814_v27  ;;  %2879 = vmatpush.bf16.msra.mxu0 %v6366_v32  ;;  %v6715_v3 = vld [vmem:[#allocation5 + $0x528] sm:$0xf0] }
 0x102   :  { %2842 = vmatmul.bf16.vlgmr.msra.gmra.mxu3 %v10209_v35  ;;  %v9240_v5 = vld [vmem:[#allocation5 + $0x70c] sm:$0xf]  ;;  %v6718_v12 = vor.u32 %v9176_v2, %v6715_v3 }
 0x103   :  { %2899 = vmatpush.bf16.msrb.mxu3 %v7070_v31  ;;  %2867 = vmatpush.bf16.msrb.mxu2 %v6078_v37  ;;  %v6971_v6 = vld [vmem:[#allocation5 + $0x728] sm:$0xf0] }
 0x104   :  { %v9376_v9 = vld [vmem:[#allocation5 + $0xb4c] sm:$0xf]  ;;  %v6974_v15 = vor.u32 %v9240_v5, %v6971_v6 }
 0x105   :  { %2887 = vmatpush.bf16.msrb.mxu1 %v6782_v44  ;;  %2880 = vmatpush.bf16.msra.mxu0 %v6334_v49  ;;  %v7515_v10 = vld [vmem:[#allocation5 + $0xb68] sm:$0xf0]  ;;  %v2635_v49 = vpop.f32.mrf.mxu3 }
 0x106   :  { %2868 = vmatmul.bf16.vlgmr.msrb.gmra.mxu2 %v10193_v55  ;;  %v9304_v13 = vld [vmem:[#allocation5 + $0x90c] sm:$0xf]  ;;  %v7518_v18 = vor.u32 %v9376_v9, %v7515_v10  ;;  %v6305_v10 = vld [vmem:[#allocation5 + $0x1d0] sm:$0xf] }
 0x107   :  { %2912 = vmatpush.bf16.msra.mxu2 %v7326_v41  ;;  %2900 = vmatpush.bf16.msrb.mxu3 %v7038_v48  ;;  %v7227_v14 = vld [vmem:[#allocation5 + $0x928] sm:$0xf0]  ;;  %v2623_v48 = vadd.f32 %v2622_v42, %v2610_v38  ;;  %v6529_v42 = vld [vmem:[#allocation5 + $0x390] sm:$0xf] }
 0x108   :  { %2881 = vmatmul.bf16.vlgmr.msra.gmra.mxu0 %v10199_v7  ;;  %v9168_v16 = vld [vmem:[#allocation5 + $0x4cc] sm:$0xf]  ;;  %v7230_v22 = vor.u32 %v9304_v13, %v7227_v14  ;;  %v2611_v13 = vpop.f32.mrf.mxu1 }
 0x109   :  { %2925 = vmatpush.bf16.msrb.mxu0 %v7582_v53  ;;  %2888 = vmatpush.bf16.msrb.mxu1 %v6750_v61  ;;  %v6683_v17 = vld [vmem:[#allocation5 + $0x4e8] sm:$0xf0]  ;;  %v10234_v59 = vadd.f32 %v2635_v49, %v2623_v48  ;;  %v6241_v49 = vld [vmem:[#allocation5 + $0x150] sm:$0xf] }
 0x10a   :  { %v9232_v19 = vld [vmem:[#allocation5 + $0x6cc] sm:$0xf]  ;;  %v6686_v26 = vor.u32 %v9168_v16, %v6683_v17 }
 0x10b   :  { %2913 = vmatpush.bf16.msra.mxu2 %v7294_v58  ;;  %2901 = vmatpush.bf16.msrb.mxu3 %v7006_v1  ;;  %v6939_v20 = vld [vmem:[#allocation5 + $0x6e8] sm:$0xf0]  ;;  %v2598_v58 = vpop.f32.mrf.mxu0 }
 0x10c   :  { %v9368_v24 = vld [vmem:[#allocation5 + $0xb0c] sm:$0xf]  ;;  %v6942_v29 = vor.u32 %v9232_v19, %v6939_v20 }
 0x10d   :  { %2926 = vmatpush.bf16.msrb.mxu0 %v7550_v4  ;;  %v7483_v25 = vld [vmem:[#allocation5 + $0xb28] sm:$0xf0]  ;;  %2889 = vmatpush.bf16.msrb.mxu1 %v6718_v12 }
 0x10e   :  { %v9296_v27 = vld [vmem:[#allocation5 + $0x8cc] sm:$0xf]  ;;  %v7486_v33 = vor.u32 %v9368_v24, %v7483_v25  ;;  %v6561_v24 = vld [vmem:[#allocation5 + $0x3d0] sm:$0xf] }
 0x10f   :  { %2914 = vmatpush.bf16.msra.mxu2 %v7262_v8  ;;  %v7195_v28 = vld [vmem:[#allocation5 + $0x8e8] sm:$0xf0]  ;;  %2902 = vmatpush.bf16.msrb.mxu3 %v6974_v15  ;;  %v9077_v15 = vld [vmem:[#allocation5 + $0x1ec] sm:$0xf0] }
 0x110   :  { %v9160_v31 = vld [vmem:[#allocation5 + $0x48c] sm:$0xf]  ;;  %v7198_v39 = vor.u32 %v9296_v27, %v7195_v28  ;;  %v9141_v25 = vld [vmem:[#allocation5 + $0x3ec] sm:$0xf0]  ;;  %v6306_v27 = vor.u32 %v9077_v15, %v6305_v10 }
 0x111   :  { %v6651_v32 = vld [vmem:[#allocation5 + $0x4a8] sm:$0xf0]  ;;  %2927 = vmatpush.bf16.msrb.mxu0 %v7518_v18  ;;  %2890 = vmatpush.bf16.msrb.mxu1 %v6686_v26  ;;  %v2624_v18 = vpop.f32.mrf.mxu2  ;;  %v2637_v26 = vpop.f32.mrf.mxu3  ;;  %v9253_v10 = vld [vmem:[#allocation5 + $0x76c] sm:$0xf0] }
 0x112   :  { %v9224_v36 = vld [vmem:[#allocation5 + $0x68c] sm:$0xf]  ;;  %v6654_v43 = vor.u32 %v9160_v31, %v6651_v32  ;;  %v9205_v31 = vld [vmem:[#allocation5 + $0x5ec] sm:$0xf0] }
 0x113   :  { %v6907_v37 = vld [vmem:[#allocation5 + $0x6a8] sm:$0xf0]  ;;  %2915 = vmatpush.bf16.msra.mxu2 %v7230_v22  ;;  %2903 = vmatpush.bf16.msrb.mxu3 %v6942_v29  ;;  %v6817_v29 = vld [vmem:[#allocation5 + $0x5d0] sm:$0xf] }
 0x114   :  { %v9360_v40 = vld [vmem:[#allocation5 + $0xacc] sm:$0xf]  ;;  %v6910_v47 = vor.u32 %v9224_v36, %v6907_v37  ;;  %v6562_v36 = vor.u32 %v9141_v25, %v6561_v24  ;;  %v9181_v15 = vld [vmem:[#allocation5 + $0x52c] sm:$0xf0] }
 0x115   :  { %v7451_v41 = vld [vmem:[#allocation5 + $0xae8] sm:$0xf0]  ;;  %2928 = vmatpush.bf16.msrb.mxu0 %v7486_v33  ;;  %2891 = vmatpush.bf16.msrb.mxu1 %v6654_v43  ;;  %v6273_v33 = vld [vmem:[#allocation5 + $0x190] sm:$0xf] }
 0x116   :  { %v9288_v44 = vld [vmem:[#allocation5 + $0x88c] sm:$0xf]  ;;  %v7454_v53 = vor.u32 %v9360_v40, %v7451_v41  ;;  %v6818_v40 = vor.u32 %v9205_v31, %v6817_v29  ;;  %v9269_v41 = vld [vmem:[#allocation5 + $0x7ec] sm:$0xf0] }
 0x117   :  { %v7163_v46 = vld [vmem:[#allocation5 + $0x8a8] sm:$0xf0]  ;;  %2916 = vmatpush.bf16.msra.mxu2 %v7198_v39  ;;  %2904 = vmatpush.bf16.msrb.mxu3 %v6910_v47  ;;  %v7073_v39 = vld [vmem:[#allocation5 + $0x7d0] sm:$0xf] }
 0x118   :  { %v9152_v50 = vld [vmem:[#allocation5 + $0x44c] sm:$0xf]  ;;  %v7166_v60 = vor.u32 %v9288_v44, %v7163_v46  ;;  %v9133_v43 = vld [vmem:[#allocation5 + $0x3ac] sm:$0xf0]  ;;  %v6274_v44 = vor.u32 %v9069_v34, %v6273_v33 }
 0x119   :  { %v6619_v52 = vld [vmem:[#allocation5 + $0x468] sm:$0xf0]  ;;  %2929 = vmatpush.bf16.msrb.mxu0 %v7454_v53  ;;  %v6785_v46 = vld [vmem:[#allocation5 + $0x590] sm:$0xf]  ;;  %v6530_v53 = vor.u32 %v9133_v43, %v6529_v42 }
 0x11a   :  { %v9216_v54 = vld [vmem:[#allocation5 + $0x64c] sm:$0xf]  ;;  %v6622_v63 = vor.u32 %v9152_v50, %v6619_v52  ;;  %v9197_v47 = vld [vmem:[#allocation5 + $0x5ac] sm:$0xf0]  ;;  %v7074_v52 = vor.u32 %v9269_v41, %v7073_v39 }
 0x11b   :  { %v6875_v56 = vld [vmem:[#allocation5 + $0x668] sm:$0xf0]  ;;  %2917 = vmatpush.bf16.msra.mxu2 %v7166_v60  ;;  %v9061_v50 = vld [vmem:[#allocation5 + $0x16c] sm:$0xf0]  ;;  %v6786_v58 = vor.u32 %v9197_v47, %v6785_v46 }
 0x11c   :  { %v9352_v61 = vld [vmem:[#allocation5 + $0xa8c] sm:$0xf]  ;;  %v6878_v4 = vor.u32 %v9216_v54, %v6875_v56  ;;  %2892 = vmatpush.bf16.msrb.mxu1 %v6622_v63  ;;  %v7041_v54 = vld [vmem:[#allocation5 + $0x790] sm:$0xf]  ;;  %v2674_v56 = vpop.f32.mrf.mxu2  ;;  %v6242_v63 = vor.u32 %v9061_v50, %v6241_v49 }
 0x11d   :  { %v7419_v62 = vld [vmem:[#allocation5 + $0xaa8] sm:$0xf0]  ;;  %v9261_v60 = vld [vmem:[#allocation5 + $0x7ac] sm:$0xf0] }
 0x11e   :  { %v9280_v1 = vld [vmem:[#allocation5 + $0x84c] sm:$0xf]  ;;  %v7422_v9 = vor.u32 %v9352_v61, %v7419_v62  ;;  %2905 = vmatpush.bf16.msrb.mxu3 %v6878_v4  ;;  %v6497_v61 = vld [vmem:[#allocation5 + $0x350] sm:$0xf] }
 0x11f   :  { %v7131_v2 = vld [vmem:[#allocation5 + $0x868] sm:$0xf0]  ;;  %v9125_v62 = vld [vmem:[#allocation5 + $0x36c] sm:$0xf0] }
 0x120   :  { %v9144_v3 = vld [vmem:[#allocation5 + $0x40c] sm:$0xf]  ;;  %v7134_v14 = vor.u32 %v9280_v1, %v7131_v2  ;;  %2930 = vmatpush.bf16.msrb.mxu0 %v7422_v9  ;;  %v6753_v1 = vld [vmem:[#allocation5 + $0x550] sm:$0xf] }
 0x121   :  { %v6587_v5 = vld [vmem:[#allocation5 + $0x428] sm:$0xf0]  ;;  %v9189_v2 = vld [vmem:[#allocation5 + $0x56c] sm:$0xf0] }
 0x122   :  { %v9208_v6 = vld [vmem:[#allocation5 + $0x60c] sm:$0xf]  ;;  %v6590_v19 = vor.u32 %v9144_v3, %v6587_v5  ;;  %2918 = vmatpush.bf16.msra.mxu2 %v7134_v14  ;;  %v6209_v3 = vld [vmem:[#allocation5 + $0x110] sm:$0xf]  ;;  %v7042_v5 = vor.u32 %v9261_v60, %v7041_v54  ;;  %v6754_v9 = vor.u32 %v9189_v2, %v6753_v1 }
 0x123   :  { %v6843_v8 = vld [vmem:[#allocation5 + $0x628] sm:$0xf0]  ;;  %v9053_v4 = vld [vmem:[#allocation5 + $0x12c] sm:$0xf0] }
 0x124   :  { %v9400_v11 = vld [vmem:[#allocation5 + $0xc0c] sm:$0xf]  ;;  %v6846_v22 = vor.u32 %v9208_v6, %v6843_v8  ;;  %2893 = vmatpush.bf16.msrb.mxu1 %v6590_v19  ;;  %v6498_v6 = vor.u32 %v9125_v62, %v6497_v61  ;;  %v7009_v8 = vld [vmem:[#allocation5 + $0x750] sm:$0xf]  ;;  %v6210_v13 = vor.u32 %v9053_v4, %v6209_v3  ;;  %v2676_v24 = vpop.f32.mrf.mxu2 }
 0x125   :  { %v7611_v12 = vld [vmem:[#allocation5 + $0xc28] sm:$0xf0]  ;;  %v6721_v14 = vld [vmem:[#allocation5 + $0x510] sm:$0xf] }
 0x126   :  { %v9344_v16 = vld [vmem:[#allocation5 + $0xa4c] sm:$0xf]  ;;  %v7614_v23 = vor.u32 %v9400_v11, %v7611_v12  ;;  %2906 = vmatpush.bf16.msrb.mxu3 %v6846_v22  ;;  %v6465_v11 = vld [vmem:[#allocation5 + $0x310] sm:$0xf]  ;;  %v6722_v25 = vor.u32 %v9181_v15, %v6721_v14 }
 0x127   :  { %v7387_v17 = vld [vmem:[#allocation5 + $0xa68] sm:$0xf0]  ;;  %2894 = vmatmul.bf16.vlgmr.msrb.gmra.mxu1 %v10191_v51  ;;  %v9117_v12 = vld [vmem:[#allocation5 + $0x32c] sm:$0xf0] }
 0x128   :  { %v9272_v20 = vld [vmem:[#allocation5 + $0x80c] sm:$0xf]  ;;  %v7390_v28 = vor.u32 %v9344_v16, %v7387_v17  ;;  %2945 = vmatpush.bf16.msra.mxu1 %v7614_v23  ;;  %v2648_v16 = vpop.f32.mrf.mxu0  ;;  %v6177_v17 = vld [vmem:[#allocation5 + $0xd0] sm:$0xf]  ;;  %v6466_v22 = vor.u32 %v9117_v12, %v6465_v11 }
 0x129   :  { %v7099_v21 = vld [vmem:[#allocation5 + $0x828] sm:$0xf0]  ;;  %2907 = vmatmul.bf16.vlgmr.msrb.gmra.mxu3 %v10195_v57  ;;  %v9045_v18 = vld [vmem:[#allocation5 + $0xec] sm:$0xf0]  ;;  %v2649_v19 = vadd.f32 %v2648_v16, %v10234_v59 }
 0x12a   :  { %v7102_v32 = vor.u32 %v9272_v20, %v7099_v21  ;;  %v9336_v37 = vld [vmem:[#allocation5 + $0xa0c] sm:$0xf]  ;;  %2951 = vmatpush.bf16.msra.mxu3 %v6306_v27  ;;  %2931 = vmatpush.bf16.msrb.mxu0 %v7390_v28  ;;  %v2661_v20 = vpop.f32.mrf.mxu1  ;;  %v7010_v21 = vor.u32 %v9253_v10, %v7009_v8  ;;  %v6977_v23 = vld [vmem:[#allocation5 + $0x710] sm:$0xf]  ;;  %v6178_v31 = vor.u32 %v9045_v18, %v6177_v17 }
 0x12b   :  { %v7355_v38 = vld [vmem:[#allocation5 + $0xa28] sm:$0xf0]  ;;  %v9245_v26 = vld [vmem:[#allocation5 + $0x72c] sm:$0xf0]  ;;  %v2662_v29 = vadd.f32 %v2661_v20, %v2649_v19 }
 0x12c   :  { %2919 = vmatpush.bf16.msra.mxu2 %v7102_v32  ;;  %v7358_v48 = vor.u32 %v9336_v37, %v7355_v38  ;;  %2964 = vmatpush.bf16.msrb.mxu1 %v6562_v36  ;;  %v6433_v27 = vld [vmem:[#allocation5 + $0x2d0] sm:$0xf]  ;;  %v6978_v59 = vor.u32 %v9245_v26, %v6977_v23  ;;  %v2700_v3 = vpop.f32.mrf.mxu2 }
 0x12d   :  { %v9109_v28 = vld [vmem:[#allocation5 + $0x2ec] sm:$0xf0]  ;;  %v10241_v37 = vadd.f32 %v2674_v56, %v2662_v29 }
 0x12e   :  { %2952 = vmatpush.bf16.msra.mxu3 %v6274_v44  ;;  %2932 = vmatpush.bf16.msrb.mxu0 %v7358_v48  ;;  %v6689_v32 = vld [vmem:[#allocation5 + $0x4d0] sm:$0xf]  ;;  %v6434_v38 = vor.u32 %v9109_v28, %v6433_v27 }
 0x12f   :  { %2920 = vmatmul.bf16.vlgmr.msra.gmra.mxu2 %v10207_v30  ;;  %v9173_v33 = vld [vmem:[#allocation5 + $0x4ec] sm:$0xf0] }
 0x130   :  { %2977 = vmatpush.bf16.msrb.mxu2 %v6818_v40  ;;  %2965 = vmatpush.bf16.msrb.mxu1 %v6530_v53  ;;  %v6145_v34 = vld [vmem:[#allocation5 + $0x90] sm:$0xf]  ;;  %v608_v40 = vperm.slane %v10229_v0, 1  ;;  %v6690_v41 = vor.u32 %v9173_v33, %v6689_v32  ;;  %v2687_v53 = vpop.f32.mrf.mxu3 }
 0x131   :  { %2933 = vmatmul.bf16.vlgmr.msrb.gmra.mxu0 %v10209_v35  ;;  %v9037_v36 = vld [vmem:[#allocation5 + $0xac] sm:$0xf0] }
 0x132   :  { %2990 = vmatpush.bf16.msra.mxu0 %v7074_v52  ;;  %2953 = vmatpush.bf16.msra.mxu3 %v6242_v63  ;;  %v6945_v39 = vld [vmem:[#allocation5 + $0x6d0] sm:$0xf]  ;;  %v6146_v46 = vor.u32 %v9037_v36, %v6145_v34  ;;  %v2650_v52 = vpop.f32.mrf.mxu0  ;;  %v2688_v60 = vadd.f32 %v2687_v53, %v608_v40  ;;  %v2663_v61 = vpop.f32.mrf.mxu1 }
 0x133   :  { %v9237_v42 = vld [vmem:[#allocation5 + $0x6ec] sm:$0xf0]  ;;  %v9129_v61 = vld [vmem:[#allocation5 + $0x394] sm:$0xf] }
 0x134   :  { %2978 = vmatpush.bf16.msrb.mxu2 %v6786_v58  ;;  %2966 = vmatpush.bf16.msrb.mxu1 %v6498_v6  ;;  %v6401_v43 = vld [vmem:[#allocation5 + $0x290] sm:$0xf]  ;;  %v6946_v54 = vor.u32 %v9237_v42, %v6945_v39  ;;  %v10246_v8 = vadd.f32 %v2700_v3, %v2688_v60  ;;  %v9073_v39 = vld [vmem:[#allocation5 + $0x1d4] sm:$0xf]  ;;  %v2702_v40 = vpop.f32.mrf.mxu2 }
 0x135   :  { %v9101_v44 = vld [vmem:[#allocation5 + $0x2ac] sm:$0xf0]  ;;  %v6307_v42 = vld [vmem:[#allocation5 + $0x1f0] sm:$0xf0] }
 0x136   :  { %2991 = vmatpush.bf16.msra.mxu0 %v7042_v5  ;;  %2954 = vmatpush.bf16.msra.mxu3 %v6210_v13  ;;  %v6657_v47 = vld [vmem:[#allocation5 + $0x490] sm:$0xf]  ;;  %v6402_v56 = vor.u32 %v9101_v44, %v6401_v43  ;;  %v9137_v43 = vld [vmem:[#allocation5 + $0x3d4] sm:$0xf]  ;;  %v6310_v53 = vor.u32 %v9073_v39, %v6307_v42 }
 0x137   :  { %v9165_v48 = vld [vmem:[#allocation5 + $0x4ac] sm:$0xf0]  ;;  %7634 = vmatmul.msk.bf16.vlgmr.msra.gmra.mxu1 %vm2583_vm0, %v10203_v45  ;;  %v6563_v44 = vld [vmem:[#allocation5 + $0x3f0] sm:$0xf0] }
 0x138   :  { %2979 = vmatpush.bf16.msrb.mxu2 %v6754_v9  ;;  %2967 = vmatpush.bf16.msrb.mxu1 %v6466_v22  ;;  %v6113_v49 = vld [vmem:[#allocation5 + $0x50] sm:$0xf]  ;;  %v6658_v62 = vor.u32 %v9165_v48, %v6657_v47  ;;  %v2689_v28 = vpop.f32.mrf.mxu3  ;;  %v6275_v60 = vld [vmem:[#allocation5 + $0x1b0] sm:$0xf0] }
 0x139   :  { %v9029_v50 = vld [vmem:[#allocation5 + $0x6c] sm:$0xf0]  ;;  %v6435_v42 = vld [vmem:[#allocation5 + $0x2f0] sm:$0xf0] }
 0x13a   :  { %2992 = vmatpush.bf16.msra.mxu0 %v7010_v21  ;;  %2955 = vmatpush.bf16.msra.mxu3 %v6178_v31  ;;  %v6913_v58 = vld [vmem:[#allocation5 + $0x690] sm:$0xf]  ;;  %v6114_v4 = vor.u32 %v9029_v50, %v6113_v49 }
 0x13b   :  { %v9229_v63 = vld [vmem:[#allocation5 + $0x6ac] sm:$0xf0] }
 0x13c   :  { %2980 = vmatpush.bf16.msrb.mxu2 %v6722_v25  ;;  %2968 = vmatpush.bf16.msrb.mxu1 %v6434_v38  ;;  %v6369_v1 = vld [vmem:[#allocation5 + $0x250] sm:$0xf]  ;;  %v6914_v12 = vor.u32 %v9229_v63, %v6913_v58 }
 0x13d   :  { %v9093_v2 = vld [vmem:[#allocation5 + $0x26c] sm:$0xf0] }
 0x13e   :  { %2993 = vmatpush.bf16.msra.mxu0 %v6978_v59  ;;  %2956 = vmatpush.bf16.msra.mxu3 %v6146_v46  ;;  %v6625_v5 = vld [vmem:[#allocation5 + $0x450] sm:$0xf]  ;;  %v6370_v13 = vor.u32 %v9093_v2, %v6369_v1 }
 0x13f   :  { %v9157_v6 = vld [vmem:[#allocation5 + $0x46c] sm:$0xf0] }
 0x140   :  { %2981 = vmatpush.bf16.msrb.mxu2 %v6690_v41  ;;  %v6081_v9 = vld [vmem:[#allocation5 + $0x10] sm:$0xf]  ;;  %2969 = vmatpush.bf16.msrb.mxu1 %v6402_v56  ;;  %v6626_v17 = vor.u32 %v9157_v6, %v6625_v5  ;;  %v9065_v56 = vld [vmem:[#allocation5 + $0x194] sm:$0xf] }
 0x141   :  { %v9021_v10 = vld [vmem:[#allocation5 + $0x2c] sm:$0xf0]  ;;  %v6278_v5 = vor.u32 %v9065_v56, %v6275_v60 }
 0x142   :  { %v7329_v11 = vld [vmem:[#allocation5 + $0x9d0] sm:$0xf]  ;;  %2994 = vmatpush.bf16.msra.mxu0 %v6946_v54  ;;  %2957 = vmatpush.bf16.msra.mxu3 %v6114_v4  ;;  %v6082_v21 = vor.u32 %v9021_v10, %v6081_v9  ;;  %v6566_v54 = vor.u32 %v9137_v43, %v6563_v44  ;;  %v9057_v9 = vld [vmem:[#allocation5 + $0x154] sm:$0xf] }
 0x143   :  { %v9333_v14 = vld [vmem:[#allocation5 + $0x9ec] sm:$0xf0] }
 0x144   :  { %v6881_v15 = vld [vmem:[#allocation5 + $0x650] sm:$0xf]  ;;  %2982 = vmatpush.bf16.msrb.mxu2 %v6658_v62  ;;  %v7330_v25 = vor.u32 %v9333_v14, %v7329_v11  ;;  %2970 = vmatpush.bf16.msrb.mxu1 %v6370_v13  ;;  %v6531_v62 = vld [vmem:[#allocation5 + $0x3b0] sm:$0xf0] }
 0x145   :  { %v9221_v16 = vld [vmem:[#allocation5 + $0x66c] sm:$0xf0]  ;;  %v6534_v6 = vor.u32 %v9129_v61, %v6531_v62  ;;  %v6243_v11 = vld [vmem:[#allocation5 + $0x170] sm:$0xf0] }
 0x146   :  { %v6337_v18 = vld [vmem:[#allocation5 + $0x210] sm:$0xf]  ;;  %2995 = vmatpush.bf16.msra.mxu0 %v6914_v12  ;;  %v6882_v29 = vor.u32 %v9221_v16, %v6881_v15  ;;  %2958 = vmatpush.bf16.msra.mxu3 %v6082_v21  ;;  %v9121_v12 = vld [vmem:[#allocation5 + $0x354] sm:$0xf] }
 0x147   :  { %v9085_v19 = vld [vmem:[#allocation5 + $0x22c] sm:$0xf0]  ;;  %v6499_v13 = vld [vmem:[#allocation5 + $0x370] sm:$0xf0] }
 0x148   :  { %v6593_v20 = vld [vmem:[#allocation5 + $0x410] sm:$0xf]  ;;  %v6338_v31 = vor.u32 %v9085_v19, %v6337_v18  ;;  %2983 = vmatpush.bf16.msrb.mxu2 %v6626_v17  ;;  %v2713_v19 = vpop.f32.mrf.mxu0  ;;  %v6502_v21 = vor.u32 %v9121_v12, %v6499_v13  ;;  %v6147_v61 = vld [vmem:[#allocation5 + $0xb0] sm:$0xf0] }
 0x149   :  { %v9149_v22 = vld [vmem:[#allocation5 + $0x42c] sm:$0xf0]  ;;  %2959 = vmatmul.bf16.vlgmr.msra.gmra.mxu3 %v10193_v55  ;;  %v2752_v60 = vpop.f32.mrf.mxu2  ;;  %v9097_v62 = vld [vmem:[#allocation5 + $0x294] sm:$0xf] }
 0x14a   :  { %v7585_v23 = vld [vmem:[#allocation5 + $0xbd0] sm:$0xf]  ;;  %v6594_v34 = vor.u32 %v9149_v22, %v6593_v20  ;;  %3003 = vmatpush.bf16.msrb.mxu3 %v7330_v25  ;;  %2996 = vmatpush.bf16.msra.mxu0 %v6882_v29  ;;  %v6246_v20 = vor.u32 %v9057_v9, %v6243_v11  ;;  %v9049_v22 = vld [vmem:[#allocation5 + $0x114] sm:$0xf] }
 0x14b   :  { %v9397_v24 = vld [vmem:[#allocation5 + $0xbec] sm:$0xf0]  ;;  %2971 = vmatpush.bf16.msrb.mxu1 %v6338_v31  ;;  %v6211_v25 = vld [vmem:[#allocation5 + $0x130] sm:$0xf0] }
 0x14c   :  { %v7617_v26 = vld [vmem:[#allocation5 + $0xc10] sm:$0xf]  ;;  %v7586_v36 = vor.u32 %v9397_v24, %v7585_v23  ;;  %2984 = vmatpush.bf16.msrb.mxu2 %v6594_v34  ;;  %v2714_v23 = vadd.f32 %v2713_v19, %v10246_v8  ;;  %v6214_v34 = vor.u32 %v9049_v22, %v6211_v25  ;;  %v6179_v8 = vld [vmem:[#allocation5 + $0xf0] sm:$0xf0] }
 0x14d   :  { %v9405_v27 = vld [vmem:[#allocation5 + $0xc2c] sm:$0xf0]  ;;  %v9201_v11 = vld [vmem:[#allocation5 + $0x5d4] sm:$0xf] }
 0x14e   :  { %v7297_v32 = vld [vmem:[#allocation5 + $0x990] sm:$0xf]  ;;  %v7618_v41 = vor.u32 %v9405_v27, %v7617_v26  ;;  %2972 = vmatmul.bf16.vlgmr.msrb.gmra.mxu1 %v10199_v7  ;;  %v9113_v26 = vld [vmem:[#allocation5 + $0x314] sm:$0xf] }
 0x14f   :  { %v9325_v33 = vld [vmem:[#allocation5 + $0x9ac] sm:$0xf0]  ;;  %3016 = vmatpush.bf16.msra.mxu1 %v7586_v36  ;;  %2985 = vmatmul.bf16.vlgmr.msrb.gmra.mxu2 %v10191_v51  ;;  %v6467_v27 = vld [vmem:[#allocation5 + $0x330] sm:$0xf0] }
 0x150   :  { %v6849_v59 = vld [vmem:[#allocation5 + $0x610] sm:$0xf]  ;;  %v7298_v46 = vor.u32 %v9325_v33, %v7297_v32  ;;  %3036 = vmatpush.bf16.msra.mxu2 %v7618_v41  ;;  %v6470_v36 = vor.u32 %v9113_v26, %v6467_v27  ;;  %v9105_v41 = vld [vmem:[#allocation5 + $0x2d4] sm:$0xf] }
 0x151   :  { %v9213_v38 = vld [vmem:[#allocation5 + $0x62c] sm:$0xf0]  ;;  %v6819_v12 = vld [vmem:[#allocation5 + $0x5f0] sm:$0xf0] }
 0x152   :  { %v7553_v47 = vld [vmem:[#allocation5 + $0xb90] sm:$0xf]  ;;  %v6850_v49 = vor.u32 %v9213_v38, %v6849_v59  ;;  %3004 = vmatpush.bf16.msrb.mxu3 %v7298_v46  ;;  %v2726_v59 = vpop.f32.mrf.mxu1  ;;  %v9041_v38 = vld [vmem:[#allocation5 + $0xd4] sm:$0xf]  ;;  %v6822_v22 = vor.u32 %v9201_v11, %v6819_v12 }
 0x153   :  { %v9389_v48 = vld [vmem:[#allocation5 + $0xbac] sm:$0xf0]  ;;  %v2727_v40 = vadd.f32 %v2726_v59, %v2714_v23  ;;  %v9025_v13 = vld [vmem:[#allocation5 + $0x54] sm:$0xf] }
 0x154   :  { %v7265_v50 = vld [vmem:[#allocation5 + $0x950] sm:$0xf]  ;;  %v7554_v58 = vor.u32 %v9389_v48, %v7553_v47  ;;  %2997 = vmatpush.bf16.msra.mxu0 %v6850_v49  ;;  %3055 = vmatpush.bf16.msrb.mxu2 %v6566_v54  ;;  %v2715_v49 = vpop.f32.mrf.mxu0  ;;  %v9033_v54 = vld [vmem:[#allocation5 + $0x94] sm:$0xf] }
 0x155   :  { %v9317_v52 = vld [vmem:[#allocation5 + $0x96c] sm:$0xf0]  ;;  %v6150_v9 = vor.u32 %v9033_v54, %v6147_v61  ;;  %v9265_v23 = vld [vmem:[#allocation5 + $0x7d4] sm:$0xf] }
 0x156   :  { %v7266_v63 = vor.u32 %v9317_v52, %v7265_v50  ;;  %v7521_v1 = vld [vmem:[#allocation5 + $0xb50] sm:$0xf]  ;;  %3017 = vmatpush.bf16.msra.mxu1 %v7554_v58  ;;  %v6182_v50 = vor.u32 %v9041_v38, %v6179_v8  ;;  %v6438_v52 = vor.u32 %v9105_v41, %v6435_v42  ;;  %v9193_v25 = vld [vmem:[#allocation5 + $0x594] sm:$0xf] }
 0x157   :  { %v9381_v2 = vld [vmem:[#allocation5 + $0xb6c] sm:$0xf0]  ;;  %2998 = vmatmul.bf16.vlgmr.msra.gmra.mxu0 %v10195_v57  ;;  %v9081_v59 = vld [vmem:[#allocation5 + $0x214] sm:$0xf] }
 0x158   :  { %v7233_v3 = vld [vmem:[#allocation5 + $0x910] sm:$0xf]  ;;  %3042 = vmatpush.bf16.msrb.mxu0 %v6310_v53  ;;  %v7522_v10 = vor.u32 %v9381_v2, %v7521_v1  ;;  %3005 = vmatpush.bf16.msrb.mxu3 %v7266_v63  ;;  %v2739_v53 = vpop.f32.mrf.mxu3  ;;  %v6403_v63 = vld [vmem:[#allocation5 + $0x2b0] sm:$0xf0] }
 0x159   :  { %v9309_v4 = vld [vmem:[#allocation5 + $0x92c] sm:$0xf0]  ;;  %3056 = vmatpush.bf16.msrb.mxu2 %v6534_v6  ;;  %v2740_v58 = vadd.f32 %v2739_v53, %v2727_v40  ;;  %v6339_v38 = vld [vmem:[#allocation5 + $0x230] sm:$0xf0]  ;;  %v2754_v40 = vpop.f32.mrf.mxu2 }
 0x15a   :  { %v7234_v14 = vor.u32 %v9309_v4, %v7233_v3  ;;  %v7489_v15 = vld [vmem:[#allocation5 + $0xb10] sm:$0xf]  ;;  %3018 = vmatpush.bf16.msra.mxu1 %v7522_v10  ;;  %v6406_v10 = vor.u32 %v9097_v62, %v6403_v63  ;;  %v7331_v41 = vld [vmem:[#allocation5 + $0x9f0] sm:$0xf0]  ;;  %v6342_v49 = vor.u32 %v9081_v59, %v6339_v38 }
 0x15b   :  { %v9373_v16 = vld [vmem:[#allocation5 + $0xb2c] sm:$0xf0]  ;;  %v2753_v4 = vadd.f32 %v2752_v60, %v2740_v58  ;;  %v9393_v42 = vld [vmem:[#allocation5 + $0xbd4] sm:$0xf] }
 0x15c   :  { %v7201_v17 = vld [vmem:[#allocation5 + $0x8d0] sm:$0xf]  ;;  %3043 = vmatpush.bf16.msrb.mxu0 %v6278_v5  ;;  %v7490_v24 = vor.u32 %v9373_v16, %v7489_v15  ;;  %3006 = vmatpush.bf16.msrb.mxu3 %v7234_v14  ;;  %v2728_v14 = vpop.f32.mrf.mxu1  ;;  %v6115_v16 = vld [vmem:[#allocation5 + $0x70] sm:$0xf0]  ;;  %v2765_v26 = vpop.f32.mrf.mxu0 }
 0x15d   :  { %v9301_v18 = vld [vmem:[#allocation5 + $0x8ec] sm:$0xf0]  ;;  %3057 = vmatpush.bf16.msrb.mxu2 %v6502_v21  ;;  %v6118_v27 = vor.u32 %v9025_v13, %v6115_v16  ;;  %v7299_v60 = vld [vmem:[#allocation5 + $0x9b0] sm:$0xf0] }
 0x15e   :  { %v7202_v28 = vor.u32 %v9301_v18, %v7201_v17  ;;  %v7457_v29 = vld [vmem:[#allocation5 + $0xad0] sm:$0xf]  ;;  %3019 = vmatpush.bf16.msra.mxu1 %v7490_v24  ;;  %v9089_v17 = vld [vmem:[#allocation5 + $0x254] sm:$0xf] }
 0x15f   :  { %v9365_v31 = vld [vmem:[#allocation5 + $0xaec] sm:$0xf0]  ;;  %7635 = vmatmul.msk.bf16.vlgmr.msra.gmra.mxu2 %vm2583_vm0, %v10203_v45  ;;  %v6371_v18 = vld [vmem:[#allocation5 + $0x270] sm:$0xf0] }
 0x160   :  { %v7169_v32 = vld [vmem:[#allocation5 + $0x890] sm:$0xf]  ;;  %3044 = vmatpush.bf16.msrb.mxu0 %v6246_v20  ;;  %v7458_v39 = vor.u32 %v9365_v31, %v7457_v29  ;;  %3007 = vmatpush.bf16.msrb.mxu3 %v7202_v28  ;;  %v7075_v24 = vld [vmem:[#allocation5 + $0x7f0] sm:$0xf0]  ;;  %v6374_v28 = vor.u32 %v9089_v17, %v6371_v18 }
 0x161   :  { %v9293_v33 = vld [vmem:[#allocation5 + $0x8ac] sm:$0xf0]  ;;  %3058 = vmatpush.bf16.msrb.mxu2 %v6470_v36  ;;  %v6787_v29 = vld [vmem:[#allocation5 + $0x5b0] sm:$0xf0]  ;;  %v7078_v8 = vor.u32 %v9265_v23, %v7075_v24 }
 0x162   :  { %v7170_v43 = vor.u32 %v9293_v33, %v7169_v32  ;;  %v7425_v44 = vld [vmem:[#allocation5 + $0xa90] sm:$0xf]  ;;  %3020 = vmatpush.bf16.msra.mxu1 %v7458_v39  ;;  %v9017_v31 = vld [vmem:[#allocation5 + $0x14] sm:$0xf]  ;;  %v2741_v33 = vpop.f32.mrf.mxu3 }
 0x163   :  { %v9357_v46 = vld [vmem:[#allocation5 + $0xaac] sm:$0xf0]  ;;  %v6083_v32 = vld [vmem:[#allocation5 + $0x30] sm:$0xf0] }
 0x164   :  { %v7137_v47 = vld [vmem:[#allocation5 + $0x850] sm:$0xf]  ;;  %3045 = vmatpush.bf16.msrb.mxu0 %v6214_v34  ;;  %v7426_v56 = vor.u32 %v9357_v46, %v7425_v44  ;;  %3008 = vmatpush.bf16.msrb.mxu3 %v7170_v43  ;;  %v10255_v34 = vadd.f32 %v2765_v26, %v2753_v4  ;;  %v9329_v39 = vld [vmem:[#allocation5 + $0x9d4] sm:$0xf]  ;;  %v6790_v44 = vor.u32 %v9193_v25, %v6787_v29 }
 0x165   :  { %v9285_v48 = vld [vmem:[#allocation5 + $0x86c] sm:$0xf0]  ;;  %3059 = vmatpush.bf16.msrb.mxu2 %v6438_v52  ;;  %v7587_v43 = vld [vmem:[#allocation5 + $0xbf0] sm:$0xf0]  ;;  %v7334_v53 = vor.u32 %v9329_v39, %v7331_v41  ;;  %v2778_v39 = vpop.f32.mrf.mxu1 }
 0x166   :  { %v7138_v1 = vor.u32 %v9285_v48, %v7137_v47  ;;  %v7393_v2 = vld [vmem:[#allocation5 + $0xa50] sm:$0xf]  ;;  %3021 = vmatpush.bf16.msra.mxu1 %v7426_v56  ;;  %v9257_v46 = vld [vmem:[#allocation5 + $0x794] sm:$0xf]  ;;  %v6086_v48 = vor.u32 %v9017_v31, %v6083_v32  ;;  %v7590_v54 = vor.u32 %v9393_v42, %v7587_v43 }
 0x167   :  { %v9349_v3 = vld [vmem:[#allocation5 + $0xa6c] sm:$0xf0]  ;;  %v7043_v47 = vld [vmem:[#allocation5 + $0x7b0] sm:$0xf0] }
 0x168   :  { %v7105_v5 = vld [vmem:[#allocation5 + $0x810] sm:$0xf]  ;;  %3046 = vmatpush.bf16.msrb.mxu0 %v6182_v50  ;;  %v7394_v15 = vor.u32 %v9349_v3, %v7393_v2  ;;  %3009 = vmatpush.bf16.msrb.mxu3 %v7138_v1  ;;  %v9185_v50 = vld [vmem:[#allocation5 + $0x554] sm:$0xf]  ;;  %v7046_v58 = vor.u32 %v9257_v46, %v7043_v47  ;;  %v2767_v3 = vpop.f32.mrf.mxu0 }
 0x169   :  { %v9277_v6 = vld [vmem:[#allocation5 + $0x82c] sm:$0xf0]  ;;  %3060 = vmatpush.bf16.msrb.mxu2 %v6406_v10  ;;  %v6755_v52 = vld [vmem:[#allocation5 + $0x570] sm:$0xf0] }
 0x16a   :  { %v7106_v19 = vor.u32 %v9277_v6, %v7105_v5  ;;  %v7361_v20 = vld [vmem:[#allocation5 + $0xa10] sm:$0xf]  ;;  %3022 = vmatpush.bf16.msra.mxu1 %v7394_v15  ;;  %v9321_v56 = vld [vmem:[#allocation5 + $0x994] sm:$0xf]  ;;  %v6758_v63 = vor.u32 %v9185_v50, %v6755_v52  ;;  %v2791_v50 = vpop.f32.mrf.mxu3 }
 0x16b   :  { %v9341_v21 = vld [vmem:[#allocation5 + $0xa2c] sm:$0xf0]  ;;  %v9385_v61 = vld [vmem:[#allocation5 + $0xb94] sm:$0xf]  ;;  %v7302_v6 = vor.u32 %v9321_v56, %v7299_v60 }
 0x16c   :  { %3047 = vmatpush.bf16.msrb.mxu0 %v6150_v9  ;;  %v7362_v36 = vor.u32 %v9341_v21, %v7361_v20  ;;  %3010 = vmatpush.bf16.msrb.mxu3 %v7106_v19  ;;  %v7555_v62 = vld [vmem:[#allocation5 + $0xbb0] sm:$0xf0] }
 0x16d   :  { %3061 = vmatpush.bf16.msrb.mxu2 %v6374_v28  ;;  %v9249_v1 = vld [vmem:[#allocation5 + $0x754] sm:$0xf]  ;;  %v7558_v9 = vor.u32 %v9385_v61, %v7555_v62 }
 0x16e   :  { %3023 = vmatpush.bf16.msra.mxu1 %v7362_v36  ;;  %v7011_v2 = vld [vmem:[#allocation5 + $0x770] sm:$0xf0] }
 0x16f   :  { %3011 = vmatmul.bf16.vlgmr.msrb.gmra.mxu3 %v10207_v30  ;;  %v9177_v4 = vld [vmem:[#allocation5 + $0x514] sm:$0xf]  ;;  %v7014_v11 = vor.u32 %v9249_v1, %v7011_v2 }
 0x170   :  { %3068 = vmatpush.bf16.msra.mxu3 %v6822_v22  ;;  %3048 = vmatpush.bf16.msrb.mxu0 %v6118_v27  ;;  %v6723_v5 = vld [vmem:[#allocation5 + $0x530] sm:$0xf0]  ;;  %v609_v27 = vperm.slane %v10229_v0, 2  ;;  %v2804_v32 = vpop.f32.mrf.mxu0 }
 0x171   :  { %3062 = vmatpush.bf16.msrb.mxu2 %v6342_v49  ;;  %v9313_v10 = vld [vmem:[#allocation5 + $0x954] sm:$0xf]  ;;  %3024 = vmatmul.bf16.vlgmr.msra.gmra.mxu1 %v10209_v35  ;;  %v6726_v15 = vor.u32 %v9177_v4, %v6723_v5 }
 0x172   :  { %3081 = vmatpush.bf16.msrb.mxu1 %v7078_v8  ;;  %v7267_v12 = vld [vmem:[#allocation5 + $0x970] sm:$0xf0]  ;;  %v2779_v8 = vadd.f32 %v2778_v39, %v609_v27  ;;  %v6569_v27 = vld [vmem:[#allocation5 + $0x3d8] sm:$0xf] }
 0x173   :  { %v9377_v13 = vld [vmem:[#allocation5 + $0xb54] sm:$0xf]  ;;  %v7270_v20 = vor.u32 %v9313_v10, %v7267_v12 }
 0x174   :  { %3069 = vmatpush.bf16.msra.mxu3 %v6790_v44  ;;  %3049 = vmatpush.bf16.msrb.mxu0 %v6086_v48  ;;  %v7523_v14 = vld [vmem:[#allocation5 + $0xb70] sm:$0xf0]  ;;  %v2792_v56 = vadd.f32 %v2791_v50, %v2779_v8  ;;  %v9206_v8 = vld [vmem:[#allocation5 + $0x5f4] sm:$0xf0] }
 0x175   :  { %3107 = vmatpush.bf16.msra.mxu2 %v7590_v54  ;;  %v9241_v16 = vld [vmem:[#allocation5 + $0x714] sm:$0xf]  ;;  %v7526_v21 = vor.u32 %v9377_v13, %v7523_v14 }
 0x176   :  { %3082 = vmatpush.bf16.msrb.mxu1 %v7046_v58  ;;  %v6979_v17 = vld [vmem:[#allocation5 + $0x730] sm:$0xf0]  ;;  %3063 = vmatmul.bf16.vlgmr.msrb.gmra.mxu2 %v10199_v7  ;;  %v2805_v4 = vadd.f32 %v2804_v32, %v2792_v56 }
 0x177   :  { %v9169_v18 = vld [vmem:[#allocation5 + $0x4d4] sm:$0xf]  ;;  %3050 = vmatmul.bf16.vlgmr.msrb.gmra.mxu0 %v10193_v55  ;;  %v6982_v24 = vor.u32 %v9241_v16, %v6979_v17 }
 0x178   :  { %3094 = vmatpush.bf16.msra.mxu0 %v7334_v53  ;;  %3070 = vmatpush.bf16.msra.mxu3 %v6758_v63  ;;  %v6691_v19 = vld [vmem:[#allocation5 + $0x4f0] sm:$0xf0]  ;;  %v2806_v3 = vpop.f32.mrf.mxu0 }
 0x179   :  { %3108 = vmatpush.bf16.msra.mxu2 %v7558_v9  ;;  %v9305_v22 = vld [vmem:[#allocation5 + $0x914] sm:$0xf]  ;;  %v6694_v28 = vor.u32 %v9169_v18, %v6691_v19  ;;  %v2817_v9 = vpop.f32.mrf.mxu2  ;;  %v9062_v3 = vld [vmem:[#allocation5 + $0x174] sm:$0xf0] }
 0x17a   :  { %v7235_v23 = vld [vmem:[#allocation5 + $0x930] sm:$0xf0]  ;;  %3083 = vmatpush.bf16.msrb.mxu1 %v7014_v11  ;;  %v10262_v16 = vadd.f32 %v2817_v9, %v2805_v4  ;;  %v6505_v4 = vld [vmem:[#allocation5 + $0x358] sm:$0xf] }
 0x17b   :  { %v9369_v25 = vld [vmem:[#allocation5 + $0xb14] sm:$0xf]  ;;  %v7238_v59 = vor.u32 %v9305_v22, %v7235_v23 }
 0x17c   :  { %3095 = vmatpush.bf16.msra.mxu0 %v7302_v6  ;;  %v7491_v26 = vld [vmem:[#allocation5 + $0xb30] sm:$0xf0]  ;;  %3071 = vmatpush.bf16.msra.mxu3 %v6726_v15  ;;  %v2780_v15 = vpop.f32.mrf.mxu1 }
 0x17d   :  { %v9233_v29 = vld [vmem:[#allocation5 + $0x6d4] sm:$0xf]  ;;  %3109 = vmatpush.bf16.msra.mxu2 %v7526_v21  ;;  %v7494_v38 = vor.u32 %v9369_v25, %v7491_v26  ;;  %v9078_v26 = vld [vmem:[#allocation5 + $0x1f4] sm:$0xf0] }
 0x17e   :  { %v6947_v31 = vld [vmem:[#allocation5 + $0x6f0] sm:$0xf0]  ;;  %3084 = vmatpush.bf16.msrb.mxu1 %v6982_v24  ;;  %v6313_v24 = vld [vmem:[#allocation5 + $0x1d8] sm:$0xf] }
 0x17f   :  { %v9161_v33 = vld [vmem:[#allocation5 + $0x494] sm:$0xf]  ;;  %v6950_v41 = vor.u32 %v9233_v29, %v6947_v31  ;;  %v9254_v15 = vld [vmem:[#allocation5 + $0x774] sm:$0xf0] }
 0x180   :  { %v6659_v36 = vld [vmem:[#allocation5 + $0x4b0] sm:$0xf0]  ;;  %3096 = vmatpush.bf16.msra.mxu0 %v7270_v20  ;;  %3072 = vmatpush.bf16.msra.mxu3 %v6694_v28  ;;  %v9142_v28 = vld [vmem:[#allocation5 + $0x3f4] sm:$0xf0] }
 0x181   :  { %v9297_v40 = vld [vmem:[#allocation5 + $0x8d4] sm:$0xf]  ;;  %v6662_v0 = vor.u32 %v9161_v33, %v6659_v36  ;;  %3110 = vmatpush.bf16.msra.mxu2 %v7494_v38 }
 0x182   :  { %v7203_v42 = vld [vmem:[#allocation5 + $0x8f0] sm:$0xf0]  ;;  %3085 = vmatpush.bf16.msrb.mxu1 %v6950_v41  ;;  %v6314_v41 = vor.u32 %v9078_v26, %v6313_v24 }
 0x183   :  { %v9361_v43 = vld [vmem:[#allocation5 + $0xad4] sm:$0xf]  ;;  %v7206_v52 = vor.u32 %v9297_v40, %v7203_v42  ;;  %v6825_v40 = vld [vmem:[#allocation5 + $0x5d8] sm:$0xf]  ;;  %v6570_v42 = vor.u32 %v9142_v28, %v6569_v27 }
 0x184   :  { %v7459_v44 = vld [vmem:[#allocation5 + $0xaf0] sm:$0xf0]  ;;  %3097 = vmatpush.bf16.msra.mxu0 %v7238_v59  ;;  %3073 = vmatpush.bf16.msra.mxu3 %v6662_v0  ;;  %v2793_v59 = vpop.f32.mrf.mxu3  ;;  %v6281_v0 = vld [vmem:[#allocation5 + $0x198] sm:$0xf] }
 0x185   :  { %v9225_v46 = vld [vmem:[#allocation5 + $0x694] sm:$0xf]  ;;  %v7462_v53 = vor.u32 %v9361_v43, %v7459_v44  ;;  %v7081_v43 = vld [vmem:[#allocation5 + $0x7d8] sm:$0xf] }
 0x186   :  { %v6915_v47 = vld [vmem:[#allocation5 + $0x6b0] sm:$0xf0]  ;;  %v9270_v44 = vld [vmem:[#allocation5 + $0x7f4] sm:$0xf0] }
 0x187   :  { %v9153_v48 = vld [vmem:[#allocation5 + $0x454] sm:$0xf]  ;;  %v6918_v58 = vor.u32 %v9225_v46, %v6915_v47  ;;  %3111 = vmatpush.bf16.msra.mxu2 %v7462_v53  ;;  %v9070_v46 = vld [vmem:[#allocation5 + $0x1b4] sm:$0xf0]  ;;  %v2819_v53 = vpop.f32.mrf.mxu2  ;;  %v7082_v56 = vor.u32 %v9270_v44, %v7081_v43 }
 0x188   :  { %v6627_v49 = vld [vmem:[#allocation5 + $0x470] sm:$0xf0]  ;;  %3098 = vmatpush.bf16.msra.mxu0 %v7206_v52  ;;  %v6537_v47 = vld [vmem:[#allocation5 + $0x398] sm:$0xf]  ;;  %v10271_v53 = vld [vmem:[#allocation7] sm:$0xff] }
 0x189   :  { %v9289_v54 = vld [vmem:[#allocation5 + $0x894] sm:$0xf]  ;;  %v6630_v63 = vor.u32 %v9153_v48, %v6627_v49  ;;  %3086 = vmatpush.bf16.msrb.mxu1 %v6918_v58  ;;  %v9134_v48 = vld [vmem:[#allocation5 + $0x3b4] sm:$0xf0]  ;;  %v10264_v49 = vpop.f32.mrf.mxu0 }
 0x18a   :  { %v7171_v60 = vld [vmem:[#allocation5 + $0x8b0] sm:$0xf0]  ;;  %v6793_v58 = vld [vmem:[#allocation5 + $0x598] sm:$0xf] }
 0x18b   :  { %v9353_v61 = vld [vmem:[#allocation5 + $0xa94] sm:$0xf]  ;;  %v7174_v10 = vor.u32 %v9289_v54, %v7171_v60  ;;  %3074 = vmatpush.bf16.msra.mxu3 %v6630_v63  ;;  %v6826_v54 = vor.u32 %v9206_v8, %v6825_v40  ;;  %v9198_v60 = vld [vmem:[#allocation5 + $0x5b4] sm:$0xf0] }
 0x18c   :  { %v7427_v62 = vld [vmem:[#allocation5 + $0xab0] sm:$0xf0]  ;;  %v7049_v63 = vld [vmem:[#allocation5 + $0x798] sm:$0xf] }
 0x18d   :  { %v9217_v1 = vld [vmem:[#allocation5 + $0x654] sm:$0xf]  ;;  %v7430_v11 = vor.u32 %v9353_v61, %v7427_v62  ;;  %3099 = vmatpush.bf16.msra.mxu0 %v7174_v10  ;;  %v6282_v61 = vor.u32 %v9070_v46, %v6281_v0  ;;  %v6538_v62 = vor.u32 %v9134_v48, %v6537_v47  ;;  %v6761_v10 = vld [vmem:[#allocation5 + $0x558] sm:$0xf]  ;;  %v2843_v48 = vpop.f32.mrf.mxu3 }
 0x18e   :  { %v6883_v2 = vld [vmem:[#allocation5 + $0x670] sm:$0xf0]  ;;  %v6729_v28 = vld [vmem:[#allocation5 + $0x518] sm:$0xf] }
 0x18f   :  { %v9145_v5 = vld [vmem:[#allocation5 + $0x414] sm:$0xf]  ;;  %v6886_v17 = vor.u32 %v9217_v1, %v6883_v2  ;;  %3112 = vmatpush.bf16.msra.mxu2 %v7430_v11  ;;  %v9262_v1 = vld [vmem:[#allocation5 + $0x7b4] sm:$0xf0] }
 0x190   :  { %v6595_v6 = vld [vmem:[#allocation5 + $0x430] sm:$0xf0]  ;;  %v6249_v2 = vld [vmem:[#allocation5 + $0x158] sm:$0xf]  ;;  %v7050_v9 = vor.u32 %v9262_v1, %v7049_v63 }
 0x191   :  { %v9281_v12 = vld [vmem:[#allocation5 + $0x854] sm:$0xf]  ;;  %v6598_v21 = vor.u32 %v9145_v5, %v6595_v6  ;;  %3087 = vmatpush.bf16.msrb.mxu1 %v6886_v17  ;;  %v9126_v5 = vld [vmem:[#allocation5 + $0x374] sm:$0xf0]  ;;  %v6794_v6 = vor.u32 %v9198_v60, %v6793_v58 }
 0x192   :  { %v9401_v13 = vld [vmem:[#allocation5 + $0xc14] sm:$0xf]  ;;  %v9190_v11 = vld [vmem:[#allocation5 + $0x574] sm:$0xf0] }
 0x193   :  { %v7619_v14 = vld [vmem:[#allocation5 + $0xc30] sm:$0xf0]  ;;  %3075 = vmatpush.bf16.msra.mxu3 %v6598_v21  ;;  %v6217_v17 = vld [vmem:[#allocation5 + $0x118] sm:$0xf]  ;;  %v2858_v21 = vpop.f32.mrf.mxu0 }
 0x194   :  { %v7139_v18 = vld [vmem:[#allocation5 + $0x870] sm:$0xf0]  ;;  %v7622_v25 = vor.u32 %v9401_v13, %v7619_v14  ;;  %v6506_v13 = vor.u32 %v9126_v5, %v6505_v4  ;;  %v7017_v14 = vld [vmem:[#allocation5 + $0x758] sm:$0xf] }
 0x195   :  { %v9345_v19 = vld [vmem:[#allocation5 + $0xa54] sm:$0xf]  ;;  %v7142_v29 = vor.u32 %v9281_v12, %v7139_v18  ;;  %v6250_v12 = vor.u32 %v9062_v3, %v6249_v2  ;;  %v9054_v18 = vld [vmem:[#allocation5 + $0x134] sm:$0xf0]  ;;  %v7018_v24 = vor.u32 %v9254_v15, %v7017_v14 }
 0x196   :  { %v7395_v20 = vld [vmem:[#allocation5 + $0xa70] sm:$0xf0]  ;;  %3076 = vmatmul.bf16.vlgmr.msra.gmra.mxu3 %v10191_v51  ;;  %v6218_v26 = vor.u32 %v9054_v18, %v6217_v17  ;;  %v6441_v59 = vld [vmem:[#allocation5 + $0x2d8] sm:$0xf] }
 0x197   :  { %v9209_v22 = vld [vmem:[#allocation5 + $0x614] sm:$0xf]  ;;  %v7398_v31 = vor.u32 %v9345_v19, %v7395_v20  ;;  %3127 = vmatpush.bf16.msrb.mxu3 %v7622_v25  ;;  %3100 = vmatpush.bf16.msra.mxu0 %v7142_v29  ;;  %v6473_v19 = vld [vmem:[#allocation5 + $0x318] sm:$0xf] }
 0x198   :  { %v6851_v23 = vld [vmem:[#allocation5 + $0x630] sm:$0xf0]  ;;  %v9118_v20 = vld [vmem:[#allocation5 + $0x334] sm:$0xf0] }
 0x199   :  { %v9273_v32 = vld [vmem:[#allocation5 + $0x814] sm:$0xf]  ;;  %v6854_v38 = vor.u32 %v9209_v22, %v6851_v23  ;;  %3113 = vmatpush.bf16.msra.mxu2 %v7398_v31  ;;  %v2830_v22 = vpop.f32.mrf.mxu1  ;;  %v6762_v23 = vor.u32 %v9190_v11, %v6761_v10  ;;  %v6474_v27 = vor.u32 %v9118_v20, %v6473_v19  ;;  %v9182_v29 = vld [vmem:[#allocation5 + $0x534] sm:$0xf0]  ;;  %v2869_v10 = vpop.f32.mrf.mxu2 }
 0x19a   :  { %v7107_v33 = vld [vmem:[#allocation5 + $0x830] sm:$0xf0]  ;;  %v2831_v25 = vadd.f32 %v2830_v22, %v10262_v16  ;;  %v6985_v31 = vld [vmem:[#allocation5 + $0x718] sm:$0xf] }
 0x19b   :  { %v9337_v36 = vld [vmem:[#allocation5 + $0xa14] sm:$0xf]  ;;  %v7110_v50 = vor.u32 %v9273_v32, %v7107_v33  ;;  %3088 = vmatpush.bf16.msrb.mxu1 %v6854_v38  ;;  %3146 = vmatpush.bf16.msra.mxu3 %v6570_v42  ;;  %v9246_v32 = vld [vmem:[#allocation5 + $0x734] sm:$0xf0]  ;;  %v2882_v47 = vpop.f32.mrf.mxu0 }
 0x19c   :  { %v7363_v39 = vld [vmem:[#allocation5 + $0xa30] sm:$0xf0]  ;;  %v6185_v33 = vld [vmem:[#allocation5 + $0xd8] sm:$0xf]  ;;  %v6986_v40 = vor.u32 %v9246_v32, %v6985_v31  ;;  %v2845_v31 = vpop.f32.mrf.mxu3 }
 0x19d   :  { %v7366_v52 = vor.u32 %v9337_v36, %v7363_v39  ;;  %3101 = vmatpush.bf16.msra.mxu0 %v7110_v50  ;;  %v9046_v36 = vld [vmem:[#allocation5 + $0xf4] sm:$0xf0]  ;;  %v6730_v39 = vor.u32 %v9182_v29, %v6729_v28 }
 0x19e   :  { %3089 = vmatmul.bf16.vlgmr.msrb.gmra.mxu1 %v10195_v57  ;;  %v9110_v38 = vld [vmem:[#allocation5 + $0x2f4] sm:$0xf0]  ;;  %v6186_v8 = vor.u32 %v9046_v36, %v6185_v33 }
 0x19f   :  { %3133 = vmatpush.bf16.msra.mxu1 %v6314_v41  ;;  %3114 = vmatpush.bf16.msra.mxu2 %v7366_v52  ;;  %v6697_v16 = vld [vmem:[#allocation5 + $0x4d8] sm:$0xf]  ;;  %v6442_v43 = vor.u32 %v9110_v38, %v6441_v59 }
 0x1a0   :  { %3147 = vmatpush.bf16.msra.mxu3 %v6538_v62  ;;  %3102 = vmatmul.bf16.vlgmr.msra.gmra.mxu0 %v10207_v30  ;;  %v9174_v41 = vld [vmem:[#allocation5 + $0x4f4] sm:$0xf0] }
 0x1a1   :  { %3159 = vmatpush.bf16.msrb.mxu0 %v6826_v54  ;;  %v6953_v42 = vld [vmem:[#allocation5 + $0x6d8] sm:$0xf]  ;;  %v610_v54 = vperm.slane %v10271_v53, 3  ;;  %v6698_v58 = vor.u32 %v9174_v41, %v6697_v16  ;;  %v2832_v60 = vpop.f32.mrf.mxu1 }
 0x1a2   :  { %3115 = vmatmul.bf16.vlgmr.msra.gmra.mxu2 %v10209_v35  ;;  %v9238_v44 = vld [vmem:[#allocation5 + $0x6f4] sm:$0xf0] }
 0x1a3   :  { %3172 = vmatpush.bf16.msrb.mxu2 %v7082_v56  ;;  %3134 = vmatpush.bf16.msra.mxu1 %v6282_v61  ;;  %v6153_v0 = vld [vmem:[#allocation5 + $0x98] sm:$0xf]  ;;  %v2844_v56 = vadd.f32 %v2843_v48, %v2831_v25  ;;  %v6954_v61 = vor.u32 %v9238_v44, %v6953_v42  ;;  %v6315_v48 = vld [vmem:[#allocation5 + $0x1f8] sm:$0xf0] }
 0x1a4   :  { %3148 = vmatpush.bf16.msra.mxu3 %v6506_v13  ;;  %v9038_v46 = vld [vmem:[#allocation5 + $0xb4] sm:$0xf0]  ;;  %v2870_v13 = vadd.f32 %v2869_v10, %v610_v54 }
 0x1a5   :  { %3160 = vmatpush.bf16.msrb.mxu0 %v6794_v6  ;;  %v6409_v50 = vld [vmem:[#allocation5 + $0x298] sm:$0xf]  ;;  %v6154_v62 = vor.u32 %v9038_v46, %v6153_v0  ;;  %v10277_v3 = vadd.f32 %v10264_v49, %v2844_v56  ;;  %v2871_v46 = vpop.f32.mrf.mxu2 }
 0x1a6   :  { %v9102_v52 = vld [vmem:[#allocation5 + $0x2b4] sm:$0xf0]  ;;  %7636 = vmatmul.msk.bf16.vlgmr.msrb.gmra.mxu3 %vm2583_vm0, %v10203_v45  ;;  %v10279_v21 = vadd.f32 %v2882_v47, %v2870_v13 }
 0x1a7   :  { %3173 = vmatpush.bf16.msrb.mxu2 %v7050_v9  ;;  %3135 = vmatpush.bf16.msra.mxu1 %v6250_v12  ;;  %v6665_v63 = vld [vmem:[#allocation5 + $0x498] sm:$0xf]  ;;  %v6410_v4 = vor.u32 %v9102_v52, %v6409_v50 }
 0x1a8   :  { %3149 = vmatpush.bf16.msra.mxu3 %v6474_v27  ;;  %v9166_v1 = vld [vmem:[#allocation5 + $0x4b4] sm:$0xf0] }
 0x1a9   :  { %3161 = vmatpush.bf16.msrb.mxu0 %v6762_v23  ;;  %v6921_v2 = vld [vmem:[#allocation5 + $0x698] sm:$0xf]  ;;  %v6666_v14 = vor.u32 %v9166_v1, %v6665_v63  ;;  %v6571_v63 = vld [vmem:[#allocation5 + $0x3f8] sm:$0xf0] }
 0x1aa   :  { %v9230_v5 = vld [vmem:[#allocation5 + $0x6b4] sm:$0xf0] }
 0x1ab   :  { %3174 = vmatpush.bf16.msrb.mxu2 %v7018_v24  ;;  %3136 = vmatpush.bf16.msra.mxu1 %v6218_v26  ;;  %v6121_v6 = vld [vmem:[#allocation5 + $0x58] sm:$0xf]  ;;  %v6922_v17 = vor.u32 %v9230_v5, %v6921_v2  ;;  %v2884_v26 = vpop.f32.mrf.mxu0 }
 0x1ac   :  { %3150 = vmatpush.bf16.msra.mxu3 %v6442_v43  ;;  %v9030_v9 = vld [vmem:[#allocation5 + $0x74] sm:$0xf0]  ;;  %v9074_v43 = vld [vmem:[#allocation5 + $0x1dc] sm:$0xf] }
 0x1ad   :  { %3162 = vmatpush.bf16.msrb.mxu0 %v6730_v39  ;;  %v6377_v11 = vld [vmem:[#allocation5 + $0x258] sm:$0xf]  ;;  %v6122_v18 = vor.u32 %v9030_v9, %v6121_v6  ;;  %v6318_v1 = vor.u32 %v9074_v43, %v6315_v48  ;;  %v6283_v6 = vld [vmem:[#allocation5 + $0x1b8] sm:$0xf0] }
 0x1ae   :  { %v9094_v12 = vld [vmem:[#allocation5 + $0x274] sm:$0xf0]  ;;  %v6475_v43 = vld [vmem:[#allocation5 + $0x338] sm:$0xf0] }
 0x1af   :  { %3175 = vmatpush.bf16.msrb.mxu2 %v6986_v40  ;;  %3137 = vmatpush.bf16.msra.mxu1 %v6186_v8  ;;  %v6633_v15 = vld [vmem:[#allocation5 + $0x458] sm:$0xf]  ;;  %v6378_v22 = vor.u32 %v9094_v12, %v6377_v11 }
 0x1b0   :  { %v9158_v19 = vld [vmem:[#allocation5 + $0x474] sm:$0xf0]  ;;  %3151 = vmatpush.bf16.msra.mxu3 %v6410_v4  ;;  %v9066_v4 = vld [vmem:[#allocation5 + $0x19c] sm:$0xf] }
 0x1b1   :  { %3163 = vmatpush.bf16.msrb.mxu0 %v6698_v58  ;;  %v6889_v20 = vld [vmem:[#allocation5 + $0x658] sm:$0xf]  ;;  %v6634_v32 = vor.u32 %v9158_v19, %v6633_v15  ;;  %v6539_v15 = vld [vmem:[#allocation5 + $0x3b8] sm:$0xf0] }
 0x1b2   :  { %v9222_v49 = vld [vmem:[#allocation5 + $0x674] sm:$0xf0]  ;;  %v9058_v19 = vld [vmem:[#allocation5 + $0x15c] sm:$0xf] }
 0x1b3   :  { %3176 = vmatpush.bf16.msrb.mxu2 %v6954_v61  ;;  %3138 = vmatpush.bf16.msra.mxu1 %v6154_v62  ;;  %v6089_v23 = vld [vmem:[#allocation5 + $0x18] sm:$0xf]  ;;  %v6890_v38 = vor.u32 %v9222_v49, %v6889_v20  ;;  %v9138_v62 = vld [vmem:[#allocation5 + $0x3dc] sm:$0xf] }
 0x1b4   :  { %v9022_v24 = vld [vmem:[#allocation5 + $0x34] sm:$0xf0]  ;;  %3152 = vmatpush.bf16.msra.mxu3 %v6378_v22  ;;  %v6574_v11 = vor.u32 %v9138_v62, %v6571_v63  ;;  %v6251_v49 = vld [vmem:[#allocation5 + $0x178] sm:$0xf0] }
 0x1b5   :  { %v6345_v25 = vld [vmem:[#allocation5 + $0x218] sm:$0xf]  ;;  %3164 = vmatpush.bf16.msrb.mxu0 %v6666_v14  ;;  %v6090_v39 = vor.u32 %v9022_v24, %v6089_v23  ;;  %v9130_v14 = vld [vmem:[#allocation5 + $0x39c] sm:$0xf] }
 0x1b6   :  { %v9086_v27 = vld [vmem:[#allocation5 + $0x234] sm:$0xf0]  ;;  %v6542_v24 = vor.u32 %v9130_v14, %v6539_v15  ;;  %v9106_v63 = vld [vmem:[#allocation5 + $0x2dc] sm:$0xf] }
 0x1b7   :  { %v7337_v28 = vld [vmem:[#allocation5 + $0x9d8] sm:$0xf]  ;;  %3177 = vmatpush.bf16.msrb.mxu2 %v6922_v17  ;;  %3139 = vmatpush.bf16.msra.mxu1 %v6122_v18  ;;  %v6346_v41 = vor.u32 %v9086_v27, %v6345_v25  ;;  %v6286_v17 = vor.u32 %v9066_v4, %v6283_v6  ;;  %v2895_v27 = vpop.f32.mrf.mxu1  ;;  %v9034_v6 = vld [vmem:[#allocation5 + $0x9c] sm:$0xf] }
 0x1b8   :  { %v9334_v29 = vld [vmem:[#allocation5 + $0x9f4] sm:$0xf0]  ;;  %v2896_v31 = vadd.f32 %v2895_v27, %v10279_v21  ;;  %v9042_v21 = vld [vmem:[#allocation5 + $0xdc] sm:$0xf] }
 0x1b9   :  { %v7593_v33 = vld [vmem:[#allocation5 + $0xbd8] sm:$0xf]  ;;  %v7338_v42 = vor.u32 %v9334_v29, %v7337_v28  ;;  %3165 = vmatpush.bf16.msrb.mxu0 %v6634_v32  ;;  %3153 = vmatpush.bf16.msra.mxu3 %v6346_v41  ;;  %v9122_v28 = vld [vmem:[#allocation5 + $0x35c] sm:$0xf]  ;;  %v6254_v32 = vor.u32 %v9058_v19, %v6251_v49 }
 0x1ba   :  { %v9398_v36 = vld [vmem:[#allocation5 + $0xbf4] sm:$0xf0]  ;;  %v6507_v29 = vld [vmem:[#allocation5 + $0x378] sm:$0xf0] }
 0x1bb   :  { %v6601_v59 = vld [vmem:[#allocation5 + $0x418] sm:$0xf]  ;;  %v7594_v47 = vor.u32 %v9398_v36, %v7593_v33  ;;  %3178 = vmatpush.bf16.msrb.mxu2 %v6890_v38  ;;  %3140 = vmatpush.bf16.msra.mxu1 %v6090_v39  ;;  %v9050_v36 = vld [vmem:[#allocation5 + $0x11c] sm:$0xf] }
 0x1bc   :  { %v9150_v40 = vld [vmem:[#allocation5 + $0x434] sm:$0xf0]  ;;  %3154 = vmatmul.bf16.vlgmr.msra.gmra.mxu3 %v10199_v7  ;;  %v6219_v38 = vld [vmem:[#allocation5 + $0x138] sm:$0xf0] }
 0x1bd   :  { %v6857_v8 = vld [vmem:[#allocation5 + $0x618] sm:$0xf]  ;;  %v6602_v54 = vor.u32 %v9150_v40, %v6601_v59  ;;  %3198 = vmatpush.bf16.msrb.mxu3 %v7594_v47  ;;  %v6187_v47 = vld [vmem:[#allocation5 + $0xf8] sm:$0xf0] }
 0x1be   :  { %v9214_v16 = vld [vmem:[#allocation5 + $0x634] sm:$0xf0]  ;;  %3141 = vmatmul.bf16.vlgmr.msra.gmra.mxu1 %v10193_v55  ;;  %v6190_v4 = vor.u32 %v9042_v21, %v6187_v47  ;;  %v9098_v19 = vld [vmem:[#allocation5 + $0x29c] sm:$0xf] }
 0x1bf   :  { %v7625_v44 = vld [vmem:[#allocation5 + $0xc18] sm:$0xf]  ;;  %v6858_v60 = vor.u32 %v9214_v16, %v6857_v8  ;;  %3185 = vmatpush.bf16.msrb.mxu1 %v7338_v42  ;;  %3166 = vmatpush.bf16.msrb.mxu0 %v6602_v54  ;;  %v6510_v8 = vor.u32 %v9122_v28, %v6507_v29  ;;  %v9114_v42 = vld [vmem:[#allocation5 + $0x31c] sm:$0xf]  ;;  %v2897_v62 = vpop.f32.mrf.mxu1 }
 0x1c0   :  { %v9406_v0 = vld [vmem:[#allocation5 + $0xc34] sm:$0xf0]  ;;  %v6478_v54 = vor.u32 %v9114_v42, %v6475_v43  ;;  %v6091_v47 = vld [vmem:[#allocation5 + $0x38] sm:$0xf0] }
 0x1c1   :  { %v7305_v50 = vld [vmem:[#allocation5 + $0x998] sm:$0xf]  ;;  %v7626_v61 = vor.u32 %v9406_v0, %v7625_v44  ;;  %3179 = vmatpush.bf16.msrb.mxu2 %v6858_v60  ;;  %v6222_v44 = vor.u32 %v9050_v36, %v6219_v38  ;;  %v9266_v36 = vld [vmem:[#allocation5 + $0x7dc] sm:$0xf] }
 0x1c2   :  { %v9326_v52 = vld [vmem:[#allocation5 + $0x9b4] sm:$0xf0]  ;;  %3167 = vmatmul.bf16.vlgmr.msrb.gmra.mxu0 %v10191_v51  ;;  %v9082_v62 = vld [vmem:[#allocation5 + $0x21c] sm:$0xf] }
 0x1c3   :  { %v7561_v56 = vld [vmem:[#allocation5 + $0xb98] sm:$0xf]  ;;  %v7306_v2 = vor.u32 %v9326_v52, %v7305_v50  ;;  %3218 = vmatpush.bf16.msra.mxu0 %v7626_v61  ;;  %v2908_v52 = vpop.f32.mrf.mxu3 }
 0x1c4   :  { %v9390_v58 = vld [vmem:[#allocation5 + $0xbb4] sm:$0xf0]  ;;  %3180 = vmatmul.bf16.vlgmr.msrb.gmra.mxu2 %v10195_v57  ;;  %v2909_v61 = vadd.f32 %v2908_v52, %v2896_v31 }
 0x1c5   :  { %v7562_v5 = vor.u32 %v9390_v58, %v7561_v56  ;;  %v7273_v9 = vld [vmem:[#allocation5 + $0x958] sm:$0xf]  ;;  %3224 = vmatpush.bf16.msra.mxu2 %v6318_v1  ;;  %3186 = vmatpush.bf16.msrb.mxu1 %v7306_v2  ;;  %v2934_v56 = vpop.f32.mrf.mxu0  ;;  %v6443_v1 = vld [vmem:[#allocation5 + $0x2f8] sm:$0xf0]  ;;  %v2921_v2 = vpop.f32.mrf.mxu2 }
 0x1c6   :  { %v9318_v10 = vld [vmem:[#allocation5 + $0x974] sm:$0xf0]  ;;  %v6446_v14 = vor.u32 %v9106_v63, %v6443_v1  ;;  %v6347_v63 = vld [vmem:[#allocation5 + $0x238] sm:$0xf0] }
 0x1c7   :  { %v7529_v12 = vld [vmem:[#allocation5 + $0xb58] sm:$0xf]  ;;  %v7274_v18 = vor.u32 %v9318_v10, %v7273_v9  ;;  %3199 = vmatpush.bf16.msrb.mxu3 %v7562_v5  ;;  %3237 = vmatpush.bf16.msrb.mxu0 %v6574_v11  ;;  %v2922_v9 = vadd.f32 %v2921_v2, %v2909_v61  ;;  %v6155_v11 = vld [vmem:[#allocation5 + $0xb8] sm:$0xf0] }
 0x1c8   :  { %v9382_v13 = vld [vmem:[#allocation5 + $0xb74] sm:$0xf0]  ;;  %v6158_v49 = vor.u32 %v9034_v6, %v6155_v11  ;;  %v7051_v61 = vld [vmem:[#allocation5 + $0x7b8] sm:$0xf0]  ;;  %v6350_v11 = vor.u32 %v9082_v62, %v6347_v63 }
 0x1c9   :  { %v7530_v20 = vor.u32 %v9382_v13, %v7529_v12  ;;  %v7241_v22 = vld [vmem:[#allocation5 + $0x918] sm:$0xf]  ;;  %3225 = vmatpush.bf16.msra.mxu2 %v6286_v17  ;;  %3187 = vmatpush.bf16.msrb.mxu1 %v7274_v18  ;;  %v2935_v18 = vadd.f32 %v2934_v56, %v2922_v9  ;;  %v9194_v56 = vld [vmem:[#allocation5 + $0x59c] sm:$0xf] }
 0x1ca   :  { %v9310_v23 = vld [vmem:[#allocation5 + $0x934] sm:$0xf0]  ;;  %v9394_v2 = vld [vmem:[#allocation5 + $0xbdc] sm:$0xf] }
 0x1cb   :  { %v7497_v25 = vld [vmem:[#allocation5 + $0xb18] sm:$0xf]  ;;  %v7242_v33 = vor.u32 %v9310_v23, %v7241_v22  ;;  %3200 = vmatpush.bf16.msrb.mxu3 %v7530_v20  ;;  %3238 = vmatpush.bf16.msrb.mxu0 %v6542_v24  ;;  %v6411_v20 = vld [vmem:[#allocation5 + $0x2b8] sm:$0xf0] }
 0x1cc   :  { %v9374_v26 = vld [vmem:[#allocation5 + $0xb34] sm:$0xf0]  ;;  %v9026_v23 = vld [vmem:[#allocation5 + $0x5c] sm:$0xf]  ;;  %v6414_v31 = vor.u32 %v9098_v19, %v6411_v20 }
 0x1cd   :  { %v7498_v59 = vor.u32 %v9374_v26, %v7497_v25  ;;  %v7209_v39 = vld [vmem:[#allocation5 + $0x8d8] sm:$0xf]  ;;  %3226 = vmatpush.bf16.msra.mxu2 %v6254_v32  ;;  %3188 = vmatpush.bf16.msrb.mxu1 %v7242_v33  ;;  %v6123_v24 = vld [vmem:[#allocation5 + $0x78] sm:$0xf0]  ;;  %v2936_v38 = vpop.f32.mrf.mxu0 }
 0x1ce   :  { %v9302_v40 = vld [vmem:[#allocation5 + $0x8f4] sm:$0xf0]  ;;  %v9202_v32 = vld [vmem:[#allocation5 + $0x5dc] sm:$0xf]  ;;  %v6126_v42 = vor.u32 %v9026_v23, %v6123_v24 }
 0x1cf   :  { %v7465_v16 = vld [vmem:[#allocation5 + $0xad8] sm:$0xf]  ;;  %v7210_v0 = vor.u32 %v9302_v40, %v7209_v39  ;;  %3201 = vmatpush.bf16.msrb.mxu3 %v7498_v59  ;;  %3239 = vmatpush.bf16.msrb.mxu0 %v6510_v8  ;;  %v6827_v33 = vld [vmem:[#allocation5 + $0x5f8] sm:$0xf0]  ;;  %v2910_v59 = vpop.f32.mrf.mxu3  ;;  %v2947_v39 = vpop.f32.mrf.mxu1 }
 0x1d0   :  { %v9366_v41 = vld [vmem:[#allocation5 + $0xaf4] sm:$0xf0]  ;;  %v7083_v40 = vld [vmem:[#allocation5 + $0x7f8] sm:$0xf0] }
 0x1d1   :  { %v7466_v46 = vor.u32 %v9366_v41, %v7465_v16  ;;  %v7177_v48 = vld [vmem:[#allocation5 + $0x898] sm:$0xf]  ;;  %3227 = vmatpush.bf16.msra.mxu2 %v6222_v44  ;;  %3189 = vmatpush.bf16.msrb.mxu1 %v7210_v0  ;;  %v9090_v8 = vld [vmem:[#allocation5 + $0x25c] sm:$0xf]  ;;  %v10288_v41 = vadd.f32 %v2947_v39, %v2935_v18  ;;  %v2923_v0 = vpop.f32.mrf.mxu2  ;;  %v7086_v52 = vor.u32 %v9266_v36, %v7083_v40 }
 0x1d2   :  { %v9294_v50 = vld [vmem:[#allocation5 + $0x8b4] sm:$0xf0]  ;;  %7637 = vmatmul.msk.bf16.vlgmr.msra.gmra.mxu0 %vm2583_vm0, %v10203_v45  ;;  %v6379_v16 = vld [vmem:[#allocation5 + $0x278] sm:$0xf0] }
 0x1d3   :  { %v7433_v58 = vld [vmem:[#allocation5 + $0xa98] sm:$0xf]  ;;  %v7178_v5 = vor.u32 %v9294_v50, %v7177_v48  ;;  %3202 = vmatpush.bf16.msrb.mxu3 %v7466_v46  ;;  %3240 = vmatpush.bf16.msrb.mxu0 %v6478_v54  ;;  %v9018_v44 = vld [vmem:[#allocation5 + $0x1c] sm:$0xf]  ;;  %v6830_v46 = vor.u32 %v9202_v32, %v6827_v33  ;;  %v6382_v54 = vor.u32 %v9090_v8, %v6379_v16 }
 0x1d4   :  { %v9358_v60 = vld [vmem:[#allocation5 + $0xab4] sm:$0xf0]  ;;  %v9330_v48 = vld [vmem:[#allocation5 + $0x9dc] sm:$0xf]  ;;  %v6094_v1 = vor.u32 %v9018_v44, %v6091_v47 }
 0x1d5   :  { %v7434_v10 = vor.u32 %v9358_v60, %v7433_v58  ;;  %v7145_v12 = vld [vmem:[#allocation5 + $0x858] sm:$0xf]  ;;  %3228 = vmatpush.bf16.msra.mxu2 %v6190_v4  ;;  %3190 = vmatpush.bf16.msrb.mxu1 %v7178_v5  ;;  %v7339_v50 = vld [vmem:[#allocation5 + $0x9f8] sm:$0xf0]  ;;  %v10296_v62 = vpop.f32.mrf.mxu0 }
 0x1d6   :  { %v9286_v13 = vld [vmem:[#allocation5 + $0x874] sm:$0xf0]  ;;  %v6795_v58 = vld [vmem:[#allocation5 + $0x5b8] sm:$0xf0]  ;;  %v7342_v5 = vor.u32 %v9330_v48, %v7339_v50 }
 0x1d7   :  { %v7401_v15 = vld [vmem:[#allocation5 + $0xa58] sm:$0xf]  ;;  %v7146_v22 = vor.u32 %v9286_v13, %v7145_v12  ;;  %3203 = vmatpush.bf16.msrb.mxu3 %v7434_v10  ;;  %3241 = vmatpush.bf16.msrb.mxu0 %v6446_v14  ;;  %v9258_v60 = vld [vmem:[#allocation5 + $0x79c] sm:$0xf]  ;;  %v6798_v6 = vor.u32 %v9194_v56, %v6795_v58  ;;  %v2949_v19 = vpop.f32.mrf.mxu1  ;;  %v10298_v63 = vpop.f32.mrf.mxu3 }
 0x1d8   :  { %v9350_v17 = vld [vmem:[#allocation5 + $0xa74] sm:$0xf0]  ;;  %v7595_v4 = vld [vmem:[#allocation5 + $0xbf8] sm:$0xf0]  ;;  %v7054_v10 = vor.u32 %v9258_v60, %v7051_v61 }
 0x1d9   :  { %v7113_v25 = vld [vmem:[#allocation5 + $0x818] sm:$0xf]  ;;  %v7402_v26 = vor.u32 %v9350_v17, %v7401_v15  ;;  %3229 = vmatpush.bf16.msra.mxu2 %v6158_v49  ;;  %3191 = vmatpush.bf16.msrb.mxu1 %v7146_v22  ;;  %v9322_v9 = vld [vmem:[#allocation5 + $0x99c] sm:$0xf]  ;;  %v7598_v15 = vor.u32 %v9394_v2, %v7595_v4 }
 0x1da   :  { %v9278_v27 = vld [vmem:[#allocation5 + $0x834] sm:$0xf0]  ;;  %v7307_v12 = vld [vmem:[#allocation5 + $0x9b8] sm:$0xf0] }
 0x1db   :  { %v7369_v28 = vld [vmem:[#allocation5 + $0xa18] sm:$0xf]  ;;  %v7114_v43 = vor.u32 %v9278_v27, %v7113_v25  ;;  %3204 = vmatpush.bf16.msrb.mxu3 %v7402_v26  ;;  %3242 = vmatpush.bf16.msrb.mxu0 %v6414_v31  ;;  %v9186_v13 = vld [vmem:[#allocation5 + $0x55c] sm:$0xf]  ;;  %v7310_v22 = vor.u32 %v9322_v9, %v7307_v12  ;;  %v10300_v9 = vpop.f32.mrf.mxu2 }
 0x1dc   :  { %v9342_v29 = vld [vmem:[#allocation5 + $0xa34] sm:$0xf0]  ;;  %v6763_v14 = vld [vmem:[#allocation5 + $0x578] sm:$0xf0] }
 0x1dd   :  { %v7370_v21 = vor.u32 %v9342_v29, %v7369_v28  ;;  %3230 = vmatpush.bf16.msra.mxu2 %v6126_v42  ;;  %3192 = vmatpush.bf16.msrb.mxu1 %v7114_v43  ;;  %v9250_v17 = vld [vmem:[#allocation5 + $0x75c] sm:$0xf]  ;;  %v6766_v23 = vor.u32 %v9186_v13, %v6763_v14 }
 0x1de   :  { %v7019_v18 = vld [vmem:[#allocation5 + $0x778] sm:$0xf0] }
 0x1df   :  { %3205 = vmatpush.bf16.msrb.mxu3 %v7370_v21  ;;  %3243 = vmatpush.bf16.msrb.mxu0 %v6382_v54  ;;  %v9386_v20 = vld [vmem:[#allocation5 + $0xb9c] sm:$0xf]  ;;  %v7022_v25 = vor.u32 %v9250_v17, %v7019_v18  ;;  %v10294_v21 = vpop.f32.mrf.mxu1 }
 0x1e0   :  { %3193 = vmatmul.bf16.vlgmr.msrb.gmra.mxu1 %v10207_v30  ;;  %v7563_v49 = vld [vmem:[#allocation5 + $0xbb8] sm:$0xf0] }
 0x1e1   :  { %3250 = vmatpush.bf16.msra.mxu1 %v6830_v46  ;;  %3231 = vmatpush.bf16.msra.mxu2 %v6094_v1  ;;  %v9314_v24 = vld [vmem:[#allocation5 + $0x95c] sm:$0xf]  ;;  %v7566_v29 = vor.u32 %v9386_v20, %v7563_v49 }
 0x1e2   :  { %3206 = vmatmul.bf16.vlgmr.msrb.gmra.mxu3 %v10209_v35  ;;  %v7275_v26 = vld [vmem:[#allocation5 + $0x978] sm:$0xf0] }
 0x1e3   :  { %3263 = vmatpush.bf16.msra.mxu3 %v7086_v52  ;;  %3244 = vmatpush.bf16.msrb.mxu0 %v6350_v11  ;;  %v9178_v27 = vld [vmem:[#allocation5 + $0x51c] sm:$0xf]  ;;  %v7278_v59 = vor.u32 %v9314_v24, %v7275_v26 }
 0x1e4   :  { %v6731_v28 = vld [vmem:[#allocation5 + $0x538] sm:$0xf0]  ;;  %3232 = vmatmul.bf16.vlgmr.msra.gmra.mxu2 %v10193_v55 }
 0x1e5   :  { %3276 = vmatpush.bf16.msrb.mxu2 %v7342_v5  ;;  %3251 = vmatpush.bf16.msra.mxu1 %v6798_v6  ;;  %v9242_v31 = vld [vmem:[#allocation5 + $0x71c] sm:$0xf]  ;;  %v6734_v38 = vor.u32 %v9178_v27, %v6731_v28 }
 0x1e6   :  { %v6987_v32 = vld [vmem:[#allocation5 + $0x738] sm:$0xf0]  ;;  %3245 = vmatmul.bf16.vlgmr.msrb.gmra.mxu0 %v10199_v7 }
 0x1e7   :  { %3264 = vmatpush.bf16.msra.mxu3 %v7054_v10  ;;  %3289 = vmatpush.bf16.msra.mxu0 %v7598_v15  ;;  %v9378_v33 = vld [vmem:[#allocation5 + $0xb5c] sm:$0xf]  ;;  %v6990_v40 = vor.u32 %v9242_v31, %v6987_v32  ;;  %v2975_v18 = vpop.f32.mrf.mxu1  ;;  %v7753_v32 = vld [vmem:[#allocation8 + $0xe0] sm:$0xf] }
 0x1e8   :  { %v7531_v36 = vld [vmem:[#allocation5 + $0xb78] sm:$0xf0]  ;;  %v7721_v18 = vld [vmem:[#allocation8 + $0xa0] sm:$0xf] }
 0x1e9   :  { %3277 = vmatpush.bf16.msrb.mxu2 %v7310_v22  ;;  %3252 = vmatpush.bf16.msra.mxu1 %v6766_v23  ;;  %v9306_v39 = vld [vmem:[#allocation5 + $0x91c] sm:$0xf]  ;;  %v7534_v43 = vor.u32 %v9378_v33, %v7531_v36 }
 0x1ea   :  { %v7243_v8 = vld [vmem:[#allocation5 + $0x938] sm:$0xf0] }
 0x1eb   :  { %3265 = vmatpush.bf16.msra.mxu3 %v7022_v25  ;;  %v9170_v16 = vld [vmem:[#allocation5 + $0x4dc] sm:$0xf]  ;;  %3290 = vmatpush.bf16.msra.mxu0 %v7566_v29  ;;  %v7246_v47 = vor.u32 %v9306_v39, %v7243_v8  ;;  %v2962_v8 = vpop.f32.mrf.mxu3 }
 0x1ec   :  { %v6699_v42 = vld [vmem:[#allocation5 + $0x4f8] sm:$0xf0]  ;;  %v7961_v8 = vld [vmem:[#allocation8 + $0x280] sm:$0xf] }
 0x1ed   :  { %v9234_v44 = vld [vmem:[#allocation5 + $0x6dc] sm:$0xf]  ;;  %3278 = vmatpush.bf16.msrb.mxu2 %v7278_v59  ;;  %3253 = vmatpush.bf16.msra.mxu1 %v6734_v38  ;;  %v6702_v48 = vor.u32 %v9170_v16, %v6699_v42  ;;  %v3001_v59 = vpop.f32.mrf.mxu0  ;;  %v9437_v38 = vld [vmem:[#allocation8 + $0xec] sm:$0xf0] }
 0x1ee   :  { %v6955_v0 = vld [vmem:[#allocation5 + $0x6f8] sm:$0xf0] }
 0x1ef   :  { %v9370_v55 = vld [vmem:[#allocation5 + $0xb1c] sm:$0xf]  ;;  %3266 = vmatpush.bf16.msra.mxu3 %v6990_v40  ;;  %v6958_v52 = vor.u32 %v9234_v44, %v6955_v0  ;;  %3291 = vmatpush.bf16.msra.mxu0 %v7534_v43  ;;  %v2988_v44 = vpop.f32.mrf.mxu2 }
 0x1f0   :  { %v7499_v46 = vld [vmem:[#allocation5 + $0xb38] sm:$0xf0]  ;;  %v8089_v44 = vld [vmem:[#allocation8 + $0x380] sm:$0xf] }
 0x1f1   :  { %v9298_v50 = vld [vmem:[#allocation5 + $0x8dc] sm:$0xf]  ;;  %v7502_v7 = vor.u32 %v9370_v55, %v7499_v46  ;;  %3279 = vmatpush.bf16.msrb.mxu2 %v7246_v47  ;;  %3254 = vmatpush.bf16.msra.mxu1 %v6702_v48  ;;  %v7881_v47 = vld [vmem:[#allocation8 + $0x1e0] sm:$0xf]  ;;  %v9469_v48 = vld [vmem:[#allocation8 + $0x1ec] sm:$0xf0] }
 0x1f2   :  { %v7211_v54 = vld [vmem:[#allocation5 + $0x8f8] sm:$0xf0] }
 0x1f3   :  { %v9162_v56 = vld [vmem:[#allocation5 + $0x49c] sm:$0xf]  ;;  %v7214_v4 = vor.u32 %v9298_v50, %v7211_v54  ;;  %3267 = vmatpush.bf16.msra.mxu3 %v6958_v52  ;;  %3292 = vmatpush.bf16.msra.mxu0 %v7502_v7  ;;  %v7754_v50 = vor.u32 %v9437_v38, %v7753_v32  ;;  %v8009_v54 = vld [vmem:[#allocation8 + $0x2e0] sm:$0xf]  ;;  %v9433_v7 = vld [vmem:[#allocation8 + $0xcc] sm:$0xf0] }
 0x1f4   :  { %v6667_v58 = vld [vmem:[#allocation5 + $0x4b8] sm:$0xf0]  ;;  %v8105_v32 = vld [vmem:[#allocation8 + $0x3a0] sm:$0xf] }
 0x1f5   :  { %v9226_v60 = vld [vmem:[#allocation5 + $0x69c] sm:$0xf]  ;;  %v6670_v5 = vor.u32 %v9162_v56, %v6667_v58  ;;  %3280 = vmatpush.bf16.msrb.mxu2 %v7214_v4  ;;  %v9501_v56 = vld [vmem:[#allocation8 + $0x2ec] sm:$0xf0]  ;;  %v7737_v58 = vld [vmem:[#allocation8 + $0xc0] sm:$0xf] }
 0x1f6   :  { %v6923_v61 = vld [vmem:[#allocation5 + $0x6b8] sm:$0xf0]  ;;  %v9533_v4 = vld [vmem:[#allocation8 + $0x3ec] sm:$0xf0]  ;;  %v7833_v38 = vld [vmem:[#allocation8 + $0x180] sm:$0xf] }
 0x1f7   :  { %v9362_v1 = vld [vmem:[#allocation5 + $0xadc] sm:$0xf]  ;;  %v6926_v10 = vor.u32 %v9226_v60, %v6923_v61  ;;  %3255 = vmatpush.bf16.msra.mxu1 %v6670_v5  ;;  %v7882_v5 = vor.u32 %v9469_v48, %v7881_v47  ;;  %v7817_v47 = vld [vmem:[#allocation8 + $0x160] sm:$0xf] }
 0x1f8   :  { %v7467_v2 = vld [vmem:[#allocation5 + $0xaf8] sm:$0xf0] }
 0x1f9   :  { %v9290_v6 = vld [vmem:[#allocation5 + $0x89c] sm:$0xf]  ;;  %v7470_v14 = vor.u32 %v9362_v1, %v7467_v2  ;;  %3268 = vmatpush.bf16.msra.mxu3 %v6926_v10  ;;  %v8137_v2 = vld [vmem:[#allocation8 + $0x3e0] sm:$0xf] }
 0x1fa   :  { %v7179_v11 = vld [vmem:[#allocation5 + $0x8b8] sm:$0xf0]  ;;  %v7865_v10 = vld [vmem:[#allocation8 + $0x1c0] sm:$0xf] }
 0x1fb   :  { %v9154_v12 = vld [vmem:[#allocation5 + $0x45c] sm:$0xf]  ;;  %v7182_v49 = vor.u32 %v9290_v6, %v7179_v11  ;;  %3293 = vmatpush.bf16.msra.mxu0 %v7470_v14  ;;  %v8010_v6 = vor.u32 %v9501_v56, %v8009_v54  ;;  %v7738_v11 = vor.u32 %v9433_v7, %v7737_v58  ;;  %v7993_v14 = vld [vmem:[#allocation8 + $0x2c0] sm:$0xf]  ;;  %v9485_v54 = vld [vmem:[#allocation8 + $0x26c] sm:$0xf0]  ;;  %v10308_v56 = vpop.f32.mrf.mxu3  ;;  %v10310_v58 = vpop.f32.mrf.mxu1 }
 0x1fc   :  { %v6635_v13 = vld [vmem:[#allocation5 + $0x478] sm:$0xf0] }
 0x1fd   :  { %v9218_v15 = vld [vmem:[#allocation5 + $0x65c] sm:$0xf]  ;;  %v6638_v22 = vor.u32 %v9154_v12, %v6635_v13  ;;  %3281 = vmatpush.bf16.msrb.mxu2 %v7182_v49  ;;  %v9465_v13 = vld [vmem:[#allocation8 + $0x1cc] sm:$0xf0] }
 0x1fe   :  { %v6891_v17 = vld [vmem:[#allocation5 + $0x678] sm:$0xf0]  ;;  %v9529_v49 = vld [vmem:[#allocation8 + $0x3cc] sm:$0xf0] }
 0x1ff   :  { %v9354_v19 = vld [vmem:[#allocation5 + $0xa9c] sm:$0xf]  ;;  %v6894_v26 = vor.u32 %v9218_v15, %v6891_v17  ;;  %3256 = vmatpush.bf16.msra.mxu1 %v6638_v22  ;;  %v9497_v15 = vld [vmem:[#allocation8 + $0x2cc] sm:$0xf0]  ;;  %v8138_v17 = vor.u32 %v9533_v4, %v8137_v2  ;;  %v7866_v22 = vor.u32 %v9465_v13, %v7865_v10  ;;  %v10312_v4 = vpop.f32.mrf.mxu0  ;;  %v7801_v10 = vld [vmem:[#allocation8 + $0x140] sm:$0xf] }
 0x200   :  { %v7435_v20 = vld [vmem:[#allocation5 + $0xab8] sm:$0xf0]  ;;  %v9517_v2 = vld [vmem:[#allocation8 + $0x36c] sm:$0xf0]  ;;  %v7929_v13 = vld [vmem:[#allocation8 + $0x240] sm:$0xf] }
 0x201   :  { %v9282_v23 = vld [vmem:[#allocation5 + $0x85c] sm:$0xf]  ;;  %v7438_v31 = vor.u32 %v9354_v19, %v7435_v20  ;;  %3269 = vmatpush.bf16.msra.mxu3 %v6894_v26  ;;  %v9429_v19 = vld [vmem:[#allocation8 + $0xac] sm:$0xf0]  ;;  %v8121_v20 = vld [vmem:[#allocation8 + $0x3c0] sm:$0xf] }
 0x202   :  { %v7147_v24 = vld [vmem:[#allocation5 + $0x878] sm:$0xf0]  ;;  %v7722_v26 = vor.u32 %v9429_v19, %v7721_v18  ;;  %v9413_v18 = vld [vmem:[#allocation8 + $0x2c] sm:$0xf0]  ;;  %v8057_v19 = vld [vmem:[#allocation8 + $0x340] sm:$0xf] }
 0x203   :  { %v9146_v25 = vld [vmem:[#allocation5 + $0x41c] sm:$0xf]  ;;  %v7150_v16 = vor.u32 %v9282_v23, %v7147_v24  ;;  %3294 = vmatpush.bf16.msra.mxu0 %v7438_v31  ;;  %v7994_v23 = vor.u32 %v9497_v15, %v7993_v14  ;;  %v7849_v24 = vld [vmem:[#allocation8 + $0x1a0] sm:$0xf]  ;;  %v9425_v31 = vld [vmem:[#allocation8 + $0x8c] sm:$0xf0] }
 0x204   :  { %v6603_v27 = vld [vmem:[#allocation5 + $0x438] sm:$0xf0]  ;;  %v9481_v14 = vld [vmem:[#allocation8 + $0x24c] sm:$0xf0] }
 0x205   :  { %v9210_v28 = vld [vmem:[#allocation5 + $0x61c] sm:$0xf]  ;;  %v6606_v42 = vor.u32 %v9146_v25, %v6603_v27  ;;  %3282 = vmatpush.bf16.msrb.mxu2 %v7150_v16  ;;  %v10304_v25 = vpop.f32.mrf.mxu2  ;;  %v9461_v27 = vld [vmem:[#allocation8 + $0x1ac] sm:$0xf0] }
 0x206   :  { %v6859_v29 = vld [vmem:[#allocation5 + $0x638] sm:$0xf0]  ;;  %v9489_v16 = vld [vmem:[#allocation8 + $0x28c] sm:$0xf0] }
 0x207   :  { %v9402_v33 = vld [vmem:[#allocation5 + $0xc1c] sm:$0xf]  ;;  %v6862_v0 = vor.u32 %v9210_v28, %v6859_v29  ;;  %3257 = vmatpush.bf16.msra.mxu1 %v6606_v42  ;;  %v9493_v28 = vld [vmem:[#allocation8 + $0x2ac] sm:$0xf0]  ;;  %v7705_v29 = vld [vmem:[#allocation8 + $0x80] sm:$0xf] }
 0x208   :  { %v7627_v36 = vld [vmem:[#allocation5 + $0xc38] sm:$0xf0]  ;;  %v7689_v42 = vld [vmem:[#allocation8 + $0x60] sm:$0xf] }
 0x209   :  { %v9346_v39 = vld [vmem:[#allocation5 + $0xa5c] sm:$0xf]  ;;  %v7630_v46 = vor.u32 %v9402_v33, %v7627_v36  ;;  %3270 = vmatpush.bf16.msra.mxu3 %v6862_v0  ;;  %v9525_v33 = vld [vmem:[#allocation8 + $0x3ac] sm:$0xf0]  ;;  %v7850_v36 = vor.u32 %v9461_v27, %v7849_v24  ;;  %v7913_v27 = vld [vmem:[#allocation8 + $0x220] sm:$0xf] }
 0x20a   :  { %v7403_v40 = vld [vmem:[#allocation5 + $0xa78] sm:$0xf0]  ;;  %3258 = vmatmul.bf16.vlgmr.msra.gmra.mxu1 %v10191_v51  ;;  %v7977_v51 = vld [vmem:[#allocation8 + $0x2a0] sm:$0xf]  ;;  %v9521_v0 = vld [vmem:[#allocation8 + $0x38c] sm:$0xf0] }
 0x20b   :  { %v9274_v43 = vld [vmem:[#allocation5 + $0x81c] sm:$0xf]  ;;  %v7406_v52 = vor.u32 %v9346_v39, %v7403_v40  ;;  %3309 = vmatpush.bf16.msrb.mxu1 %v7630_v46  ;;  %v7978_v59 = vor.u32 %v9493_v28, %v7977_v51  ;;  %v7706_v39 = vor.u32 %v9425_v31, %v7705_v29  ;;  %v9457_v40 = vld [vmem:[#allocation8 + $0x18c] sm:$0xf0]  ;;  %v7962_v46 = vor.u32 %v9489_v16, %v7961_v8  ;;  %v8265_v31 = vld [vmem:[#allocation8 + $0x4e0] sm:$0xf] }
 0x20c   :  { %v7115_v55 = vld [vmem:[#allocation5 + $0x838] sm:$0xf0]  ;;  %3271 = vmatmul.bf16.vlgmr.msra.gmra.mxu3 %v10195_v57  ;;  %v8122_v57 = vor.u32 %v9529_v49, %v8121_v20  ;;  %v8090_v7 = vor.u32 %v9521_v0, %v8089_v44  ;;  %v9513_v20 = vld [vmem:[#allocation8 + $0x34c] sm:$0xf0]  ;;  %v611_v8 = vperm.slane %v10271_v53, 4 }
 0x20d   :  { %v9338_v60 = vld [vmem:[#allocation5 + $0xa1c] sm:$0xf]  ;;  %v7118_v1 = vor.u32 %v9274_v43, %v7115_v55  ;;  %4877 = vmatpush.bf16.msrb.mxu3 %v7754_v50  ;;  %3295 = vmatpush.bf16.msra.mxu0 %v7406_v52  ;;  %v9421_v43 = vld [vmem:[#allocation8 + $0x6c] sm:$0xf0]  ;;  %v7834_v55 = vor.u32 %v9457_v40, %v7833_v38  ;;  %v3040_v48 = vpop.f32.mrf.mxu2  ;;  %v7945_v52 = vld [vmem:[#allocation8 + $0x260] sm:$0xf] }
 0x20e   :  { %v7371_v61 = vld [vmem:[#allocation5 + $0xa38] sm:$0xf0]  ;;  %v7690_v50 = vor.u32 %v9421_v43, %v7689_v42  ;;  %v9477_v51 = vld [vmem:[#allocation8 + $0x22c] sm:$0xf0]  ;;  %v3315_v40 = vmax.f32 %v10241_v37, 0.0  ;;  %v2961_v53 = vadd.f32 %v10298_v63, %v611_v8 }
 0x20f   :  { %v7374_v12 = vor.u32 %v9338_v60, %v7371_v61  ;;  %3283 = vmatpush.bf16.msrb.mxu2 %v7118_v1  ;;  %4890 = vmatpush.bf16.msra.mxu1 %v7882_v5  ;;  %v7673_v60 = vld [vmem:[#allocation8 + $0x40] sm:$0xf]  ;;  %v9417_v61 = vld [vmem:[#allocation8 + $0x4c] sm:$0xf0] }
 0x210   :  { %v8073_v1 = vld [vmem:[#allocation8 + $0x360] sm:$0xf]  ;;  %v9409_v29 = vld [vmem:[#allocation8 + $0xc] sm:$0xf0] }
 0x211   :  { %4878 = vmatpush.bf16.msrb.mxu3 %v7738_v11  ;;  %3296 = vmatpush.bf16.msra.mxu0 %v7374_v12  ;;  %v7674_v11 = vor.u32 %v9417_v61, %v7673_v60  ;;  %v9449_v12 = vld [vmem:[#allocation8 + $0x14c] sm:$0xf0]  ;;  %v8074_v15 = vor.u32 %v9517_v2, %v8073_v1  ;;  %v7769_v42 = vld [vmem:[#allocation8 + $0x100] sm:$0xf]  ;;  %v3316_v1 = vmax.f32 %v10255_v34, 0.0  ;;  %v2974_v34 = vadd.f32 %v10294_v21, %v2961_v53 }
 0x212   :  { %3284 = vmatmul.bf16.vlgmr.msrb.gmra.mxu2 %v10207_v30  ;;  %v8106_v30 = vor.u32 %v9525_v33, %v8105_v32  ;;  %v7802_v49 = vor.u32 %v9449_v12, %v7801_v10  ;;  %v3014_v32 = vpop.f32.mrf.mxu3  ;;  %v3027_v33 = vpop.f32.mrf.mxu1  ;;  %v9509_v38 = vld [vmem:[#allocation8 + $0x32c] sm:$0xf0]  ;;  %v7897_v0 = vld [vmem:[#allocation8 + $0x200] sm:$0xf]  ;;  %v10322_v10 = vpack.c.bf16 %v3315_v40, %v3315_v40 }
 0x213   :  { %4903 = vmatpush.bf16.msra.mxu2 %v8010_v6  ;;  %4891 = vmatpush.bf16.msra.mxu1 %v7866_v22  ;;  %v7946_v6 = vor.u32 %v9485_v54, %v7945_v52  ;;  %v7930_v22 = vor.u32 %v9481_v14, %v7929_v13  ;;  %v9441_v44 = vld [vmem:[#allocation8 + $0x10c] sm:$0xf0]  ;;  %v8393_v48 = vld [vmem:[#allocation8 + $0x5e0] sm:$0xf] }
 0x214   :  { %3297 = vmatmul.bf16.vlgmr.msra.gmra.mxu0 %v10209_v35  ;;  %v9453_v35 = vld [vmem:[#allocation8 + $0x16c] sm:$0xf0]  ;;  %v8025_v37 = vld [vmem:[#allocation8 + $0x300] sm:$0xf] }
 0x215   :  { %4916 = vmatpush.bf16.msrb.mxu0 %v8138_v17  ;;  %4879 = vmatpush.bf16.msrb.mxu3 %v7722_v26  ;;  %v7818_v5 = vor.u32 %v9453_v35, %v7817_v47  ;;  %v7657_v17 = vld [vmem:[#allocation8 + $0x20] sm:$0xf]  ;;  %v9445_v26 = vld [vmem:[#allocation8 + $0x12c] sm:$0xf0]  ;;  %v10316_v28 = vpop.f32.mrf.mxu2 }
 0x216   :  { %v7658_v24 = vor.u32 %v9413_v18, %v7657_v17  ;;  %v8249_v35 = vld [vmem:[#allocation8 + $0x4c0] sm:$0xf]  ;;  %v9561_v52 = vld [vmem:[#allocation8 + $0x4cc] sm:$0xf0] }
 0x217   :  { %4904 = vmatpush.bf16.msra.mxu2 %v7994_v23  ;;  %4892 = vmatpush.bf16.msra.mxu1 %v7850_v36  ;;  %v7785_v23 = vld [vmem:[#allocation8 + $0x120] sm:$0xf]  ;;  %v9565_v36 = vld [vmem:[#allocation8 + $0x4ec] sm:$0xf0]  ;;  %v8250_v12 = vor.u32 %v9561_v52, %v8249_v35 }
 0x218   :  { %v7786_v16 = vor.u32 %v9445_v26, %v7785_v23  ;;  %v9505_v54 = vld [vmem:[#allocation8 + $0x30c] sm:$0xf0]  ;;  %v8521_v60 = vld [vmem:[#allocation8 + $0x6e0] sm:$0xf] }
 0x219   :  { %4917 = vmatpush.bf16.msrb.mxu0 %v8122_v57  ;;  %4880 = vmatpush.bf16.msrb.mxu3 %v7706_v39  ;;  %v7641_v57 = vld [vmem:[#allocation8] sm:$0xf]  ;;  %v3053_v39 = vpop.f32.mrf.mxu0  ;;  %v9629_v61 = vld [vmem:[#allocation8 + $0x6ec] sm:$0xf0]  ;;  %v8026_v13 = vor.u32 %v9505_v54, %v8025_v37 }
 0x21a   :  { %7638 = vmatmul.msk.bf16.vlgmr.msrb.gmra.mxu1 %vm2583_vm0, %v10203_v45  ;;  %v8058_v45 = vor.u32 %v9513_v20, %v8057_v19  ;;  %v7642_v43 = vor.u32 %v9409_v29, %v7641_v57  ;;  %v8377_v63 = vld [vmem:[#allocation8 + $0x5c0] sm:$0xf]  ;;  %v9593_v14 = vld [vmem:[#allocation8 + $0x5cc] sm:$0xf0]  ;;  %v8522_v19 = vor.u32 %v9629_v61, %v8521_v60 }
 0x21b   :  { %4905 = vmatpush.bf16.msra.mxu2 %v7978_v59  ;;  %4893 = vmatpush.bf16.msra.mxu1 %v7834_v55  ;;  %v8041_v59 = vld [vmem:[#allocation8 + $0x320] sm:$0xf]  ;;  %v9473_v55 = vld [vmem:[#allocation8 + $0x20c] sm:$0xf0]  ;;  %v3090_v52 = vpop.f32.mrf.mxu1 }
 0x21c   :  { %v8042_v47 = vor.u32 %v9509_v38, %v8041_v59  ;;  %v7898_v2 = vor.u32 %v9473_v55, %v7897_v0  ;;  %v8233_v17 = vld [vmem:[#allocation8 + $0x4a0] sm:$0xf]  ;;  %v9557_v18 = vld [vmem:[#allocation8 + $0x4ac] sm:$0xf0] }
 0x21d   :  { %4918 = vmatpush.bf16.msrb.mxu0 %v8106_v30  ;;  %4881 = vmatpush.bf16.msrb.mxu3 %v7690_v50  ;;  %v7914_v30 = vor.u32 %v9477_v51, %v7913_v27  ;;  %v9597_v50 = vld [vmem:[#allocation8 + $0x5ec] sm:$0xf0]  ;;  %v8505_v20 = vld [vmem:[#allocation8 + $0x6c0] sm:$0xf]  ;;  %v8234_v26 = vor.u32 %v9557_v18, %v8233_v17 }
 0x21e   :  { %v8361_v21 = vld [vmem:[#allocation8 + $0x5a0] sm:$0xf]  ;;  %v9589_v27 = vld [vmem:[#allocation8 + $0x5ac] sm:$0xf0] }
 0x21f   :  { %4906 = vmatpush.bf16.msra.mxu2 %v7962_v46  ;;  %4894 = vmatpush.bf16.msra.mxu1 %v7818_v5  ;;  %v8266_v46 = vor.u32 %v9565_v36, %v8265_v31  ;;  %v8394_v5 = vor.u32 %v9597_v50, %v8393_v48  ;;  %v9553_v57 = vld [vmem:[#allocation8 + $0x48c] sm:$0xf0]  ;;  %v2987_v31 = vadd.f32 %v10300_v9, %v2974_v34  ;;  %v8489_v32 = vld [vmem:[#allocation8 + $0x6a0] sm:$0xf]  ;;  %v3077_v48 = vpop.f32.mrf.mxu3 }
 0x220   :  { %v9621_v33 = vld [vmem:[#allocation8 + $0x6ac] sm:$0xf0]  ;;  %v8362_v36 = vor.u32 %v9589_v27, %v8361_v21  ;;  %v8345_v39 = vld [vmem:[#allocation8 + $0x580] sm:$0xf] }
 0x221   :  { %4919 = vmatpush.bf16.msrb.mxu0 %v8090_v7  ;;  %4882 = vmatpush.bf16.msrb.mxu3 %v7674_v11  ;;  %v7770_v7 = vor.u32 %v9441_v44, %v7769_v42  ;;  %v3317_v11 = vmax.f32 %v10277_v3, 0.0  ;;  %v8378_v3 = vor.u32 %v9593_v14, %v8377_v63  ;;  %v9585_v40 = vld [vmem:[#allocation8 + $0x58c] sm:$0xf0]  ;;  %v8201_v8 = vld [vmem:[#allocation8 + $0x460] sm:$0xf]  ;;  %v3000_v9 = vadd.f32 %v10296_v62, %v2987_v31  ;;  %v3103_v54 = vpop.f32.mrf.mxu0 }
 0x222   :  { %v8473_v42 = vld [vmem:[#allocation8 + $0x680] sm:$0xf]  ;;  %v8346_v44 = vor.u32 %v9585_v40, %v8345_v39  ;;  %v9545_v35 = vld [vmem:[#allocation8 + $0x44c] sm:$0xf0]  ;;  %v9431_v39 = vld [vmem:[#allocation8 + $0xc4] sm:$0xf] }
 0x223   :  { %4907 = vmatpush.bf16.msra.mxu2 %v7946_v6  ;;  %4895 = vmatpush.bf16.msra.mxu1 %v7802_v49  ;;  %v3066_v6 = vpop.f32.mrf.mxu2  ;;  %v9625_v49 = vld [vmem:[#allocation8 + $0x6cc] sm:$0xf0]  ;;  %v10330_v23 = vpack.c.bf16 %v3317_v11, %v3317_v11  ;;  %v3013_v0 = vadd.f32 %v10308_v56, %v3000_v9  ;;  %v8185_v50 = vld [vmem:[#allocation8 + $0x440] sm:$0xf] }
 0x224   :  { %v8506_v29 = vor.u32 %v9625_v49, %v8505_v20  ;;  %v8457_v62 = vld [vmem:[#allocation8 + $0x660] sm:$0xf]  ;;  %v9613_v53 = vld [vmem:[#allocation8 + $0x66c] sm:$0xf0]  ;;  %v9435_v49 = vld [vmem:[#allocation8 + $0xe4] sm:$0xf] }
 0x225   :  { %4920 = vmatpush.bf16.msrb.mxu0 %v8074_v15  ;;  %4883 = vmatpush.bf16.msrb.mxu3 %v7658_v24  ;;  %v3318_v15 = vmax.f32 %v10288_v41, 0.0  ;;  %v10332_v41 = vld [vmem:[#allocation7] sm:$0xff]  ;;  %v3026_v60 = vadd.f32 %v10310_v58, %v3013_v0  ;;  %v8313_v61 = vld [vmem:[#allocation8 + $0x540] sm:$0xf]  ;;  %v8458_v6 = vor.u32 %v9613_v53, %v8457_v62  ;;  %v9573_v18 = vld [vmem:[#allocation8 + $0x52c] sm:$0xf0] }
 0x226   :  { %v612_v24 = vperm.slane %v10332_v41, 5  ;;  %v8441_v11 = vld [vmem:[#allocation8 + $0x640] sm:$0xf]  ;;  %v9537_v20 = vld [vmem:[#allocation8 + $0x40c] sm:$0xf0] }
 0x227   :  { %4908 = vmatpush.bf16.msra.mxu2 %v7930_v22  ;;  %4896 = vmatpush.bf16.msra.mxu1 %v7786_v16  ;;  %v10328_v22 = vpack.c.bf16 %v3316_v1, %v3316_v1  ;;  %v10335_v51 = vpack.c.bf16 %v3318_v15, %v3318_v15  ;;  %v9549_v16 = vld [vmem:[#allocation8 + $0x46c] sm:$0xf0]  ;;  %v3039_v14 = vadd.f32 %v10304_v25, %v3026_v60  ;;  %v8297_v58 = vld [vmem:[#allocation8 + $0x520] sm:$0xf]  ;;  %v9427_v62 = vld [vmem:[#allocation8 + $0xa4] sm:$0xf] }
 0x228   :  { %v3052_v59 = vadd.f32 %v10312_v4, %v612_v24  ;;  %v8202_v4 = vor.u32 %v9549_v16, %v8201_v8  ;;  %v9577_v1 = vld [vmem:[#allocation8 + $0x54c] sm:$0xf0]  ;;  %v8153_v34 = vld [vmem:[#allocation8 + $0x400] sm:$0xf]  ;;  %v7739_v8 = vld [vmem:[#allocation8 + $0xd0] sm:$0xf0] }
 0x229   :  { %4921 = vmatpush.bf16.msrb.mxu0 %v8058_v45  ;;  %4884 = vmatpush.bf16.msrb.mxu3 %v7642_v43  ;;  %v8217_v45 = vld [vmem:[#allocation8 + $0x480] sm:$0xf]  ;;  %v9617_v43 = vld [vmem:[#allocation8 + $0x68c] sm:$0xf0]  ;;  %v3105_v21 = vpop.f32.mrf.mxu0  ;;  %v8154_v31 = vor.u32 %v9537_v20, %v8153_v34  ;;  %v7723_v53 = vld [vmem:[#allocation8 + $0xb0] sm:$0xf0] }
 0x22a   :  { %v8218_v38 = vor.u32 %v9553_v57, %v8217_v45  ;;  %v3065_v55 = vadd.f32 %v10316_v28, %v3052_v59  ;;  %v8474_v37 = vor.u32 %v9617_v43, %v8473_v42  ;;  %v8186_v28 = vor.u32 %v9545_v35, %v8185_v50  ;;  %v8425_v27 = vld [vmem:[#allocation8 + $0x620] sm:$0xf]  ;;  %v9605_v45 = vld [vmem:[#allocation8 + $0x62c] sm:$0xf0]  ;;  %v9467_v59 = vld [vmem:[#allocation8 + $0x1e4] sm:$0xf] }
 0x22b   :  { %4909 = vmatpush.bf16.msra.mxu2 %v7914_v30  ;;  %4897 = vmatpush.bf16.msra.mxu1 %v7770_v7  ;;  %v8490_v30 = vor.u32 %v9621_v33, %v8489_v32  ;;  %v3116_v63 = vpop.f32.mrf.mxu2  ;;  %v8298_v57 = vor.u32 %v9573_v18, %v8297_v58  ;;  %v8281_v32 = vld [vmem:[#allocation8 + $0x500] sm:$0xf]  ;;  %v9569_v33 = vld [vmem:[#allocation8 + $0x50c] sm:$0xf0]  ;;  %v8426_v40 = vor.u32 %v9605_v45, %v8425_v27  ;;  %v9499_v43 = vld [vmem:[#allocation8 + $0x2e4] sm:$0xf] }
 0x22c   :  { %4885 = vmatmul.bf16.vlgmr.msrb.gmra.mxu3 %v10322_v10  ;;  %v3078_v56 = vadd.f32 %v3077_v48, %v3065_v55  ;;  %v8409_v16 = vld [vmem:[#allocation8 + $0x600] sm:$0xf]  ;;  %v8282_v9 = vor.u32 %v9569_v33, %v8281_v32  ;;  %v7742_v48 = vor.u32 %v9431_v39, %v7739_v8  ;;  %v7867_v50 = vld [vmem:[#allocation8 + $0x1d0] sm:$0xf0]  ;;  %v9491_v58 = vld [vmem:[#allocation8 + $0x2a4] sm:$0xf] }
 0x22d   :  { %4929 = vmatpush.bf16.msra.mxu3 %v8266_v46  ;;  %4922 = vmatpush.bf16.msrb.mxu0 %v8042_v47  ;;  %v8329_v46 = vld [vmem:[#allocation8 + $0x560] sm:$0xf]  ;;  %v9581_v47 = vld [vmem:[#allocation8 + $0x56c] sm:$0xf0]  ;;  %v7979_v18 = vld [vmem:[#allocation8 + $0x2b0] sm:$0xf0] }
 0x22e   :  { %4898 = vmatmul.bf16.vlgmr.msra.gmra.mxu1 %v10328_v22  ;;  %v8330_v7 = vor.u32 %v9581_v47, %v8329_v46  ;;  %v3091_v15 = vadd.f32 %v3090_v52, %v3078_v56  ;;  %v8649_v52 = vld [vmem:[#allocation8 + $0x7e0] sm:$0xf]  ;;  %v9495_v56 = vld [vmem:[#allocation8 + $0x2c4] sm:$0xf]  ;;  %v7691_v27 = vld [vmem:[#allocation8 + $0x70] sm:$0xf0]  ;;  %v7982_v45 = vor.u32 %v9491_v58, %v7979_v18 }
 0x22f   :  { %4910 = vmatpush.bf16.msra.mxu2 %v7898_v2  ;;  %4942 = vmatpush.bf16.msrb.mxu1 %v8394_v5  ;;  %v8169_v2 = vld [vmem:[#allocation8 + $0x420] sm:$0xf]  ;;  %v9541_v5 = vld [vmem:[#allocation8 + $0x42c] sm:$0xf0]  ;;  %v9455_v34 = vld [vmem:[#allocation8 + $0x184] sm:$0xf] }
 0x230   :  { %v8170_v17 = vor.u32 %v9541_v5, %v8169_v2  ;;  %v3104_v25 = vadd.f32 %v3103_v54, %v3091_v15  ;;  %v9459_v2 = vld [vmem:[#allocation8 + $0x1a4] sm:$0xf]  ;;  %v7726_v5 = vor.u32 %v9427_v62, %v7723_v53  ;;  %v9649_v39 = vld [vmem:[#allocation8 + $0x78c] sm:$0xf0]  ;;  %v7931_v53 = vld [vmem:[#allocation8 + $0x250] sm:$0xf0] }
 0x231   :  { %4930 = vmatpush.bf16.msra.mxu3 %v8250_v12  ;;  %4923 = vmatpush.bf16.msrb.mxu0 %v8026_v13  ;;  %v9609_v12 = vld [vmem:[#allocation8 + $0x64c] sm:$0xf0]  ;;  %v8314_v13 = vor.u32 %v9577_v1, %v8313_v61  ;;  %v9419_v21 = vld [vmem:[#allocation8 + $0x64] sm:$0xf]  ;;  %v7915_v18 = vld [vmem:[#allocation8 + $0x230] sm:$0xf0] }
 0x232   :  { %4911 = vmatmul.bf16.vlgmr.msra.gmra.mxu2 %v10330_v23  ;;  %v8442_v24 = vor.u32 %v9609_v12, %v8441_v11  ;;  %v3117_v0 = vadd.f32 %v3116_v63, %v3104_v25  ;;  %v8633_v11 = vld [vmem:[#allocation8 + $0x7c0] sm:$0xf]  ;;  %v9657_v12 = vld [vmem:[#allocation8 + $0x7cc] sm:$0xf0]  ;;  %v9423_v63 = vld [vmem:[#allocation8 + $0x84] sm:$0xf] }
 0x233   :  { %4955 = vmatpush.bf16.msrb.mxu2 %v8522_v19  ;;  %4943 = vmatpush.bf16.msrb.mxu1 %v8378_v3  ;;  %v3079_v19 = vpop.f32.mrf.mxu3  ;;  %v3092_v3 = vpop.f32.mrf.mxu1  ;;  %v9487_v25 = vld [vmem:[#allocation8 + $0x284] sm:$0xf] }
 0x234   :  { %4924 = vmatmul.bf16.vlgmr.msrb.gmra.mxu0 %v10335_v51  ;;  %v3118_v42 = vpop.f32.mrf.mxu2  ;;  %v7835_v3 = vld [vmem:[#allocation8 + $0x190] sm:$0xf0]  ;;  %v9451_v33 = vld [vmem:[#allocation8 + $0x164] sm:$0xf] }
 0x235   :  { %4931 = vmatpush.bf16.msra.mxu3 %v8234_v26  ;;  %v7755_v26 = vld [vmem:[#allocation8 + $0xf0] sm:$0xf0]  ;;  %v7838_v32 = vor.u32 %v9455_v34, %v7835_v3  ;;  %v9415_v8 = vld [vmem:[#allocation8 + $0x44] sm:$0xf]  ;;  %v8553_v3 = vld [vmem:[#allocation8 + $0x720] sm:$0xf] }
 0x236   :  { %v9483_v42 = vld [vmem:[#allocation8 + $0x264] sm:$0xf] }
 0x237   :  { %4956 = vmatpush.bf16.msrb.mxu2 %v8506_v29  ;;  %4944 = vmatpush.bf16.msrb.mxu1 %v8362_v36  ;;  %v3319_v29 = vmax.f32 %v3039_v14, 0.0  ;;  %v7758_v36 = vor.u32 %v9435_v49, %v7755_v26  ;;  %v7707_v14 = vld [vmem:[#allocation8 + $0x90] sm:$0xf0]  ;;  %v9653_v26 = vld [vmem:[#allocation8 + $0x7ac] sm:$0xf0] }
 0x238   :  { %v7710_v20 = vor.u32 %v9423_v63, %v7707_v14  ;;  %v9479_v62 = vld [vmem:[#allocation8 + $0x244] sm:$0xf] }
 0x239   :  { %4932 = vmatpush.bf16.msra.mxu3 %v8218_v38  ;;  %v7883_v38 = vld [vmem:[#allocation8 + $0x1f0] sm:$0xf0]  ;;  %v10347_v46 = vpack.c.bf16 %v3319_v29, %v3319_v29  ;;  %v9563_v63 = vld [vmem:[#allocation8 + $0x4e4] sm:$0xf]  ;;  %v7934_v14 = vor.u32 %v9479_v62, %v7931_v53 }
 0x23a   :  { %v7886_v55 = vor.u32 %v9467_v59, %v7883_v38  ;;  %v7819_v59 = vld [vmem:[#allocation8 + $0x170] sm:$0xf0]  ;;  %v8601_v38 = vld [vmem:[#allocation8 + $0x780] sm:$0xf]  ;;  %v9475_v58 = vld [vmem:[#allocation8 + $0x224] sm:$0xf] }
 0x23b   :  { %4957 = vmatpush.bf16.msrb.mxu2 %v8490_v30  ;;  %4945 = vmatpush.bf16.msrb.mxu1 %v8346_v44  ;;  %v9601_v30 = vld [vmem:[#allocation8 + $0x60c] sm:$0xf0]  ;;  %v8011_v44 = vld [vmem:[#allocation8 + $0x2f0] sm:$0xf0]  ;;  %v3129_v47 = vpop.f32.mrf.mxu3  ;;  %v10353_v29 = vpop.f32.mrf.mxu1  ;;  %v9439_v34 = vld [vmem:[#allocation8 + $0x104] sm:$0xf] }
 0x23c   :  { %v8410_v35 = vor.u32 %v9601_v30, %v8409_v16  ;;  %v3130_v54 = vadd.f32 %v3129_v47, %v3117_v0  ;;  %v7675_v16 = vld [vmem:[#allocation8 + $0x50] sm:$0xf0]  ;;  %v9447_v0 = vld [vmem:[#allocation8 + $0x144] sm:$0xf]  ;;  %v8585_v47 = vld [vmem:[#allocation8 + $0x760] sm:$0xf] }
 0x23d   :  { %4933 = vmatpush.bf16.msra.mxu3 %v8202_v4  ;;  %v9463_v4 = vld [vmem:[#allocation8 + $0x1c4] sm:$0xf]  ;;  %v8363_v53 = vld [vmem:[#allocation8 + $0x5b0] sm:$0xf0] }
 0x23e   :  { %v3320_v61 = vmax.f32 %v3130_v54, 0.0  ;;  %v7870_v1 = vor.u32 %v9463_v4, %v7867_v50  ;;  %v7803_v4 = vld [vmem:[#allocation8 + $0x150] sm:$0xf0]  ;;  %v9411_v50 = vld [vmem:[#allocation8 + $0x24] sm:$0xf] }
 0x23f   :  { %4958 = vmatpush.bf16.msrb.mxu2 %v8474_v37  ;;  %4946 = vmatpush.bf16.msrb.mxu1 %v8330_v7  ;;  %v9661_v37 = vld [vmem:[#allocation8 + $0x7ec] sm:$0xf0]  ;;  %v8014_v7 = vor.u32 %v9499_v43, %v8011_v44  ;;  %v7947_v43 = vld [vmem:[#allocation8 + $0x270] sm:$0xf0]  ;;  %v7822_v44 = vor.u32 %v9451_v33, %v7819_v59 }
 0x240   :  { %v8650_v60 = vor.u32 %v9661_v37, %v8649_v52  ;;  %v7950_v52 = vor.u32 %v9483_v42, %v7947_v43  ;;  %v7899_v33 = vld [vmem:[#allocation8 + $0x210] sm:$0xf0] }
 0x241   :  { %4934 = vmatpush.bf16.msra.mxu3 %v8186_v28  ;;  %v7995_v28 = vld [vmem:[#allocation8 + $0x2d0] sm:$0xf0] }
 0x242   :  { %4968 = vmatpush.bf16.msra.mxu0 %v8650_v60  ;;  %v7998_v15 = vor.u32 %v9495_v56, %v7995_v28  ;;  %v9443_v60 = vld [vmem:[#allocation8 + $0x124] sm:$0xf]  ;;  %v8379_v42 = vld [vmem:[#allocation8 + $0x5d0] sm:$0xf0] }
 0x243   :  { %4959 = vmatpush.bf16.msrb.mxu2 %v8458_v6  ;;  %4947 = vmatpush.bf16.msrb.mxu1 %v8314_v13  ;;  %v7851_v6 = vld [vmem:[#allocation8 + $0x1b0] sm:$0xf0]  ;;  %v10350_v13 = vpack.c.bf16 %v3320_v61, %v3320_v61  ;;  %v3131_v49 = vpop.f32.mrf.mxu3  ;;  %v3144_v54 = vpop.f32.mrf.mxu1 }
 0x244   :  { %v7854_v19 = vor.u32 %v9459_v2, %v7851_v6  ;;  %v7787_v61 = vld [vmem:[#allocation8 + $0x130] sm:$0xf0]  ;;  %v9641_v2 = vld [vmem:[#allocation8 + $0x74c] sm:$0xf0]  ;;  %v9587_v54 = vld [vmem:[#allocation8 + $0x5a4] sm:$0xf] }
 0x245   :  { %4935 = vmatpush.bf16.msra.mxu3 %v8170_v17  ;;  %v8634_v17 = vor.u32 %v9657_v12, %v8633_v11  ;;  %v9407_v11 = vld [vmem:[#allocation8 + $0x4] sm:$0xf]  ;;  %v7643_v12 = vld [vmem:[#allocation8 + $0x10] sm:$0xf0] }
 0x246   :  { %v7771_v49 = vld [vmem:[#allocation8 + $0x110] sm:$0xf0] }
 0x247   :  { %4960 = vmatpush.bf16.msrb.mxu2 %v8442_v24  ;;  %4948 = vmatpush.bf16.msrb.mxu1 %v8298_v57  ;;  %v8617_v24 = vld [vmem:[#allocation8 + $0x7a0] sm:$0xf]  ;;  %v10359_v6 = vpop.f32.mrf.mxu2  ;;  %v7774_v59 = vor.u32 %v9439_v34, %v7771_v49  ;;  %v9579_v49 = vld [vmem:[#allocation8 + $0x564] sm:$0xf] }
 0x248   :  { %4969 = vmatpush.bf16.msra.mxu0 %v8634_v17  ;;  %v8618_v57 = vor.u32 %v9653_v26, %v8617_v24  ;;  %v8267_v17 = vld [vmem:[#allocation8 + $0x4f0] sm:$0xf0]  ;;  %v9637_v24 = vld [vmem:[#allocation8 + $0x72c] sm:$0xf0] }
 0x249   :  { %4936 = vmatpush.bf16.msra.mxu3 %v8154_v31  ;;  %v7963_v31 = vld [vmem:[#allocation8 + $0x290] sm:$0xf0]  ;;  %v8270_v26 = vor.u32 %v9563_v63, %v8267_v17  ;;  %v9547_v17 = vld [vmem:[#allocation8 + $0x464] sm:$0xf] }
 0x24a   :  { %v7966_v30 = vor.u32 %v9487_v25, %v7963_v31  ;;  %v8554_v25 = vor.u32 %v9637_v24, %v8553_v3  ;;  %v8251_v31 = vld [vmem:[#allocation8 + $0x4d0] sm:$0xf0]  ;;  %v9519_v24 = vld [vmem:[#allocation8 + $0x384] sm:$0xf] }
 0x24b   :  { %4961 = vmatpush.bf16.msrb.mxu2 %v8426_v40  ;;  %4949 = vmatpush.bf16.msrb.mxu1 %v8282_v9  ;;  %v10355_v40 = vpop.f32.mrf.mxu0  ;;  %v8602_v9 = vor.u32 %v9649_v39, %v8601_v38  ;;  %v10357_v56 = vpop.f32.mrf.mxu3  ;;  %v9591_v39 = vld [vmem:[#allocation8 + $0x5c4] sm:$0xf]  ;;  %v8331_v3 = vld [vmem:[#allocation8 + $0x570] sm:$0xf0] }
 0x24c   :  { %4937 = vmatmul.bf16.vlgmr.msra.gmra.mxu3 %v10347_v46  ;;  %4970 = vmatpush.bf16.msra.mxu0 %v8618_v57  ;;  %v7918_v57 = vor.u32 %v9475_v58, %v7915_v18  ;;  %v8203_v58 = vld [vmem:[#allocation8 + $0x470] sm:$0xf0] }
 0x24d   :  { %4981 = vmatpush.bf16.msrb.mxu3 %v7758_v36  ;;  %v7694_v36 = vor.u32 %v9419_v21, %v7691_v27  ;;  %v9595_v21 = vld [vmem:[#allocation8 + $0x5e4] sm:$0xf]  ;;  %v8395_v27 = vld [vmem:[#allocation8 + $0x5f0] sm:$0xf0] }
 0x24e   :  { %4950 = vmatmul.bf16.vlgmr.msrb.gmra.mxu1 %v10350_v13  ;;  %v8398_v38 = vor.u32 %v9595_v21, %v8395_v27  ;;  %v9543_v21 = vld [vmem:[#allocation8 + $0x444] sm:$0xf]  ;;  %v8187_v27 = vld [vmem:[#allocation8 + $0x450] sm:$0xf0] }
 0x24f   :  { %4994 = vmatpush.bf16.msra.mxu1 %v7886_v55  ;;  %4962 = vmatpush.bf16.msrb.mxu2 %v8410_v35  ;;  %v7678_v55 = vor.u32 %v9415_v8, %v7675_v16  ;;  %v7659_v35 = vld [vmem:[#allocation8 + $0x30] sm:$0xf0]  ;;  %v8537_v16 = vld [vmem:[#allocation8 + $0x700] sm:$0xf] }
 0x250   :  { %4971 = vmatpush.bf16.msra.mxu0 %v8602_v9  ;;  %v7662_v28 = vor.u32 %v9411_v50, %v7659_v35  ;;  %v8235_v50 = vld [vmem:[#allocation8 + $0x4b0] sm:$0xf0] }
 0x251   :  { %4982 = vmatpush.bf16.msrb.mxu3 %v7742_v48  ;;  %v9645_v48 = vld [vmem:[#allocation8 + $0x76c] sm:$0xf0] }
 0x252   :  { %v8586_v37 = vor.u32 %v9645_v48, %v8585_v47  ;;  %v8139_v47 = vld [vmem:[#allocation8 + $0x3f0] sm:$0xf0]  ;;  %v9555_v48 = vld [vmem:[#allocation8 + $0x4a4] sm:$0xf] }
 0x253   :  { %5007 = vmatpush.bf16.msra.mxu2 %v8014_v7  ;;  %4995 = vmatpush.bf16.msra.mxu1 %v7870_v1  ;;  %v7806_v7 = vor.u32 %v9447_v0, %v7803_v4  ;;  %v8569_v1 = vld [vmem:[#allocation8 + $0x740] sm:$0xf]  ;;  %v3157_v8 = vpop.f32.mrf.mxu3  ;;  %v9531_v4 = vld [vmem:[#allocation8 + $0x3e4] sm:$0xf]  ;;  %v8238_v62 = vor.u32 %v9555_v48, %v8235_v50  ;;  %v8299_v48 = vld [vmem:[#allocation8 + $0x530] sm:$0xf0] }
 0x254   :  { %4972 = vmatpush.bf16.msra.mxu0 %v8586_v37  ;;  %v8142_v35 = vor.u32 %v9531_v4, %v8139_v47  ;;  %v8382_v37 = vor.u32 %v9591_v39, %v8379_v42  ;;  %v9539_v39 = vld [vmem:[#allocation8 + $0x424] sm:$0xf]  ;;  %v8171_v8 = vld [vmem:[#allocation8 + $0x430] sm:$0xf0] }
 0x255   :  { %4983 = vmatpush.bf16.msrb.mxu3 %v7726_v5  ;;  %v3170_v5 = vpop.f32.mrf.mxu0  ;;  %v8174_v47 = vor.u32 %v9539_v39, %v8171_v8  ;;  %v614_v39 = vperm.slane %v10332_v41, 7 }
 0x256   :  { %v9583_v5 = vld [vmem:[#allocation8 + $0x584] sm:$0xf] }
 0x257   :  { %5008 = vmatpush.bf16.msra.mxu2 %v7998_v15  ;;  %4996 = vmatpush.bf16.msra.mxu1 %v7854_v19  ;;  %v8570_v15 = vor.u32 %v9641_v2, %v8569_v1  ;;  %v7790_v19 = vor.u32 %v9443_v60, %v7787_v61  ;;  %v8123_v60 = vld [vmem:[#allocation8 + $0x3d0] sm:$0xf0]  ;;  %v8366_v2 = vor.u32 %v9587_v54, %v8363_v53 }
 0x258   :  { %v8219_v61 = vld [vmem:[#allocation8 + $0x490] sm:$0xf0] }
 0x259   :  { %4984 = vmatpush.bf16.msrb.mxu3 %v7710_v20  ;;  %4973 = vmatpush.bf16.msra.mxu0 %v8570_v15  ;;  %v7646_v20 = vor.u32 %v9407_v11, %v7643_v12  ;;  %v8347_v12 = vld [vmem:[#allocation8 + $0x590] sm:$0xf0] }
 0x25a   :  { %v8107_v15 = vld [vmem:[#allocation8 + $0x3b0] sm:$0xf0] }
 0x25b   :  { %5009 = vmatpush.bf16.msra.mxu2 %v7982_v45  ;;  %4997 = vmatpush.bf16.msra.mxu1 %v7838_v32  ;;  %v9559_v45 = vld [vmem:[#allocation8 + $0x4c4] sm:$0xf]  ;;  %v8155_v54 = vld [vmem:[#allocation8 + $0x410] sm:$0xf0] }
 0x25c   :  { %v9471_v32 = vld [vmem:[#allocation8 + $0x204] sm:$0xf]  ;;  %v8254_v9 = vor.u32 %v9559_v45, %v8251_v31 }
 0x25d   :  { %4985 = vmatpush.bf16.msrb.mxu3 %v7694_v36  ;;  %v613_v36 = vperm.slane %v10332_v41, 6  ;;  %4974 = vmatpush.bf16.msra.mxu0 %v8554_v25  ;;  %v10362_v43 = vpop.f32.mrf.mxu0  ;;  %v7902_v0 = vor.u32 %v9471_v32, %v7899_v33  ;;  %v3194_v34 = vpop.f32.mrf.mxu1  ;;  %v8334_v25 = vor.u32 %v9579_v49, %v8331_v3  ;;  %v9575_v31 = vld [vmem:[#allocation8 + $0x544] sm:$0xf]  ;;  %v8315_v33 = vld [vmem:[#allocation8 + $0x550] sm:$0xf0] }
 0x25f   :  { %5010 = vmatpush.bf16.msra.mxu2 %v7966_v30  ;;  %4998 = vmatpush.bf16.msra.mxu1 %v7822_v44  ;;  %v9633_v30 = vld [vmem:[#allocation8 + $0x70c] sm:$0xf0]  ;;  %v3183_v44 = vpop.f32.mrf.mxu2 }
 0x260   :  { %v9627_v44 = vld [vmem:[#allocation8 + $0x6e4] sm:$0xf] }
 0x261   :  { %4986 = vmatpush.bf16.msrb.mxu3 %v7678_v55  ;;  %v8538_v55 = vor.u32 %v9633_v30, %v8537_v16 }
 0x263   :  { %5011 = vmatpush.bf16.msra.mxu2 %v7950_v52  ;;  %4999 = vmatpush.bf16.msra.mxu1 %v7806_v7  ;;  %v3143_v52 = vadd.f32 %v10353_v29, %v613_v36  ;;  %v9527_v7 = vld [vmem:[#allocation8 + $0x3c4] sm:$0xf] }
 0x264   :  { %4975 = vmatpush.bf16.msra.mxu0 %v8538_v55  ;;  %v8126_v1 = vor.u32 %v9527_v7, %v8123_v60  ;;  %v9515_v36 = vld [vmem:[#allocation8 + $0x364] sm:$0xf]  ;;  %v7761_v7 = vld [vmem:[#allocation8 + $0xe8] sm:$0xf]  ;;  %v9438_v60 = vld [vmem:[#allocation8 + $0xf4] sm:$0xf0] }
 0x265   :  { %4987 = vmatpush.bf16.msrb.mxu3 %v7662_v28  ;;  %v9551_v28 = vld [vmem:[#allocation8 + $0x484] sm:$0xf]  ;;  %v3156_v29 = vadd.f32 %v10357_v56, %v3143_v52  ;;  %v3222_v63 = vpop.f32.mrf.mxu0  ;;  %v8206_v56 = vor.u32 %v9547_v17, %v8203_v58  ;;  %v3196_v42 = vpop.f32.mrf.mxu1  ;;  %v8059_v52 = vld [vmem:[#allocation8 + $0x350] sm:$0xf0] }
 0x266   :  { %v8222_v11 = vor.u32 %v9551_v28, %v8219_v61  ;;  %v9571_v55 = vld [vmem:[#allocation8 + $0x524] sm:$0xf]  ;;  %v9462_v42 = vld [vmem:[#allocation8 + $0x1b4] sm:$0xf0] }
 0x267   :  { %5012 = vmatpush.bf16.msra.mxu2 %v7934_v14  ;;  %5000 = vmatpush.bf16.msra.mxu1 %v7790_v19  ;;  %v9523_v14 = vld [vmem:[#allocation8 + $0x3a4] sm:$0xf]  ;;  %v3169_v19 = vadd.f32 %v10355_v40, %v3156_v29  ;;  %v8190_v40 = vor.u32 %v9543_v21, %v8187_v27  ;;  %v10373_v50 = vpop.f32.mrf.mxu2  ;;  %v8302_v61 = vor.u32 %v9571_v55, %v8299_v48  ;;  %v8027_v27 = vld [vmem:[#allocation8 + $0x310] sm:$0xf0] }
 0x268   :  { %5020 = vmatpush.bf16.msrb.mxu0 %v8142_v35  ;;  %v8110_v18 = vor.u32 %v9523_v14, %v8107_v15  ;;  %v9511_v35 = vld [vmem:[#allocation8 + $0x344] sm:$0xf]  ;;  %v8283_v14 = vld [vmem:[#allocation8 + $0x510] sm:$0xf0]  ;;  %v7889_v15 = vld [vmem:[#allocation8 + $0x1e8] sm:$0xf] }
 0x269   :  { %4988 = vmatpush.bf16.msrb.mxu3 %v7646_v20  ;;  %v8350_v20 = vor.u32 %v9583_v5, %v8347_v12  ;;  %v9507_v5 = vld [vmem:[#allocation8 + $0x324] sm:$0xf]  ;;  %v7762_v12 = vor.u32 %v9438_v60, %v7761_v7  ;;  %v8443_v60 = vld [vmem:[#allocation8 + $0x650] sm:$0xf0] }
 0x26a   :  { %v9567_v63 = vld [vmem:[#allocation8 + $0x504] sm:$0xf] }
 0x26b   :  { %5013 = vmatpush.bf16.msra.mxu2 %v7918_v57  ;;  %5001 = vmatpush.bf16.msra.mxu1 %v7774_v59  ;;  %v3182_v57 = vadd.f32 %v10359_v6, %v3169_v19  ;;  %v8075_v59 = vld [vmem:[#allocation8 + $0x370] sm:$0xf0]  ;;  %v8318_v6 = vor.u32 %v9575_v31, %v8315_v33  ;;  %v9470_v19 = vld [vmem:[#allocation8 + $0x1f4] sm:$0xf0]  ;;  %v8286_v3 = vor.u32 %v9567_v63, %v8283_v14  ;;  %v9503_v21 = vld [vmem:[#allocation8 + $0x304] sm:$0xf] }
 0x26c   :  { %4989 = vmatmul.bf16.vlgmr.msrb.gmra.mxu3 %v10322_v10  ;;  %5021 = vmatpush.bf16.msrb.mxu0 %v8126_v1  ;;  %v8078_v30 = vor.u32 %v9515_v36, %v8075_v59  ;;  %v9623_v1 = vld [vmem:[#allocation8 + $0x6c4] sm:$0xf]  ;;  %v9466_v31 = vld [vmem:[#allocation8 + $0x1d4] sm:$0xf0]  ;;  %v8030_v33 = vor.u32 %v9503_v21, %v8027_v27  ;;  %v8427_v63 = vld [vmem:[#allocation8 + $0x630] sm:$0xf0] }
 0x26d   :  { %5033 = vmatpush.bf16.msra.mxu3 %v8270_v26  ;;  %v8091_v26 = vld [vmem:[#allocation8 + $0x390] sm:$0xf0]  ;;  %v3195_v32 = vadd.f32 %v3194_v34, %v3182_v57  ;;  %v10370_v16 = vpop.f32.mrf.mxu0  ;;  %v7745_v34 = vld [vmem:[#allocation8 + $0xc8] sm:$0xf]  ;;  %v9615_v59 = vld [vmem:[#allocation8 + $0x684] sm:$0xf] }
 0x26e   :  { %5002 = vmatmul.bf16.vlgmr.msra.gmra.mxu1 %v10328_v22  ;;  %v8094_v45 = vor.u32 %v9519_v24, %v8091_v26  ;;  %v8491_v24 = vld [vmem:[#allocation8 + $0x6b0] sm:$0xf0]  ;;  %v9611_v55 = vld [vmem:[#allocation8 + $0x664] sm:$0xf] }
 0x26f   :  { %5046 = vmatpush.bf16.msrb.mxu1 %v8398_v38  ;;  %5014 = vmatpush.bf16.msra.mxu2 %v7902_v0  ;;  %v3207_v38 = vpop.f32.mrf.mxu3  ;;  %v8523_v0 = vld [vmem:[#allocation8 + $0x6f0] sm:$0xf0]  ;;  %v3235_v26 = vpop.f32.mrf.mxu2  ;;  %v9607_v7 = vld [vmem:[#allocation8 + $0x644] sm:$0xf] }
 0x270   :  { %5022 = vmatpush.bf16.msrb.mxu0 %v8110_v18  ;;  %v8526_v28 = vor.u32 %v9627_v44, %v8523_v0  ;;  %v9426_v44 = vld [vmem:[#allocation8 + $0x94] sm:$0xf0]  ;;  %v8411_v26 = vld [vmem:[#allocation8 + $0x610] sm:$0xf0] }
 0x271   :  { %5034 = vmatpush.bf16.msra.mxu3 %v8254_v9  ;;  %v3208_v9 = vadd.f32 %v3207_v38, %v3195_v32  ;;  %v7729_v32 = vld [vmem:[#allocation8 + $0xa8] sm:$0xf]  ;;  %v8475_v38 = vld [vmem:[#allocation8 + $0x690] sm:$0xf0] }
 0x272   :  { %v8478_v0 = vor.u32 %v9615_v59, %v8475_v38  ;;  %v8273_v38 = vld [vmem:[#allocation8 + $0x4e8] sm:$0xf] }
 0x273   :  { %5047 = vmatpush.bf16.msrb.mxu1 %v8382_v37  ;;  %v3221_v4 = vadd.f32 %v10362_v43, %v3208_v9  ;;  %v9535_v37 = vld [vmem:[#allocation8 + $0x404] sm:$0xf]  ;;  %v7857_v9 = vld [vmem:[#allocation8 + $0x1a8] sm:$0xf] }
 0x274   :  { %5023 = vmatpush.bf16.msrb.mxu0 %v8094_v45  ;;  %v8158_v43 = vor.u32 %v9535_v37, %v8155_v54  ;;  %v7890_v45 = vor.u32 %v9470_v19, %v7889_v15  ;;  %v7858_v41 = vor.u32 %v9462_v42, %v7857_v9  ;;  %v7697_v37 = vld [vmem:[#allocation8 + $0x68] sm:$0xf]  ;;  %v9422_v54 = vld [vmem:[#allocation8 + $0x74] sm:$0xf0] }
 0x275   :  { %5035 = vmatpush.bf16.msra.mxu3 %v8238_v62  ;;  %v8062_v62 = vor.u32 %v9511_v35, %v8059_v52  ;;  %v3321_v53 = vmax.f32 %v3221_v4, 0.0  ;;  %v3248_v58 = vpop.f32.mrf.mxu0  ;;  %v8459_v4 = vld [vmem:[#allocation8 + $0x670] sm:$0xf0]  ;;  %v7841_v35 = vld [vmem:[#allocation8 + $0x188] sm:$0xf] }
 0x276   :  { %v9458_v52 = vld [vmem:[#allocation8 + $0x194] sm:$0xf0]  ;;  %v8001_v42 = vld [vmem:[#allocation8 + $0x2c8] sm:$0xf] }
 0x277   :  { %5048 = vmatpush.bf16.msrb.mxu1 %v8366_v2  ;;  %v10375_v29 = vpack.c.bf16 %v3321_v53, %v3321_v53  ;;  %v8507_v2 = vld [vmem:[#allocation8 + $0x6d0] sm:$0xf0]  ;;  %v3209_v17 = vpop.f32.mrf.mxu3  ;;  %v8462_v53 = vor.u32 %v9611_v55, %v8459_v4  ;;  %v9450_v19 = vld [vmem:[#allocation8 + $0x154] sm:$0xf0] }
 0x278   :  { %5024 = vmatpush.bf16.msrb.mxu0 %v8078_v30  ;;  %v8510_v49 = vor.u32 %v9623_v1, %v8507_v2  ;;  %v7698_v1 = vor.u32 %v9422_v54, %v7697_v37  ;;  %v7681_v2 = vld [vmem:[#allocation8 + $0x48] sm:$0xf]  ;;  %v9562_v54 = vld [vmem:[#allocation8 + $0x4d4] sm:$0xf0] }
 0x279   :  { %5036 = vmatpush.bf16.msra.mxu3 %v8222_v11  ;;  %v8043_v11 = vld [vmem:[#allocation8 + $0x330] sm:$0xf0]  ;;  %4963 = vmatmul.bf16.vlgmr.msrb.gmra.mxu2 %v10375_v29  ;;  %v8257_v37 = vld [vmem:[#allocation8 + $0x4c8] sm:$0xf] }
 0x27a   :  { %v8046_v18 = vor.u32 %v9507_v5, %v8043_v11  ;;  %5059 = vmatpush.bf16.msrb.mxu2 %v8526_v28  ;;  %v9418_v5 = vld [vmem:[#allocation8 + $0x54] sm:$0xf0]  ;;  %v8446_v11 = vor.u32 %v9607_v7, %v8443_v60 }
 0x27b   :  { %5049 = vmatpush.bf16.msrb.mxu1 %v8350_v20  ;;  %v9434_v20 = vld [vmem:[#allocation8 + $0xd4] sm:$0xf0]  ;;  %v7682_v17 = vor.u32 %v9418_v5, %v7681_v2  ;;  %v8258_v2 = vor.u32 %v9562_v54, %v8257_v37 }
 0x27c   :  { %5025 = vmatpush.bf16.msrb.mxu0 %v8062_v62  ;;  %v7746_v57 = vor.u32 %v9434_v20, %v7745_v34  ;;  %v7665_v34 = vld [vmem:[#allocation8 + $0x28] sm:$0xf]  ;;  %v9414_v20 = vld [vmem:[#allocation8 + $0x34] sm:$0xf0] }
 0x27d   :  { %5037 = vmatpush.bf16.msra.mxu3 %v8206_v56  ;;  %v9619_v56 = vld [vmem:[#allocation8 + $0x6a4] sm:$0xf]  ;;  %v9494_v5 = vld [vmem:[#allocation8 + $0x2b4] sm:$0xf0] }
 0x27e   :  { %5060 = vmatpush.bf16.msrb.mxu2 %v8510_v49  ;;  %v8494_v36 = vor.u32 %v9619_v56, %v8491_v24  ;;  %v9599_v24 = vld [vmem:[#allocation8 + $0x604] sm:$0xf] }
 0x27f   :  { %5050 = vmatpush.bf16.msrb.mxu1 %v8334_v25  ;;  %v7873_v25 = vld [vmem:[#allocation8 + $0x1c8] sm:$0xf]  ;;  %v8414_v59 = vor.u32 %v9599_v24, %v8411_v26  ;;  %v9590_v24 = vld [vmem:[#allocation8 + $0x5b4] sm:$0xf0] }
 0x280   :  { %5026 = vmatpush.bf16.msrb.mxu0 %v8046_v18  ;;  %v7874_v8 = vor.u32 %v9466_v31, %v7873_v25  ;;  %v9502_v25 = vld [vmem:[#allocation8 + $0x2f4] sm:$0xf0]  ;;  %v7793_v31 = vld [vmem:[#allocation8 + $0x128] sm:$0xf] }
 0x281   :  { %5038 = vmatpush.bf16.msra.mxu3 %v8190_v40  ;;  %v9430_v40 = vld [vmem:[#allocation8 + $0xb4] sm:$0xf0]  ;;  %v8225_v26 = vld [vmem:[#allocation8 + $0x488] sm:$0xf] }
 0x282   :  { %v7730_v30 = vor.u32 %v9430_v40, %v7729_v32  ;;  %5061 = vmatpush.bf16.msrb.mxu2 %v8494_v36  ;;  %v9446_v40 = vld [vmem:[#allocation8 + $0x134] sm:$0xf0] }
 0x283   :  { %5051 = vmatpush.bf16.msrb.mxu1 %v8318_v6  ;;  %v7713_v6 = vld [vmem:[#allocation8 + $0x88] sm:$0xf]  ;;  %v9410_v36 = vld [vmem:[#allocation8 + $0x14] sm:$0xf0] }
 0x284   :  { %5027 = vmatpush.bf16.msrb.mxu0 %v8030_v33  ;;  %v7714_v48 = vor.u32 %v9426_v44, %v7713_v6  ;;  %v7649_v33 = vld [vmem:[#allocation8 + $0x8] sm:$0xf]  ;;  %v9498_v6 = vld [vmem:[#allocation8 + $0x2d4] sm:$0xf0] }
 0x285   :  { %5039 = vmatpush.bf16.msra.mxu3 %v8174_v47  ;;  %v3234_v47 = vadd.f32 %v10373_v50, %v614_v39  ;;  %v7825_v50 = vld [vmem:[#allocation8 + $0x168] sm:$0xf]  ;;  %v9566_v39 = vld [vmem:[#allocation8 + $0x4f4] sm:$0xf0]  ;;  %v7650_v9 = vor.u32 %v9410_v36, %v7649_v33 }
 0x286   :  { %5062 = vmatpush.bf16.msrb.mxu2 %v8478_v0  ;;  %v8274_v4 = vor.u32 %v9566_v39, %v8273_v38  ;;  %v9486_v33 = vld [vmem:[#allocation8 + $0x274] sm:$0xf0]  ;;  %v8353_v36 = vld [vmem:[#allocation8 + $0x588] sm:$0xf] }
 0x287   :  { %5052 = vmatpush.bf16.msrb.mxu1 %v8302_v61  ;;  %v3259_v62 = vpop.f32.mrf.mxu1  ;;  %v3247_v28 = vadd.f32 %v10370_v16, %v3234_v47  ;;  %v7842_v61 = vor.u32 %v9458_v52, %v7841_v35  ;;  %v7809_v16 = vld [vmem:[#allocation8 + $0x148] sm:$0xf]  ;;  %v9598_v52 = vld [vmem:[#allocation8 + $0x5f4] sm:$0xf0] }
 0x288   :  { %v7810_v27 = vor.u32 %v9450_v19, %v7809_v16  ;;  %v7777_v47 = vld [vmem:[#allocation8 + $0x108] sm:$0xf]  ;;  %v9550_v39 = vld [vmem:[#allocation8 + $0x474] sm:$0xf0] }
 0x289   :  { %5040 = vmatpush.bf16.msra.mxu3 %v8158_v43  ;;  %5015 = vmatmul.bf16.vlgmr.msra.gmra.mxu2 %v10330_v23  ;;  %v9454_v43 = vld [vmem:[#allocation8 + $0x174] sm:$0xf0]  ;;  %v3260_v14 = vadd.f32 %v3259_v62, %v3247_v28  ;;  %v9659_v28 = vld [vmem:[#allocation8 + $0x7e4] sm:$0xf]  ;;  %v8209_v38 = vld [vmem:[#allocation8 + $0x468] sm:$0xf] }
 0x28a   :  { %5063 = vmatpush.bf16.msrb.mxu2 %v8462_v53  ;;  %v7826_v15 = vor.u32 %v9454_v43, %v7825_v50  ;;  %v8002_v53 = vor.u32 %v9498_v6, %v8001_v42  ;;  %v9647_v42 = vld [vmem:[#allocation8 + $0x784] sm:$0xf]  ;;  %v8603_v6 = vld [vmem:[#allocation8 + $0x790] sm:$0xf0] }
 0x28b   :  { %5053 = vmatpush.bf16.msrb.mxu1 %v8286_v3  ;;  %v8606_v54 = vor.u32 %v9647_v42, %v8603_v6 }
 0x28c   :  { %5041 = vmatmul.bf16.vlgmr.msra.gmra.mxu3 %v10347_v46 }
 0x28d   :  { %5085 = vmatpush.bf16.msrb.mxu3 %v7762_v12  ;;  %v9603_v12 = vld [vmem:[#allocation8 + $0x624] sm:$0xf] }
 0x28e   :  { %5054 = vmatmul.bf16.vlgmr.msrb.gmra.mxu1 %v10350_v13  ;;  %5064 = vmatpush.bf16.msrb.mxu2 %v8446_v11  ;;  %v8430_v3 = vor.u32 %v9603_v12, %v8427_v63  ;;  %v8385_v11 = vld [vmem:[#allocation8 + $0x5c8] sm:$0xf]  ;;  %v9594_v12 = vld [vmem:[#allocation8 + $0x5d4] sm:$0xf0] }
 0x28f   :  { %5098 = vmatpush.bf16.msra.mxu1 %v7890_v45  ;;  %v3272_v58 = vpop.f32.mrf.mxu3  ;;  %v3261_v56 = vpop.f32.mrf.mxu1  ;;  %v7666_v45 = vor.u32 %v9414_v20, %v7665_v34  ;;  %v8241_v63 = vld [vmem:[#allocation8 + $0x4a8] sm:$0xf]  ;;  %v8386_v19 = vor.u32 %v9594_v12, %v8385_v11  ;;  %v9542_v12 = vld [vmem:[#allocation8 + $0x434] sm:$0xf0] }
 0x290   :  { %v3273_v49 = vadd.f32 %v3272_v58, %v3260_v14  ;;  %v9558_v14 = vld [vmem:[#allocation8 + $0x4b4] sm:$0xf0]  ;;  %v9655_v58 = vld [vmem:[#allocation8 + $0x7c4] sm:$0xf]  ;;  %v7969_v20 = vld [vmem:[#allocation8 + $0x288] sm:$0xf] }
 0x291   :  { %5086 = vmatpush.bf16.msrb.mxu3 %v7746_v57  ;;  %v3298_v18 = vpop.f32.mrf.mxu0  ;;  %v8017_v57 = vld [vmem:[#allocation8 + $0x2e8] sm:$0xf]  ;;  %v8242_v34 = vor.u32 %v9558_v14, %v8241_v63 }
 0x292   :  { %5065 = vmatpush.bf16.msrb.mxu2 %v8430_v3  ;;  %v8369_v56 = vld [vmem:[#allocation8 + $0x5a8] sm:$0xf] }
 0x293   :  { %5099 = vmatpush.bf16.msra.mxu1 %v7874_v8  ;;  %v8018_v8 = vor.u32 %v9502_v25, %v8017_v57  ;;  %v9651_v57 = vld [vmem:[#allocation8 + $0x7a4] sm:$0xf]  ;;  %v8619_v25 = vld [vmem:[#allocation8 + $0x7b0] sm:$0xf0]  ;;  %v8177_v11 = vld [vmem:[#allocation8 + $0x428] sm:$0xf] }
 0x295   :  { %5087 = vmatpush.bf16.msrb.mxu3 %v7730_v30  ;;  %v3285_v21 = vpop.f32.mrf.mxu2  ;;  %v7794_v30 = vor.u32 %v9446_v40, %v7793_v31  ;;  %v8370_v31 = vor.u32 %v9590_v24, %v8369_v56  ;;  %v7953_v40 = vld [vmem:[#allocation8 + $0x268] sm:$0xf]  ;;  %v9630_v24 = vld [vmem:[#allocation8 + $0x6f4] sm:$0xf0] }
 0x296   :  { %v3286_v32 = vadd.f32 %v3285_v21, %v3273_v49  ;;  %5066 = vmatpush.bf16.msrb.mxu2 %v8414_v59  ;;  %v9490_v49 = vld [vmem:[#allocation8 + $0x294] sm:$0xf0]  ;;  %v8529_v56 = vld [vmem:[#allocation8 + $0x6e8] sm:$0xf] }
 0x297   :  { %5100 = vmatpush.bf16.msra.mxu1 %v7858_v41  ;;  %v3274_v44 = vpop.f32.mrf.mxu3  ;;  %v9442_v41 = vld [vmem:[#allocation8 + $0x114] sm:$0xf0]  ;;  %v3311_v35 = vpop.f32.mrf.mxu1 }
 0x298   :  { %v3299_v55 = vadd.f32 %v3298_v18, %v3286_v32  ;;  %v7778_v60 = vor.u32 %v9442_v41, %v7777_v47  ;;  %v8635_v18 = vld [vmem:[#allocation8 + $0x7d0] sm:$0xf0]  ;;  %v9554_v21 = vld [vmem:[#allocation8 + $0x494] sm:$0xf0]  ;;  %v8337_v47 = vld [vmem:[#allocation8 + $0x568] sm:$0xf] }
 0x299   :  { %5088 = vmatpush.bf16.msrb.mxu3 %v7714_v48  ;;  %v3300_v0 = vpop.f32.mrf.mxu0  ;;  %v8401_v48 = vld [vmem:[#allocation8 + $0x5e8] sm:$0xf]  ;;  %5067 = vmatmul.bf16.vlgmr.msrb.gmra.mxu2 %v10375_v29  ;;  %v8226_v32 = vor.u32 %v9554_v21, %v8225_v26  ;;  %v9586_v59 = vld [vmem:[#allocation8 + $0x594] sm:$0xf0] }
 0x29a   :  { %5111 = vmatpush.bf16.msra.mxu2 %v8018_v8  ;;  %v3312_v62 = vadd.f32 %v3311_v35, %v3299_v55  ;;  %v8402_v43 = vor.u32 %v9598_v52, %v8401_v48  ;;  %v8622_v8 = vor.u32 %v9651_v57, %v8619_v25  ;;  %v8354_v44 = vor.u32 %v9586_v59, %v8353_v36  ;;  %v7937_v55 = vld [vmem:[#allocation8 + $0x248] sm:$0xf]  ;;  %v9582_v41 = vld [vmem:[#allocation8 + $0x574] sm:$0xf0] }
 0x29b   :  { %5101 = vmatpush.bf16.msra.mxu1 %v7842_v61  ;;  %v8651_v61 = vld [vmem:[#allocation8 + $0x7f0] sm:$0xf0]  ;;  %v8210_v0 = vor.u32 %v9550_v39, %v8209_v38  ;;  %v8193_v48 = vld [vmem:[#allocation8 + $0x448] sm:$0xf]  ;;  %v9546_v35 = vld [vmem:[#allocation8 + $0x454] sm:$0xf0]  ;;  %v8530_v59 = vor.u32 %v9630_v24, %v8529_v56 }
 0x29c   :  { %v3322_v50 = vmax.f32 %v3312_v62, 0.0  ;;  %v8305_v26 = vld [vmem:[#allocation8 + $0x528] sm:$0xf]  ;;  %v9574_v21 = vld [vmem:[#allocation8 + $0x534] sm:$0xf0] }
 0x29d   :  { %5089 = vmatpush.bf16.msrb.mxu3 %v7698_v1  ;;  %v3287_v7 = vpop.f32.mrf.mxu2  ;;  %v7985_v1 = vld [vmem:[#allocation8 + $0x2a8] sm:$0xf]  ;;  %v8306_v38 = vor.u32 %v9574_v21, %v8305_v26  ;;  %v9436_v39 = vld [vmem:[#allocation8 + $0xec] sm:$0xf]  ;;  %v7859_v24 = vld [vmem:[#allocation8 + $0x1b8] sm:$0xf0] }
 0x29e   :  { %5112 = vmatpush.bf16.msra.mxu2 %v8002_v53  ;;  %v7986_v16 = vor.u32 %v9494_v5, %v7985_v1  ;;  %v9643_v53 = vld [vmem:[#allocation8 + $0x764] sm:$0xf]  ;;  %v8587_v7 = vld [vmem:[#allocation8 + $0x770] sm:$0xf0]  ;;  %v7921_v1 = vld [vmem:[#allocation8 + $0x228] sm:$0xf] }
 0x29f   :  { %5102 = vmatpush.bf16.msra.mxu1 %v7826_v15  ;;  %v10385_v15 = vpack.c.bf16 %v3322_v50, %v3322_v50  ;;  %v3313_v3 = vpop.f32.mrf.mxu1  ;;  %v9478_v50 = vld [vmem:[#allocation8 + $0x234] sm:$0xf0]  ;;  %v8590_v14 = vor.u32 %v9643_v53, %v8587_v7  ;;  %v8161_v25 = vld [vmem:[#allocation8 + $0x408] sm:$0xf]  ;;  %v7747_v53 = vld [vmem:[#allocation8 + $0xd8] sm:$0xf0] }
 0x2a0   :  { %v9578_v5 = vld [vmem:[#allocation8 + $0x554] sm:$0xf0]  ;;  %v8145_v7 = vld [vmem:[#allocation8 + $0x3e8] sm:$0xf]  ;;  %v9424_v26 = vld [vmem:[#allocation8 + $0x8c] sm:$0xf] }
 0x2a1   :  { %5090 = vmatpush.bf16.msrb.mxu3 %v7682_v17  ;;  %v8654_v17 = vor.u32 %v9659_v28, %v8651_v61  ;;  %4976 = vmatmul.bf16.vlgmr.msra.gmra.mxu0 %v10385_v15  ;;  %v8338_v28 = vor.u32 %v9582_v41, %v8337_v47  ;;  %v8194_v61 = vor.u32 %v9546_v35, %v8193_v48  ;;  %v9570_v47 = vld [vmem:[#allocation8 + $0x514] sm:$0xf0]  ;;  %v9468_v41 = vld [vmem:[#allocation8 + $0x1ec] sm:$0xf]  ;;  %v7891_v48 = vld [vmem:[#allocation8 + $0x1f8] sm:$0xf0] }
 0x2a2   :  { %5113 = vmatpush.bf16.msra.mxu2 %v7986_v16  ;;  %v9639_v16 = vld [vmem:[#allocation8 + $0x744] sm:$0xf] }
 0x2a3   :  { %5103 = vmatpush.bf16.msra.mxu1 %v7810_v27  ;;  %5072 = vmatpush.bf16.msra.mxu0 %v8654_v17  ;;  %v8638_v27 = vor.u32 %v9655_v58, %v8635_v18  ;;  %v7922_v17 = vor.u32 %v9478_v50, %v7921_v1  ;;  %v8571_v58 = vld [vmem:[#allocation8 + $0x750] sm:$0xf0]  ;;  %v8497_v1 = vld [vmem:[#allocation8 + $0x6a8] sm:$0xf]  ;;  %v9622_v50 = vld [vmem:[#allocation8 + $0x6b4] sm:$0xf0] }
 0x2a4   :  { %v8574_v57 = vor.u32 %v9639_v16, %v8571_v58  ;;  %v7731_v16 = vld [vmem:[#allocation8 + $0xb8] sm:$0xf0]  ;;  %v8129_v58 = vld [vmem:[#allocation8 + $0x3c8] sm:$0xf] }
 0x2a5   :  { %5091 = vmatpush.bf16.msrb.mxu3 %v7666_v45  ;;  %v7970_v45 = vor.u32 %v9490_v49, %v7969_v20  ;;  %v7905_v20 = vld [vmem:[#allocation8 + $0x208] sm:$0xf]  ;;  %v9474_v49 = vld [vmem:[#allocation8 + $0x214] sm:$0xf0] }
 0x2a7   :  { %5104 = vmatpush.bf16.msra.mxu1 %v7794_v30  ;;  %5073 = vmatpush.bf16.msra.mxu0 %v8638_v27  ;;  %v7954_v30 = vor.u32 %v9486_v33, %v7953_v40  ;;  %v9635_v40 = vld [vmem:[#allocation8 + $0x724] sm:$0xf]  ;;  %v8555_v33 = vld [vmem:[#allocation8 + $0x730] sm:$0xf0] }
 0x2a8   :  { %5114 = vmatpush.bf16.msra.mxu2 %v7970_v45 }
 0x2a9   :  { %5092 = vmatpush.bf16.msrb.mxu3 %v7650_v9  ;;  %v10390_v9 = vld [vmem:[#allocation10] sm:$0xf] }
 0x2aa   :  { %v3589_v37 = vperm.slane %v10390_v9, 0 }
 0x2ab   :  { %5105 = vmatpush.bf16.msra.mxu1 %v7778_v60  ;;  %5074 = vmatpush.bf16.msra.mxu0 %v8622_v8  ;;  %v4899_v52 = vpop.f32.mrf.mxu1  ;;  %v7763_v8 = vld [vmem:[#allocation8 + $0xf8] sm:$0xf0] }
 0x2ac   :  { %5093 = vmatmul.bf16.vlgmr.msrb.gmra.mxu3 %v10322_v10  ;;  %5115 = vmatpush.bf16.msra.mxu2 %v7954_v30  ;;  %v7766_v35 = vor.u32 %v9436_v39, %v7763_v8  ;;  %v7699_v8 = vld [vmem:[#allocation8 + $0x78] sm:$0xf0] }
 0x2ad   :  { %5137 = vmatpush.bf16.msra.mxu3 %v8274_v4  ;;  %v9482_v4 = vld [vmem:[#allocation8 + $0x254] sm:$0xf0] }
 0x2ae   :  { %5106 = vmatmul.bf16.vlgmr.msra.gmra.mxu1 %v10328_v22  ;;  %v7938_v62 = vor.u32 %v9482_v4, %v7937_v55  ;;  %v8289_v55 = vld [vmem:[#allocation8 + $0x508] sm:$0xf]  ;;  %v8558_v4 = vor.u32 %v9635_v40, %v8555_v33 }
 0x2af   :  { %5150 = vmatpush.bf16.msrb.mxu1 %v8402_v43  ;;  %v8321_v43 = vld [vmem:[#allocation8 + $0x548] sm:$0xf]  ;;  %5075 = vmatpush.bf16.msra.mxu0 %v8606_v54  ;;  %v9432_v54 = vld [vmem:[#allocation8 + $0xcc] sm:$0xf] }
 0x2b0   :  { %5116 = vmatpush.bf16.msra.mxu2 %v7938_v62 }
 0x2b1   :  { %5138 = vmatpush.bf16.msra.mxu3 %v8258_v2  ;;  %v4925_v60 = vpop.f32.mrf.mxu0  ;;  %v4886_v2 = vpop.f32.mrf.mxu3  ;;  %5028 = vmatmul.bf16.vlgmr.msrb.gmra.mxu0 %v10335_v51 }
 0x2b2   :  { %v4887_v63 = vadd.f32 %v4886_v2, %v3589_v37  ;;  %v8539_v37 = vld [vmem:[#allocation8 + $0x710] sm:$0xf0] }
 0x2b3   :  { %5151 = vmatpush.bf16.msrb.mxu1 %v8386_v19  ;;  %v8322_v19 = vor.u32 %v9578_v5, %v8321_v43  ;;  %5076 = vmatpush.bf16.msra.mxu0 %v8590_v14  ;;  %v4901_v45 = vpop.f32.mrf.mxu1  ;;  %v7894_v43 = vor.u32 %v9468_v41, %v7891_v48  ;;  %v7750_v5 = vor.u32 %v9432_v54, %v7747_v53  ;;  %v9428_v14 = vld [vmem:[#allocation8 + $0xac] sm:$0xf]  ;;  %v7827_v48 = vld [vmem:[#allocation8 + $0x178] sm:$0xf0]  ;;  %v8081_v54 = vld [vmem:[#allocation8 + $0x368] sm:$0xf] }
 0x2b4   :  { %v4900_v18 = vadd.f32 %v4899_v52, %v4887_v63  ;;  %5117 = vmatpush.bf16.msra.mxu2 %v7922_v17  ;;  %v9631_v52 = vld [vmem:[#allocation8 + $0x704] sm:$0xf]  ;;  %v7875_v63 = vld [vmem:[#allocation8 + $0x1d8] sm:$0xf0]  ;;  %v8498_v17 = vor.u32 %v9622_v50, %v8497_v1  ;;  %v8113_v45 = vld [vmem:[#allocation8 + $0x3a8] sm:$0xf] }
 0x2b5   :  { %5139 = vmatpush.bf16.msra.mxu3 %v8242_v34  ;;  %v8178_v34 = vor.u32 %v9542_v12, %v8177_v11  ;;  %v4912_v3 = vpop.f32.mrf.mxu2  ;;  %v8542_v2 = vor.u32 %v9631_v52, %v8539_v37  ;;  %v9464_v12 = vld [vmem:[#allocation8 + $0x1cc] sm:$0xf]  ;;  %v7683_v37 = vld [vmem:[#allocation8 + $0x58] sm:$0xf0]  ;;  %v8433_v53 = vld [vmem:[#allocation8 + $0x628] sm:$0xf] }
 0x2b6   :  { %v4913_v27 = vadd.f32 %v4912_v3, %v4900_v18  ;;  %v9530_v18 = vld [vmem:[#allocation8 + $0x3d4] sm:$0xf0]  ;;  %v9460_v3 = vld [vmem:[#allocation8 + $0x1ac] sm:$0xf] }
 0x2b7   :  { %5152 = vmatpush.bf16.msrb.mxu1 %v8370_v31  ;;  %v9538_v31 = vld [vmem:[#allocation8 + $0x414] sm:$0xf0]  ;;  %5077 = vmatpush.bf16.msra.mxu0 %v8574_v57  ;;  %v8130_v56 = vor.u32 %v9530_v18, %v8129_v58  ;;  %v9452_v41 = vld [vmem:[#allocation8 + $0x16c] sm:$0xf]  ;;  %v8417_v58 = vld [vmem:[#allocation8 + $0x608] sm:$0xf] }
 0x2b8   :  { %v10394_v30 = vadd.f32 %v4925_v60, %v4913_v27  ;;  %v8162_v6 = vor.u32 %v9538_v31, %v8161_v25  ;;  %v9534_v60 = vld [vmem:[#allocation8 + $0x3f4] sm:$0xf0]  ;;  %v7715_v27 = vld [vmem:[#allocation8 + $0x98] sm:$0xf0]  ;;  %v8465_v25 = vld [vmem:[#allocation8 + $0x668] sm:$0xf] }
 0x2b9   :  { %5140 = vmatpush.bf16.msra.mxu3 %v8226_v32  ;;  %v7906_v32 = vor.u32 %v9474_v49, %v7905_v20  ;;  %v4927_v36 = vpop.f32.mrf.mxu0  ;;  %v4888_v42 = vpop.f32.mrf.mxu3  ;;  %v8146_v11 = vor.u32 %v9534_v60, %v8145_v7  ;;  %v7878_v20 = vor.u32 %v9464_v12, %v7875_v63  ;;  %v7734_v49 = vor.u32 %v9428_v14, %v7731_v16  ;;  %v9526_v57 = vld [vmem:[#allocation8 + $0x3b4] sm:$0xf0]  ;;  %v7667_v63 = vld [vmem:[#allocation8 + $0x38] sm:$0xf0]  ;;  %v8065_v14 = vld [vmem:[#allocation8 + $0x348] sm:$0xf] }
 0x2ba   :  { %v9614_v31 = vld [vmem:[#allocation8 + $0x674] sm:$0xf0]  ;;  %v7718_v40 = vor.u32 %v9424_v26, %v7715_v27  ;;  %v8114_v33 = vor.u32 %v9526_v57, %v8113_v45  ;;  %v9456_v36 = vld [vmem:[#allocation8 + $0x18c] sm:$0xf]  ;;  %v8097_v42 = vld [vmem:[#allocation8 + $0x388] sm:$0xf] }
 0x2bb   :  { %5153 = vmatpush.bf16.msrb.mxu1 %v8354_v44  ;;  %v8513_v44 = vld [vmem:[#allocation8 + $0x6c8] sm:$0xf]  ;;  %5118 = vmatpush.bf16.msra.mxu2 %v7906_v32  ;;  %v7862_v32 = vor.u32 %v9460_v3, %v7859_v24  ;;  %v8466_v39 = vor.u32 %v9614_v31, %v8465_v25  ;;  %v9606_v7 = vld [vmem:[#allocation8 + $0x634] sm:$0xf0]  ;;  %v7795_v3 = vld [vmem:[#allocation8 + $0x138] sm:$0xf0] }
 0x2bc   :  { %5078 = vmatpush.bf16.msra.mxu0 %v8558_v4  ;;  %v8434_v12 = vor.u32 %v9606_v7, %v8433_v53  ;;  %v9602_v18 = vld [vmem:[#allocation8 + $0x614] sm:$0xf0]  ;;  %v9408_v26 = vld [vmem:[#allocation8 + $0xc] sm:$0xf]  ;;  %v8049_v27 = vld [vmem:[#allocation8 + $0x328] sm:$0xf] }
 0x2bd   :  { %5141 = vmatpush.bf16.msra.mxu3 %v8210_v0  ;;  %v9626_v0 = vld [vmem:[#allocation8 + $0x6d4] sm:$0xf0]  ;;  %v8418_v24 = vor.u32 %v9602_v18, %v8417_v58  ;;  %v9564_v25 = vld [vmem:[#allocation8 + $0x4ec] sm:$0xf]  ;;  %v8275_v31 = vld [vmem:[#allocation8 + $0x4f8] sm:$0xf0] }
 0x2be   :  { %v8514_v62 = vor.u32 %v9626_v0, %v8513_v44  ;;  %5119 = vmatmul.bf16.vlgmr.msra.gmra.mxu2 %v10330_v23  ;;  %v8449_v44 = vld [vmem:[#allocation8 + $0x648] sm:$0xf]  ;;  %v9610_v0 = vld [vmem:[#allocation8 + $0x654] sm:$0xf0]  ;;  %v7987_v53 = vld [vmem:[#allocation8 + $0x2b8] sm:$0xf0] }
 0x2bf   :  { %5154 = vmatpush.bf16.msrb.mxu1 %v8338_v28  ;;  %5163 = vmatpush.bf16.msrb.mxu2 %v8530_v59  ;;  %v4914_v28 = vpop.f32.mrf.mxu2  ;;  %v7843_v59 = vld [vmem:[#allocation8 + $0x198] sm:$0xf0]  ;;  %v8450_v52 = vor.u32 %v9610_v0, %v8449_v44  ;;  %v9510_v57 = vld [vmem:[#allocation8 + $0x334] sm:$0xf0]  ;;  %v9596_v44 = vld [vmem:[#allocation8 + $0x5ec] sm:$0xf] }
 0x2c0   :  { %5079 = vmatpush.bf16.msra.mxu0 %v8542_v2  ;;  %v9448_v2 = vld [vmem:[#allocation8 + $0x14c] sm:$0xf]  ;;  %v8403_v0 = vld [vmem:[#allocation8 + $0x5f8] sm:$0xf0] }
 0x2c1   :  { %5142 = vmatpush.bf16.msra.mxu3 %v8194_v61  ;;  %v8290_v61 = vor.u32 %v9570_v47, %v8289_v55  ;;  %v7846_v55 = vor.u32 %v9456_v36, %v7843_v59  ;;  %v9496_v36 = vld [vmem:[#allocation8 + $0x2cc] sm:$0xf]  ;;  %v8003_v59 = vld [vmem:[#allocation8 + $0x2d8] sm:$0xf0] }
 0x2c2   :  { %v9588_v58 = vld [vmem:[#allocation8 + $0x5ac] sm:$0xf]  ;;  %v8371_v18 = vld [vmem:[#allocation8 + $0x5b8] sm:$0xf0] }
 0x2c3   :  { %5155 = vmatpush.bf16.msrb.mxu1 %v8322_v19  ;;  %5164 = vmatpush.bf16.msrb.mxu2 %v8514_v62  ;;  %v8481_v19 = vld [vmem:[#allocation8 + $0x688] sm:$0xf]  ;;  %v9518_v62 = vld [vmem:[#allocation8 + $0x374] sm:$0xf0] }
 0x2c4   :  { %5124 = vmatpush.bf16.msrb.mxu0 %v8146_v11  ;;  %v9412_v11 = vld [vmem:[#allocation8 + $0x2c] sm:$0xf] }
 0x2c5   :  { %5143 = vmatpush.bf16.msra.mxu3 %v8178_v34  ;;  %v9618_v34 = vld [vmem:[#allocation8 + $0x694] sm:$0xf0]  ;;  %5080 = vmatmul.bf16.vlgmr.msra.gmra.mxu0 %v10385_v15 }
 0x2c6   :  { %v8482_v21 = vor.u32 %v9618_v34, %v8481_v19  ;;  %v9500_v34 = vld [vmem:[#allocation8 + $0x2ec] sm:$0xf] }
 0x2c7   :  { %5156 = vmatpush.bf16.msrb.mxu1 %v8306_v38  ;;  %5165 = vmatpush.bf16.msrb.mxu2 %v8498_v17  ;;  %v9420_v38 = vld [vmem:[#allocation8 + $0x6c] sm:$0xf]  ;;  %v9514_v17 = vld [vmem:[#allocation8 + $0x354] sm:$0xf0] }
 0x2c8   :  { %5125 = vmatpush.bf16.msrb.mxu0 %v8130_v56  ;;  %v7702_v4 = vor.u32 %v9420_v38, %v7699_v8  ;;  %v9444_v56 = vld [vmem:[#allocation8 + $0x12c] sm:$0xf]  ;;  %v7779_v8 = vld [vmem:[#allocation8 + $0x118] sm:$0xf0] }
 0x2c9   :  { %5144 = vmatpush.bf16.msra.mxu3 %v8162_v6  ;;  %v9522_v6 = vld [vmem:[#allocation8 + $0x394] sm:$0xf0] }
 0x2ca   :  { %v8098_v47 = vor.u32 %v9522_v6, %v8097_v42  ;;  %v8050_v42 = vor.u32 %v9510_v57, %v8049_v27  ;;  %v8278_v6 = vor.u32 %v9564_v25, %v8275_v31  ;;  %v8355_v27 = vld [vmem:[#allocation8 + $0x598] sm:$0xf0]  ;;  %v8609_v31 = vld [vmem:[#allocation8 + $0x788] sm:$0xf] }
 0x2cb   :  { %5157 = vmatpush.bf16.msrb.mxu1 %v8290_v61  ;;  %5166 = vmatpush.bf16.msrb.mxu2 %v8482_v21  ;;  %v4951_v28 = vpop.f32.mrf.mxu1  ;;  %v7830_v61 = vor.u32 %v9452_v41, %v7827_v48  ;;  %v7651_v21 = vld [vmem:[#allocation8 + $0x18] sm:$0xf0]  ;;  %v9560_v41 = vld [vmem:[#allocation8 + $0x4cc] sm:$0xf] }
 0x2cc   :  { %5145 = vmatmul.bf16.vlgmr.msra.gmra.mxu3 %v10347_v46  ;;  %5126 = vmatpush.bf16.msrb.mxu0 %v8114_v33  ;;  %v7798_v33 = vor.u32 %v9444_v56, %v7795_v3  ;;  %v7654_v38 = vor.u32 %v9408_v26, %v7651_v21  ;;  %v8259_v48 = vld [vmem:[#allocation8 + $0x4d8] sm:$0xf0]  ;;  %v8374_v56 = vor.u32 %v9588_v58, %v8371_v18  ;;  %v9484_v3 = vld [vmem:[#allocation8 + $0x26c] sm:$0xf] }
 0x2cd   :  { %5189 = vmatpush.bf16.msrb.mxu3 %v7766_v35  ;;  %v9416_v35 = vld [vmem:[#allocation8 + $0x4c] sm:$0xf]  ;;  %v8211_v57 = vld [vmem:[#allocation8 + $0x478] sm:$0xf0] }
 0x2ce   :  { %5158 = vmatmul.bf16.vlgmr.msrb.gmra.mxu1 %v10350_v13  ;;  %v7686_v50 = vor.u32 %v9416_v35, %v7683_v37  ;;  %v9662_v37 = vld [vmem:[#allocation8 + $0x7f4] sm:$0xf0]  ;;  %v9584_v21 = vld [vmem:[#allocation8 + $0x58c] sm:$0xf]  ;;  %v8307_v58 = vld [vmem:[#allocation8 + $0x538] sm:$0xf0] }
 0x2cf   :  { %5202 = vmatpush.bf16.msra.mxu1 %v7894_v43  ;;  %5167 = vmatpush.bf16.msrb.mxu2 %v8466_v39  ;;  %v4938_v60 = vpop.f32.mrf.mxu3  ;;  %v8082_v43 = vor.u32 %v9518_v62, %v8081_v54  ;;  %v9440_v39 = vld [vmem:[#allocation8 + $0x10c] sm:$0xf]  ;;  %v8406_v54 = vor.u32 %v9596_v44, %v8403_v0  ;;  %v8195_v0 = vld [vmem:[#allocation8 + $0x458] sm:$0xf0] }
 0x2d0   :  { %v4939_v1 = vadd.f32 %v4938_v60, %v10394_v30  ;;  %5127 = vmatpush.bf16.msrb.mxu0 %v8098_v47  ;;  %v7670_v30 = vor.u32 %v9412_v11, %v7667_v63  ;;  %v9506_v47 = vld [vmem:[#allocation8 + $0x314] sm:$0xf0]  ;;  %v7782_v35 = vor.u32 %v9440_v39, %v7779_v8  ;;  %v9492_v62 = vld [vmem:[#allocation8 + $0x2ac] sm:$0xf]  ;;  %v8262_v60 = vor.u32 %v9560_v41, %v8259_v48 }
 0x2d1   :  { %5190 = vmatpush.bf16.msrb.mxu3 %v7750_v5  ;;  %v7811_v5 = vld [vmem:[#allocation8 + $0x158] sm:$0xf0]  ;;  %v9658_v11 = vld [vmem:[#allocation8 + $0x7d4] sm:$0xf0]  ;;  %v9488_v63 = vld [vmem:[#allocation8 + $0x28c] sm:$0xf] }
 0x2d2   :  { %v10401_v16 = vadd.f32 %v4951_v28, %v4939_v1  ;;  %v7814_v19 = vor.u32 %v9448_v2, %v7811_v5  ;;  %v9592_v28 = vld [vmem:[#allocation8 + $0x5cc] sm:$0xf]  ;;  %v7990_v2 = vor.u32 %v9492_v62, %v7987_v53  ;;  %v8641_v5 = vld [vmem:[#allocation8 + $0x7c8] sm:$0xf]  ;;  %v3590_v39 = vperm.slane %v10390_v9, 1 }
 0x2d3   :  { %5203 = vmatpush.bf16.msra.mxu1 %v7878_v20  ;;  %5168 = vmatpush.bf16.msrb.mxu2 %v8450_v52  ;;  %v8019_v20 = vld [vmem:[#allocation8 + $0x2f8] sm:$0xf0]  ;;  %v8657_v52 = vld [vmem:[#allocation8 + $0x7e8] sm:$0xf]  ;;  %v9580_v8 = vld [vmem:[#allocation8 + $0x56c] sm:$0xf] }
 0x2d4   :  { %5128 = vmatpush.bf16.msrb.mxu0 %v8082_v43  ;;  %v8022_v45 = vor.u32 %v9500_v34, %v8019_v20  ;;  %v8658_v1 = vor.u32 %v9662_v37, %v8657_v52  ;;  %v8243_v43 = vld [vmem:[#allocation8 + $0x4b8] sm:$0xf0]  ;;  %v9552_v34 = vld [vmem:[#allocation8 + $0x48c] sm:$0xf] }
 0x2d5   :  { %5191 = vmatpush.bf16.msrb.mxu3 %v7734_v49  ;;  %v8066_v49 = vor.u32 %v9514_v17, %v8065_v14  ;;  %v7971_v14 = vld [vmem:[#allocation8 + $0x298] sm:$0xf0]  ;;  %v9544_v44 = vld [vmem:[#allocation8 + $0x44c] sm:$0xf] }
 0x2d6   :  { %v8227_v20 = vld [vmem:[#allocation8 + $0x498] sm:$0xf0]  ;;  %v9576_v62 = vld [vmem:[#allocation8 + $0x54c] sm:$0xf] }
 0x2d7   :  { %5204 = vmatpush.bf16.msra.mxu1 %v7862_v32  ;;  %5169 = vmatpush.bf16.msrb.mxu2 %v8434_v12  ;;  %v4940_v32 = vpop.f32.mrf.mxu3  ;;  %v8230_v26 = vor.u32 %v9552_v34, %v8227_v20  ;;  %v7923_v52 = vld [vmem:[#allocation8 + $0x238] sm:$0xf0] }
 0x2d8   :  { %5129 = vmatpush.bf16.msrb.mxu0 %v8066_v49  ;;  %v9654_v49 = vld [vmem:[#allocation8 + $0x7b4] sm:$0xf0]  ;;  %v8323_v9 = vld [vmem:[#allocation8 + $0x558] sm:$0xf0] }
 0x2d9   :  { %5192 = vmatpush.bf16.msrb.mxu3 %v7718_v40  ;;  %v4953_v40 = vpop.f32.mrf.mxu1  ;;  %v9650_v32 = vld [vmem:[#allocation8 + $0x794] sm:$0xf0]  ;;  %v8163_v34 = vld [vmem:[#allocation8 + $0x418] sm:$0xf0] }
 0x2da   :  { %v8358_v40 = vor.u32 %v9584_v21, %v8355_v27  ;;  %v9624_v27 = vld [vmem:[#allocation8 + $0x6cc] sm:$0xf] }
 0x2db   :  { %5205 = vmatpush.bf16.msra.mxu1 %v7846_v55  ;;  %5170 = vmatpush.bf16.msrb.mxu2 %v8418_v24  ;;  %v8033_v55 = vld [vmem:[#allocation8 + $0x308] sm:$0xf]  ;;  %v7955_v24 = vld [vmem:[#allocation8 + $0x278] sm:$0xf0] }
 0x2dc   :  { %5130 = vmatpush.bf16.msrb.mxu0 %v8050_v42  ;;  %v8034_v7 = vor.u32 %v9506_v47, %v8033_v55  ;;  %v7958_v25 = vor.u32 %v9484_v3, %v7955_v24  ;;  %v8339_v42 = vld [vmem:[#allocation8 + $0x578] sm:$0xf0]  ;;  %v9646_v47 = vld [vmem:[#allocation8 + $0x774] sm:$0xf0]  ;;  %v8721_v24 = vld [vmem:[#allocation11 + $0x70] sm:$0xf] }
 0x2dd   :  { %5193 = vmatpush.bf16.msrb.mxu3 %v7702_v4  ;;  %v8006_v4 = vor.u32 %v9496_v36, %v8003_v59  ;;  %v7939_v36 = vld [vmem:[#allocation8 + $0x258] sm:$0xf0]  ;;  %v8342_v48 = vor.u32 %v9580_v8, %v8339_v42  ;;  %v9620_v42 = vld [vmem:[#allocation8 + $0x6ac] sm:$0xf] }
 0x2de   :  { %5171 = vmatmul.bf16.vlgmr.msrb.gmra.mxu2 %v10375_v29 }
 0x2df   :  { %5206 = vmatpush.bf16.msra.mxu1 %v7830_v61  ;;  %5215 = vmatpush.bf16.msra.mxu2 %v8022_v45  ;;  %v8387_v61 = vld [vmem:[#allocation8 + $0x5d8] sm:$0xf0] }
 0x2e0   :  { %v8390_v12 = vor.u32 %v9592_v28, %v8387_v61  ;;  %5131 = vmatpush.bf16.msrb.mxu0 %v8034_v7  ;;  %v9540_v7 = vld [vmem:[#allocation8 + $0x42c] sm:$0xf]  ;;  %v8577_v61 = vld [vmem:[#allocation8 + $0x748] sm:$0xf] }
 0x2e1   :  { %5194 = vmatpush.bf16.msrb.mxu3 %v7686_v50  ;;  %v9556_v50 = vld [vmem:[#allocation8 + $0x4ac] sm:$0xf] }
 0x2e2   :  { %v8246_v17 = vor.u32 %v9556_v50, %v8243_v43  ;;  %v8326_v43 = vor.u32 %v9576_v62, %v8323_v9  ;;  %v9524_v62 = vld [vmem:[#allocation8 + $0x3ac] sm:$0xf] }
 0x2e3   :  { %5207 = vmatpush.bf16.msra.mxu1 %v7814_v19  ;;  %5216 = vmatpush.bf16.msra.mxu2 %v8006_v4  ;;  %v8642_v19 = vor.u32 %v9658_v11, %v8641_v5  ;;  %v8593_v4 = vld [vmem:[#allocation8 + $0x768] sm:$0xf]  ;;  %v7907_v5 = vld [vmem:[#allocation8 + $0x218] sm:$0xf0]  ;;  %v9628_v11 = vld [vmem:[#allocation8 + $0x6ec] sm:$0xf] }
 0x2e4   :  { %5176 = vmatpush.bf16.msra.mxu0 %v8658_v1  ;;  %v8594_v53 = vor.u32 %v9646_v47, %v8593_v4  ;;  %v9642_v1 = vld [vmem:[#allocation8 + $0x754] sm:$0xf0] }
 0x2e5   :  { %5195 = vmatpush.bf16.msrb.mxu3 %v7670_v30  ;;  %v8625_v30 = vld [vmem:[#allocation8 + $0x7a8] sm:$0xf]  ;;  %5132 = vmatmul.bf16.vlgmr.msrb.gmra.mxu0 %v10335_v51  ;;  %v8578_v18 = vor.u32 %v9642_v1, %v8577_v61  ;;  %v9612_v1 = vld [vmem:[#allocation8 + $0x66c] sm:$0xf] }
 0x2e6   :  { %v8626_v45 = vor.u32 %v9654_v49, %v8625_v30  ;;  %v9638_v30 = vld [vmem:[#allocation8 + $0x734] sm:$0xf0] }
 0x2e7   :  { %5208 = vmatpush.bf16.msra.mxu1 %v7798_v33  ;;  %5217 = vmatpush.bf16.msra.mxu2 %v7990_v2  ;;  %v9480_v33 = vld [vmem:[#allocation8 + $0x24c] sm:$0xf] }
 0x2e8   :  { %5177 = vmatpush.bf16.msra.mxu0 %v8642_v19  ;;  %v7942_v55 = vor.u32 %v9480_v33, %v7939_v36  ;;  %v9472_v2 = vld [vmem:[#allocation8 + $0x20c] sm:$0xf] }
 0x2e9   :  { %5196 = vmatpush.bf16.msrb.mxu3 %v7654_v38  ;;  %v9536_v19 = vld [vmem:[#allocation8 + $0x40c] sm:$0xf]  ;;  %v7910_v20 = vor.u32 %v9472_v2, %v7907_v5  ;;  %v8777_v2 = vld [vmem:[#allocation11 + $0xe0] sm:$0xf] }
 0x2ea   :  { %v8166_v21 = vor.u32 %v9536_v19, %v8163_v34  ;;  %v9692_v5 = vld [vmem:[#allocation11 + $0xe4] sm:$0xf0]  ;;  %v9670_v19 = vld [vmem:[#allocation11 + $0x34] sm:$0xf0] }
 0x2eb   :  { %5209 = vmatpush.bf16.msra.mxu1 %v7782_v35  ;;  %v5003_v59 = vpop.f32.mrf.mxu1  ;;  %v9476_v35 = vld [vmem:[#allocation8 + $0x22c] sm:$0xf] }
 0x2ec   :  { %5197 = vmatmul.bf16.vlgmr.msrb.gmra.mxu3 %v10322_v10  ;;  %v7974_v10 = vor.u32 %v9488_v63, %v7971_v14  ;;  %5178 = vmatpush.bf16.msra.mxu0 %v8626_v45  ;;  %v7926_v28 = vor.u32 %v9476_v35, %v7923_v52  ;;  %v8531_v14 = vld [vmem:[#allocation8 + $0x6f8] sm:$0xf0]  ;;  %v9616_v52 = vld [vmem:[#allocation8 + $0x68c] sm:$0xf] }
 0x2ed   :  { %5241 = vmatpush.bf16.msra.mxu3 %v8278_v6  ;;  %v8610_v6 = vor.u32 %v9650_v32, %v8609_v31  ;;  %v8515_v45 = vld [vmem:[#allocation8 + $0x6d8] sm:$0xf0]  ;;  %v8545_v31 = vld [vmem:[#allocation8 + $0x708] sm:$0xf]  ;;  %v9634_v32 = vld [vmem:[#allocation8 + $0x714] sm:$0xf0] }
 0x2ee   :  { %5210 = vmatmul.bf16.vlgmr.msra.gmra.mxu1 %v10328_v22  ;;  %v9548_v22 = vld [vmem:[#allocation8 + $0x46c] sm:$0xf]  ;;  %5218 = vmatpush.bf16.msra.mxu2 %v7974_v10  ;;  %v8561_v10 = vld [vmem:[#allocation8 + $0x728] sm:$0xf]  ;;  %v8518_v36 = vor.u32 %v9624_v27, %v8515_v45  ;;  %v9674_v35 = vld [vmem:[#allocation11 + $0x54] sm:$0xf0] }
 0x2ef   :  { %5254 = vmatpush.bf16.msrb.mxu1 %v8406_v54  ;;  %v8214_v38 = vor.u32 %v9548_v22, %v8211_v57  ;;  %v4990_v41 = vpop.f32.mrf.mxu3  ;;  %v8198_v54 = vor.u32 %v9544_v44, %v8195_v0  ;;  %v8562_v22 = vor.u32 %v9638_v30, %v8561_v10  ;;  %v9568_v57 = vld [vmem:[#allocation8 + $0x50c] sm:$0xf]  ;;  %v8546_v44 = vor.u32 %v9634_v32, %v8545_v31  ;;  %v8769_v10 = vld [vmem:[#allocation11 + $0xd0] sm:$0xf]  ;;  %v8681_v27 = vld [vmem:[#allocation11 + $0x20] sm:$0xf] }
 0x2f0   :  { %v4991_v37 = vadd.f32 %v4990_v41, %v3590_v39  ;;  %5179 = vmatpush.bf16.msra.mxu0 %v8610_v6  ;;  %v9676_v39 = vld [vmem:[#allocation11 + $0x64] sm:$0xf0]  ;;  %v8499_v6 = vld [vmem:[#allocation8 + $0x6b8] sm:$0xf0]  ;;  %v8761_v32 = vld [vmem:[#allocation11 + $0xc0] sm:$0xf] }
 0x2f1   :  { %5242 = vmatpush.bf16.msra.mxu3 %v8262_v60  ;;  %v8179_v60 = vld [vmem:[#allocation8 + $0x438] sm:$0xf0]  ;;  %v8502_v47 = vor.u32 %v9620_v42, %v8499_v6  ;;  %v9608_v34 = vld [vmem:[#allocation8 + $0x64c] sm:$0xf]  ;;  %v8673_v6 = vld [vmem:[#allocation11 + $0x10] sm:$0xf] }
 0x2f2   :  { %5219 = vmatpush.bf16.msra.mxu2 %v7958_v25  ;;  %v10408_v50 = vadd.f32 %v5003_v59, %v4991_v37  ;;  %v8182_v63 = vor.u32 %v9540_v7, %v8179_v60  ;;  %v8291_v25 = vld [vmem:[#allocation8 + $0x518] sm:$0xf0]  ;;  %v8697_v60 = vld [vmem:[#allocation11 + $0x40] sm:$0xf]  ;;  %v9668_v45 = vld [vmem:[#allocation11 + $0x24] sm:$0xf0] }
 0x2f3   :  { %5255 = vmatpush.bf16.msrb.mxu1 %v8390_v12  ;;  %v5005_v12 = vpop.f32.mrf.mxu1  ;;  %v8147_v59 = vld [vmem:[#allocation8 + $0x3f8] sm:$0xf0]  ;;  %v8294_v8 = vor.u32 %v9568_v57, %v8291_v25  ;;  %v9604_v25 = vld [vmem:[#allocation8 + $0x62c] sm:$0xf] }
 0x2f4   :  { %5180 = vmatpush.bf16.msra.mxu0 %v8594_v53  ;;  %v8131_v41 = vld [vmem:[#allocation8 + $0x3d8] sm:$0xf0]  ;;  %v9520_v12 = vld [vmem:[#allocation8 + $0x38c] sm:$0xf] }
 0x2f5   :  { %5243 = vmatpush.bf16.msra.mxu3 %v8246_v17  ;;  %v9572_v17 = vld [vmem:[#allocation8 + $0x52c] sm:$0xf]  ;;  %v8483_v37 = vld [vmem:[#allocation8 + $0x698] sm:$0xf0] }
 0x2f6   :  { %5220 = vmatpush.bf16.msra.mxu2 %v7942_v55  ;;  %v8310_v3 = vor.u32 %v9572_v17, %v8307_v58  ;;  %v9528_v55 = vld [vmem:[#allocation8 + $0x3cc] sm:$0xf]  ;;  %v9694_v53 = vld [vmem:[#allocation11 + $0xf4] sm:$0xf0]  ;;  %v8486_v7 = vor.u32 %v9616_v52, %v8483_v37 }
 0x2f7   :  { %5256 = vmatpush.bf16.msrb.mxu1 %v8374_v56  ;;  %v4992_v49 = vpop.f32.mrf.mxu3  ;;  %v8534_v56 = vor.u32 %v9628_v11, %v8531_v14  ;;  %v8778_v14 = vor.u32 %v9692_v5, %v8777_v2  ;;  %v8099_v58 = vld [vmem:[#allocation8 + $0x398] sm:$0xf0]  ;;  %v9508_v37 = vld [vmem:[#allocation8 + $0x32c] sm:$0xf] }
 0x2f8   :  { %5181 = vmatpush.bf16.msra.mxu0 %v8578_v18  ;;  %v8689_v18 = vld [vmem:[#allocation11 + $0x30] sm:$0xf]  ;;  %v8102_v49 = vor.u32 %v9520_v12, %v8099_v58  ;;  %v8435_v31 = vld [vmem:[#allocation8 + $0x638] sm:$0xf0]  ;;  %v9504_v2 = vld [vmem:[#allocation8 + $0x30c] sm:$0xf] }
 0x2f9   :  { %5244 = vmatpush.bf16.msra.mxu3 %v8230_v26  ;;  %v9678_v26 = vld [vmem:[#allocation11 + $0x74] sm:$0xf0]  ;;  %v9660_v12 = vld [vmem:[#allocation8 + $0x7ec] sm:$0xf]  ;;  %v8715_v58 = vld [vmem:[#allocation11 + $0x68] sm:$0xf0] }
 0x2fa   :  { %5221 = vmatpush.bf16.msra.mxu2 %v7926_v28  ;;  %v8722_v33 = vor.u32 %v9678_v26, %v8721_v24  ;;  %v9672_v28 = vld [vmem:[#allocation11 + $0x44] sm:$0xf0]  ;;  %v9690_v24 = vld [vmem:[#allocation11 + $0xd4] sm:$0xf0] }
 0x2fb   :  { %5257 = vmatpush.bf16.msrb.mxu1 %v8358_v40  ;;  %v9532_v40 = vld [vmem:[#allocation8 + $0x3ec] sm:$0xf]  ;;  %v8067_v42 = vld [vmem:[#allocation8 + $0x358] sm:$0xf0] }
 0x2fc   :  { %5182 = vmatpush.bf16.msra.mxu0 %v8562_v22  ;;  %v8150_v0 = vor.u32 %v9532_v40, %v8147_v59  ;;  %v8770_v22 = vor.u32 %v9690_v24, %v8769_v10  ;;  %v9688_v40 = vld [vmem:[#allocation11 + $0xc4] sm:$0xf0]  ;;  %v8682_v59 = vor.u32 %v9668_v45, %v8681_v27  ;;  %v8035_v5 = vld [vmem:[#allocation8 + $0x318] sm:$0xf0]  ;;  %v9673_v24 = vld [vmem:[#allocation11 + $0x54] sm:$0xf] }
 0x2fd   :  { %5245 = vmatpush.bf16.msra.mxu3 %v8214_v38  ;;  %v8713_v38 = vld [vmem:[#allocation11 + $0x60] sm:$0xf]  ;;  %v9680_v27 = vld [vmem:[#allocation11 + $0x84] sm:$0xf0] }
 0x2fe   :  { %5222 = vmatpush.bf16.msra.mxu2 %v7910_v20  ;;  %v8714_v4 = vor.u32 %v9676_v39, %v8713_v38  ;;  %v8451_v20 = vld [vmem:[#allocation8 + $0x658] sm:$0xf0]  ;;  %v8762_v38 = vor.u32 %v9688_v40, %v8761_v32  ;;  %v9691_v40 = vld [vmem:[#allocation11 + $0xe4] sm:$0xf] }
 0x2ff   :  { %5258 = vmatpush.bf16.msrb.mxu1 %v8342_v48  ;;  %v8705_v48 = vld [vmem:[#allocation11 + $0x50] sm:$0xf]  ;;  %v8454_v26 = vor.u32 %v9608_v34, %v8451_v20  ;;  %v9682_v34 = vld [vmem:[#allocation11 + $0x94] sm:$0xf0] }
 0x300   :  { %5183 = vmatpush.bf16.msra.mxu0 %v8546_v44  ;;  %v8706_v9 = vor.u32 %v9674_v35, %v8705_v48  ;;  %v9666_v44 = vld [vmem:[#allocation11 + $0x14] sm:$0xf0] }
 0x301   :  { %5246 = vmatpush.bf16.msra.mxu3 %v8198_v54  ;;  %5223 = vmatmul.bf16.vlgmr.msra.gmra.mxu2 %v10330_v23  ;;  %v8785_v54 = vld [vmem:[#allocation11 + $0xf0] sm:$0xf]  ;;  %v8134_v23 = vor.u32 %v9528_v55, %v8131_v41  ;;  %v8419_v55 = vld [vmem:[#allocation8 + $0x618] sm:$0xf0]  ;;  %v8674_v48 = vor.u32 %v9666_v44, %v8673_v6  ;;  %v9648_v44 = vld [vmem:[#allocation8 + $0x78c] sm:$0xf] }
 0x302   :  { %5267 = vmatpush.bf16.msrb.mxu2 %v8534_v56  ;;  %v8786_v61 = vor.u32 %v9694_v53, %v8785_v54  ;;  %v9516_v56 = vld [vmem:[#allocation8 + $0x36c] sm:$0xf]  ;;  %v9686_v35 = vld [vmem:[#allocation11 + $0xb4] sm:$0xf0] }
 0x303   :  { %5259 = vmatpush.bf16.msrb.mxu1 %v8326_v43  ;;  %5184 = vmatmul.bf16.vlgmr.msra.gmra.mxu0 %v10385_v15  ;;  %v8467_v43 = vld [vmem:[#allocation8 + $0x678] sm:$0xf0]  ;;  %v9664_v53 = vld [vmem:[#allocation11 + $0x4] sm:$0xf0] }
 0x304   :  { %5228 = vmatpush.bf16.msrb.mxu0 %v8150_v0  ;;  %v8470_v17 = vor.u32 %v9612_v1, %v8467_v43  ;;  %v9600_v0 = vld [vmem:[#allocation8 + $0x60c] sm:$0xf]  ;;  %v8051_v54 = vld [vmem:[#allocation8 + $0x338] sm:$0xf0] }
 0x305   :  { %5247 = vmatpush.bf16.msra.mxu3 %v8182_v63  ;;  %v8698_v63 = vor.u32 %v9672_v28, %v8697_v60  ;;  %v8422_v52 = vor.u32 %v9600_v0, %v8419_v55  ;;  %v8745_v60 = vld [vmem:[#allocation11 + $0xa0] sm:$0xf]  ;;  %v9684_v28 = vld [vmem:[#allocation11 + $0xa4] sm:$0xf0]  ;;  %v8611_v0 = vld [vmem:[#allocation8 + $0x798] sm:$0xf0] }
 0x306   :  { %5268 = vmatpush.bf16.msrb.mxu2 %v8518_v36  ;;  %v9512_v36 = vld [vmem:[#allocation8 + $0x34c] sm:$0xf]  ;;  %v8746_v1 = vor.u32 %v9684_v28, %v8745_v60  ;;  %v9667_v28 = vld [vmem:[#allocation11 + $0x24] sm:$0xf] }
 0x307   :  { %5260 = vmatpush.bf16.msrb.mxu1 %v8310_v3  ;;  %v8690_v3 = vor.u32 %v9670_v19, %v8689_v18  ;;  %v8070_v41 = vor.u32 %v9512_v36, %v8067_v42  ;;  %v8737_v18 = vld [vmem:[#allocation11 + $0x90] sm:$0xf]  ;;  %v8038_v19 = vor.u32 %v9504_v2, %v8035_v5  ;;  %v9652_v36 = vld [vmem:[#allocation8 + $0x7ac] sm:$0xf]  ;;  %v9687_v2 = vld [vmem:[#allocation11 + $0xc4] sm:$0xf] }
 0x308   :  { %5229 = vmatpush.bf16.msrb.mxu0 %v8134_v23  ;;  %v8738_v10 = vor.u32 %v9682_v34, %v8737_v18  ;;  %v8763_v5 = vld [vmem:[#allocation11 + $0xc8] sm:$0xf0]  ;;  %v8675_v34 = vld [vmem:[#allocation11 + $0x18] sm:$0xf0] }
 0x309   :  { %5248 = vmatpush.bf16.msra.mxu3 %v8166_v21  ;;  %v8083_v21 = vld [vmem:[#allocation8 + $0x378] sm:$0xf0] }
 0x30a   :  { %5269 = vmatpush.bf16.msrb.mxu2 %v8502_v47 }
 0x30b   :  { %5261 = vmatpush.bf16.msrb.mxu1 %v8294_v8  ;;  %v10416_v30 = vpop.f32.mrf.mxu1  ;;  %v8438_v8 = vor.u32 %v9604_v25, %v8435_v31  ;;  %v8787_v25 = vld [vmem:[#allocation11 + $0xf8] sm:$0xf0] }
 0x30c   :  { %5249 = vmatmul.bf16.vlgmr.msra.gmra.mxu3 %v10347_v46  ;;  %v8115_v46 = vld [vmem:[#allocation8 + $0x3b8] sm:$0xf0] }
 0x30d   :  { %5691 = vmatpush.bf16.msrb.mxu3 %v8722_v33  ;;  %v8118_v11 = vor.u32 %v9524_v62, %v8115_v46  ;;  %v8086_v33 = vor.u32 %v9516_v56, %v8083_v21  ;;  %v8723_v46 = vld [vmem:[#allocation11 + $0x78] sm:$0xf0]  ;;  %v8643_v56 = vld [vmem:[#allocation8 + $0x7d8] sm:$0xf0]  ;;  %v8729_v21 = vld [vmem:[#allocation11 + $0x80] sm:$0xf] }
 0x30e   :  { %5262 = vmatmul.bf16.vlgmr.msrb.gmra.mxu1 %v10350_v13  ;;  %5270 = vmatpush.bf16.msrb.mxu2 %v8486_v7  ;;  %v10414_v13 = vpop.f32.mrf.mxu2  ;;  %v9677_v7 = vld [vmem:[#allocation11 + $0x74] sm:$0xf]  ;;  %v8730_v45 = vor.u32 %v9680_v27, %v8729_v21  ;;  %v9683_v27 = vld [vmem:[#allocation11 + $0xa4] sm:$0xf] }
 0x30f   :  { %5704 = vmatpush.bf16.msra.mxu1 %v8786_v61  ;;  %5230 = vmatpush.bf16.msrb.mxu0 %v8118_v11  ;;  %v10418_v57 = vpop.f32.mrf.mxu3  ;;  %v8054_v61 = vor.u32 %v9508_v37, %v8051_v54  ;;  %v8771_v37 = vld [vmem:[#allocation11 + $0xd8] sm:$0xf0] }
 0x311   :  { %5692 = vmatpush.bf16.msrb.mxu3 %v8714_v4  ;;  %v8753_v4 = vld [vmem:[#allocation11 + $0xb0] sm:$0xf] }
 0x312   :  { %5271 = vmatpush.bf16.msrb.mxu2 %v8470_v17  ;;  %v8754_v23 = vor.u32 %v9686_v35, %v8753_v4  ;;  %v9675_v17 = vld [vmem:[#allocation11 + $0x64] sm:$0xf]  ;;  %v4965_v4 = vadd.f32 %v10414_v13, %v10401_v16  ;;  %v10426_v35 = vld [vmem:[#allocation10] sm:$0xf]  ;;  %v8595_v16 = vld [vmem:[#allocation8 + $0x778] sm:$0xf0] }
 0x313   :  { %5705 = vmatpush.bf16.msra.mxu1 %v8778_v14  ;;  %5231 = vmatpush.bf16.msrb.mxu0 %v8102_v49  ;;  %v5057_v47 = vpop.f32.mrf.mxu1  ;;  %v8726_v14 = vor.u32 %v9677_v7, %v8723_v46  ;;  %v9656_v49 = vld [vmem:[#allocation8 + $0x7cc] sm:$0xf] }
 0x314   :  { %v8646_v31 = vor.u32 %v9656_v49, %v8643_v56  ;;  %v9669_v47 = vld [vmem:[#allocation11 + $0x34] sm:$0xf]  ;;  %v9644_v7 = vld [vmem:[#allocation8 + $0x76c] sm:$0xf]  ;;  %v8755_v49 = vld [vmem:[#allocation11 + $0xb8] sm:$0xf0] }
 0x315   :  { %5693 = vmatpush.bf16.msrb.mxu3 %v8706_v9  ;;  %v8665_v9 = vld [vmem:[#allocation11] sm:$0xf] }
 0x316   :  { %5272 = vmatpush.bf16.msrb.mxu2 %v8454_v26  ;;  %v4966_v39 = vpop.f32.mrf.mxu2  ;;  %v8666_v11 = vor.u32 %v9664_v53, %v8665_v9  ;;  %v8707_v26 = vld [vmem:[#allocation11 + $0x58] sm:$0xf0]  ;;  %v8614_v9 = vor.u32 %v9648_v44, %v8611_v0 }
 0x317   :  { %5706 = vmatpush.bf16.msra.mxu1 %v8770_v22  ;;  %5232 = vmatpush.bf16.msrb.mxu0 %v8086_v33  ;;  %v5044_v62 = vpop.f32.mrf.mxu3  ;;  %v9693_v22 = vld [vmem:[#allocation11 + $0xf4] sm:$0xf]  ;;  %v8779_v33 = vld [vmem:[#allocation11 + $0xe8] sm:$0xf0]  ;;  %v9671_v39 = vld [vmem:[#allocation11 + $0x44] sm:$0xf] }
 0x318   :  { %v8790_v32 = vor.u32 %v9693_v22, %v8787_v25  ;;  %v8782_v42 = vor.u32 %v9691_v40, %v8779_v33  ;;  %v8563_v22 = vld [vmem:[#allocation8 + $0x738] sm:$0xf0]  ;;  %v9663_v40 = vld [vmem:[#allocation11 + $0x4] sm:$0xf]  ;;  %v8667_v33 = vld [vmem:[#allocation11 + $0x8] sm:$0xf0] }
 0x319   :  { %5694 = vmatpush.bf16.msrb.mxu3 %v8698_v63  ;;  %v8659_v63 = vld [vmem:[#allocation8 + $0x7f8] sm:$0xf0]  ;;  %v8670_v44 = vor.u32 %v9663_v40, %v8667_v33 }
 0x31a   :  { %5273 = vmatpush.bf16.msrb.mxu2 %v8438_v8  ;;  %v8662_v20 = vor.u32 %v9660_v12, %v8659_v63  ;;  %v8699_v8 = vld [vmem:[#allocation11 + $0x48] sm:$0xf0]  ;;  %v8598_v12 = vor.u32 %v9644_v7, %v8595_v16  ;;  %v8766_v63 = vor.u32 %v9687_v2, %v8763_v5  ;;  %v9706_v7 = vld [vmem:[#allocation11 + $0x154] sm:$0xf0] }
 0x31b   :  { %5707 = vmatpush.bf16.msra.mxu1 %v8762_v38  ;;  %5233 = vmatpush.bf16.msrb.mxu0 %v8070_v41  ;;  %v8710_v38 = vor.u32 %v9673_v24, %v8707_v26  ;;  %v8702_v55 = vor.u32 %v9671_v39, %v8699_v8  ;;  %v8691_v41 = vld [vmem:[#allocation11 + $0x38] sm:$0xf0]  ;;  %v9636_v26 = vld [vmem:[#allocation8 + $0x72c] sm:$0xf]  ;;  %v9681_v39 = vld [vmem:[#allocation11 + $0x94] sm:$0xf] }
 0x31c   :  { %v8694_v13 = vor.u32 %v9669_v47, %v8691_v41  ;;  %v8739_v8 = vld [vmem:[#allocation11 + $0x98] sm:$0xf0]  ;;  %v9679_v41 = vld [vmem:[#allocation11 + $0x84] sm:$0xf] }
 0x31d   :  { %5695 = vmatpush.bf16.msrb.mxu3 %v8690_v3  ;;  %v8718_v3 = vor.u32 %v9675_v17, %v8715_v58  ;;  %v8579_v17 = vld [vmem:[#allocation8 + $0x758] sm:$0xf0] }
 0x31e   :  { %5274 = vmatpush.bf16.msrb.mxu2 %v8422_v52  ;;  %v10420_v43 = vpop.f32.mrf.mxu2  ;;  %v9689_v52 = vld [vmem:[#allocation11 + $0xd4] sm:$0xf] }
 0x31f   :  { %5708 = vmatpush.bf16.msra.mxu1 %v8754_v23  ;;  %5234 = vmatpush.bf16.msrb.mxu0 %v8054_v61  ;;  %v8774_v53 = vor.u32 %v9689_v52, %v8771_v37  ;;  %v8683_v61 = vld [vmem:[#allocation11 + $0x28] sm:$0xf0] }
 0x320   :  { %v8686_v58 = vor.u32 %v9667_v28, %v8683_v61  ;;  %v8825_v28 = vld [vmem:[#allocation11 + $0x140] sm:$0xf]  ;;  %v9704_v61 = vld [vmem:[#allocation11 + $0x144] sm:$0xf0] }
 0x321   :  { %5696 = vmatpush.bf16.msrb.mxu3 %v8682_v59  ;;  %5275 = vmatmul.bf16.vlgmr.msrb.gmra.mxu2 %v10375_v29  ;;  %v8627_v59 = vld [vmem:[#allocation8 + $0x7b8] sm:$0xf0]  ;;  %v8826_v2 = vor.u32 %v9704_v61, %v8825_v28 }
 0x322   :  { %v8630_v6 = vor.u32 %v9652_v36, %v8627_v59 }
 0x323   :  { %5709 = vmatpush.bf16.msra.mxu1 %v8746_v1  ;;  %5235 = vmatpush.bf16.msrb.mxu0 %v8038_v19  ;;  %v9665_v19 = vld [vmem:[#allocation11 + $0x14] sm:$0xf] }
 0x324   :  { %v8678_v25 = vor.u32 %v9665_v19, %v8675_v34 }
 0x325   :  { %5697 = vmatpush.bf16.msrb.mxu3 %v8674_v48  ;;  %v4977_v48 = vpop.f32.mrf.mxu0 }
 0x326   :  { %v5018_v29 = vpop.f32.mrf.mxu2  ;;  %5236 = vmatmul.bf16.vlgmr.msrb.gmra.mxu0 %v10335_v51  ;;  %v3591_v51 = vperm.slane %v10426_v35, 2  ;;  %v4978_v54 = vadd.f32 %v4977_v48, %v4965_v4  ;;  %v5017_v4 = vadd.f32 %v10420_v43, %v10408_v50  ;;  %v8731_v48 = vld [vmem:[#allocation11 + $0x88] sm:$0xf0]  ;;  %v8833_v43 = vld [vmem:[#allocation11 + $0x150] sm:$0xf] }
 0x327   :  { %5710 = vmatpush.bf16.msra.mxu1 %v8738_v10  ;;  %5280 = vmatpush.bf16.msra.mxu0 %v8662_v20  ;;  %v9685_v10 = vld [vmem:[#allocation11 + $0xb4] sm:$0xf]  ;;  %v8849_v29 = vld [vmem:[#allocation11 + $0x170] sm:$0xf]  ;;  %v8734_v52 = vor.u32 %v9679_v41, %v8731_v48  ;;  %v8834_v16 = vor.u32 %v9706_v7, %v8833_v43 }
 0x328   :  { %v5293_v46 = vmax.f32 %v4978_v54, 0.0  ;;  %v8758_v21 = vor.u32 %v9685_v10, %v8755_v49  ;;  %v8841_v54 = vld [vmem:[#allocation11 + $0x160] sm:$0xf]  ;;  %v9698_v10 = vld [vmem:[#allocation11 + $0x114] sm:$0xf0] }
 0x329   :  { %5698 = vmatpush.bf16.msrb.mxu3 %v8666_v11 }
 0x32a   :  { %v5297_v11 = vpack.c.bf16 %v5293_v46, %v5293_v46 }
 0x32b   :  { %5711 = vmatpush.bf16.msra.mxu1 %v8730_v45  ;;  %5281 = vmatpush.bf16.msra.mxu0 %v8646_v31  ;;  %v5107_v23 = vpop.f32.mrf.mxu1  ;;  %v8747_v45 = vld [vmem:[#allocation11 + $0xa8] sm:$0xf0]  ;;  %v9710_v31 = vld [vmem:[#allocation11 + $0x174] sm:$0xf0] }
 0x32c   :  { %5699 = vmatmul.bf16.vlgmr.msrb.gmra.mxu3 %v5297_v11  ;;  %v8850_v36 = vor.u32 %v9710_v31, %v8849_v29  ;;  %v8750_v59 = vor.u32 %v9683_v27, %v8747_v45  ;;  %v9705_v31 = vld [vmem:[#allocation11 + $0x154] sm:$0xf] }
 0x32d   :  { %5743 = vmatpush.bf16.msra.mxu3 %v8726_v14  ;;  %v9640_v14 = vld [vmem:[#allocation8 + $0x74c] sm:$0xf]  ;;  %v4979_v20 = vpop.f32.mrf.mxu0 }
 0x32e   :  { %v10429_v62 = vpop.f32.mrf.mxu2  ;;  %v8582_v24 = vor.u32 %v9640_v14, %v8579_v17  ;;  %5717 = vmatpush.bf16.msra.mxu2 %v8850_v36  ;;  %v8801_v20 = vld [vmem:[#allocation11 + $0x110] sm:$0xf] }
 0x32f   :  { %5756 = vmatpush.bf16.msrb.mxu1 %v8790_v32  ;;  %5282 = vmatpush.bf16.msra.mxu0 %v8630_v6  ;;  %v5094_v60 = vpop.f32.mrf.mxu3  ;;  %v8547_v6 = vld [vmem:[#allocation8 + $0x718] sm:$0xf0] }
 0x330   :  { %v5095_v1 = vadd.f32 %v5094_v60, %v3591_v51 }
 0x331   :  { %5744 = vmatpush.bf16.msra.mxu3 %v8718_v3 }
 0x332   :  { %v10431_v18 = vadd.f32 %v5107_v23, %v5095_v1  ;;  %v9708_v23 = vld [vmem:[#allocation11 + $0x164] sm:$0xf0] }
 0x333   :  { %5757 = vmatpush.bf16.msrb.mxu1 %v8782_v42  ;;  %5283 = vmatpush.bf16.msra.mxu0 %v8614_v9  ;;  %v5109_v56 = vpop.f32.mrf.mxu1  ;;  %v9632_v42 = vld [vmem:[#allocation8 + $0x70c] sm:$0xf] }
 0x334   :  { %v8550_v47 = vor.u32 %v9632_v42, %v8547_v6  ;;  %v8802_v56 = vor.u32 %v9698_v10, %v8801_v20 }
 0x335   :  { %5745 = vmatpush.bf16.msra.mxu3 %v8710_v38  ;;  %v8566_v38 = vor.u32 %v9636_v26, %v8563_v22  ;;  %v5029_v0 = vpop.f32.mrf.mxu0  ;;  %v9709_v26 = vld [vmem:[#allocation11 + $0x174] sm:$0xf]  ;;  %v9707_v22 = vld [vmem:[#allocation11 + $0x164] sm:$0xf] }
 0x336   :  { %v5070_v3 = vpop.f32.mrf.mxu2  ;;  %v5030_v51 = vadd.f32 %v5029_v0, %v5017_v4  ;;  %v9701_v0 = vld [vmem:[#allocation11 + $0x134] sm:$0xf] }
 0x337   :  { %5758 = vmatpush.bf16.msrb.mxu1 %v8774_v53  ;;  %5284 = vmatpush.bf16.msra.mxu0 %v8598_v12  ;;  %v5096_v32 = vpop.f32.mrf.mxu3  ;;  %v8842_v53 = vor.u32 %v9708_v23, %v8841_v54  ;;  %v8793_v3 = vld [vmem:[#allocation11 + $0x100] sm:$0xf]  ;;  %v8803_v54 = vld [vmem:[#allocation11 + $0x118] sm:$0xf0] }
 0x338   :  { %v5043_v37 = vadd.f32 %v10418_v57, %v5030_v51  ;;  %v8835_v32 = vld [vmem:[#allocation11 + $0x158] sm:$0xf0]  ;;  %v9699_v51 = vld [vmem:[#allocation11 + $0x124] sm:$0xf] }
 0x339   :  { %5746 = vmatpush.bf16.msra.mxu3 %v8702_v55  ;;  %v8742_v55 = vor.u32 %v9681_v39, %v8739_v8  ;;  %5718 = vmatpush.bf16.msra.mxu2 %v8842_v53  ;;  %v8838_v40 = vor.u32 %v9705_v31, %v8835_v32  ;;  %v8827_v39 = vld [vmem:[#allocation11 + $0x148] sm:$0xf0]  ;;  %v9726_v53 = vld [vmem:[#allocation11 + $0x1f4] sm:$0xf0] }
 0x33a   :  { %v5056_v50 = vadd.f32 %v10416_v30, %v5043_v37  ;;  %v8817_v30 = vld [vmem:[#allocation11 + $0x130] sm:$0xf] }
 0x33b   :  { %5759 = vmatpush.bf16.msrb.mxu1 %v8766_v63  ;;  %5285 = vmatpush.bf16.msra.mxu0 %v8582_v24  ;;  %v9696_v24 = vld [vmem:[#allocation11 + $0x104] sm:$0xf0] }
 0x33c   :  { %v5069_v57 = vadd.f32 %v10429_v62, %v5056_v50  ;;  %v9700_v62 = vld [vmem:[#allocation11 + $0x124] sm:$0xf0]  ;;  %v8794_v27 = vor.u32 %v9696_v24, %v8793_v3  ;;  %v8873_v24 = vld [vmem:[#allocation11 + $0x1a0] sm:$0xf] }
 0x33d   :  { %5747 = vmatpush.bf16.msra.mxu3 %v8694_v13  ;;  %v5031_v9 = vpop.f32.mrf.mxu0  ;;  %5719 = vmatpush.bf16.msra.mxu2 %v8834_v16  ;;  %v9695_v16 = vld [vmem:[#allocation11 + $0x104] sm:$0xf] }
 0x33e   :  { %v8913_v9 = vld [vmem:[#allocation11 + $0x1f0] sm:$0xf] }
 0x33f   :  { %5760 = vmatpush.bf16.msrb.mxu1 %v8758_v21  ;;  %5286 = vmatpush.bf16.msra.mxu0 %v8566_v38  ;;  %v8851_v21 = vld [vmem:[#allocation11 + $0x178] sm:$0xf0]  ;;  %v9703_v38 = vld [vmem:[#allocation11 + $0x144] sm:$0xf]  ;;  %v8914_v43 = vor.u32 %v9726_v53, %v8913_v9  ;;  %v8875_v9 = vld [vmem:[#allocation11 + $0x1a8] sm:$0xf0] }
 0x340   :  { %v8854_v45 = vor.u32 %v9709_v26, %v8851_v21  ;;  %v8830_v42 = vor.u32 %v9703_v38, %v8827_v39  ;;  %v9716_v26 = vld [vmem:[#allocation11 + $0x1a4] sm:$0xf0]  ;;  %v8915_v38 = vld [vmem:[#allocation11 + $0x1f8] sm:$0xf0]  ;;  %v9723_v39 = vld [vmem:[#allocation11 + $0x1e4] sm:$0xf] }
 0x341   :  { %5748 = vmatpush.bf16.msra.mxu3 %v8686_v58  ;;  %v10438_v13 = vpop.f32.mrf.mxu2  ;;  %5720 = vmatpush.bf16.msra.mxu2 %v8826_v2  ;;  %v8809_v58 = vld [vmem:[#allocation11 + $0x120] sm:$0xf]  ;;  %v8874_v21 = vor.u32 %v9716_v26, %v8873_v24 }
 0x342   :  { %v8810_v34 = vor.u32 %v9700_v62, %v8809_v58  ;;  %v8905_v2 = vld [vmem:[#allocation11 + $0x1e0] sm:$0xf]  ;;  %v9720_v62 = vld [vmem:[#allocation11 + $0x1c4] sm:$0xf0] }
 0x343   :  { %5761 = vmatpush.bf16.msrb.mxu1 %v8750_v59  ;;  %5287 = vmatpush.bf16.msra.mxu0 %v8550_v47  ;;  %v3592_v59 = vperm.slane %v10426_v35, 3  ;;  %v9697_v35 = vld [vmem:[#allocation11 + $0x114] sm:$0xf] }
 0x344   :  { %v8806_v7 = vor.u32 %v9697_v35, %v8803_v54  ;;  %v8883_v35 = vld [vmem:[#allocation11 + $0x1b8] sm:$0xf0] }
 0x345   :  { %5749 = vmatpush.bf16.msra.mxu3 %v8678_v25  ;;  %v5081_v60 = vpop.f32.mrf.mxu0  ;;  %v8843_v25 = vld [vmem:[#allocation11 + $0x168] sm:$0xf0] }
 0x346   :  { %5288 = vmatmul.bf16.vlgmr.msra.gmra.mxu0 %v10385_v15  ;;  %v5082_v15 = vadd.f32 %v5081_v60, %v5069_v57  ;;  %v8846_v29 = vor.u32 %v9707_v22, %v8843_v25  ;;  %v8795_v57 = vld [vmem:[#allocation11 + $0x108] sm:$0xf0]  ;;  %v5121_v60 = vadd.f32 %v10438_v13, %v10431_v18  ;;  %v8889_v13 = vld [vmem:[#allocation11 + $0x1c0] sm:$0xf]  ;;  %v8865_v22 = vld [vmem:[#allocation11 + $0x190] sm:$0xf] }
 0x347   :  { %5762 = vmatpush.bf16.msrb.mxu1 %v8742_v55  ;;  %v8819_v55 = vld [vmem:[#allocation11 + $0x138] sm:$0xf0]  ;;  %5730 = vmatpush.bf16.msrb.mxu0 %v8914_v43  ;;  %v8798_v28 = vor.u32 %v9695_v16, %v8795_v57  ;;  %v9714_v25 = vld [vmem:[#allocation11 + $0x194] sm:$0xf0] }
 0x348   :  { %v5294_v5 = vmax.f32 %v5082_v15, 0.0  ;;  %v8822_v47 = vor.u32 %v9701_v0, %v8819_v55  ;;  %v8866_v32 = vor.u32 %v9714_v25, %v8865_v22  ;;  %v8899_v0 = vld [vmem:[#allocation11 + $0x1d8] sm:$0xf0]  ;;  %v9741_v22 = vld [vmem:[#allocation14 + $0x70] sm:$0xff]  ;;  %v9732_v25 = vld [vmem:[#allocation14 + $0x28] sm:$0xff] }
 0x349   :  { %5750 = vmatpush.bf16.msra.mxu3 %v8670_v44  ;;  %v5122_v14 = vpop.f32.mrf.mxu2  ;;  %v8867_v16 = vld [vmem:[#allocation11 + $0x198] sm:$0xf0] }
 0x34a   :  { %v5298_v12 = vpack.c.bf16 %v5294_v5, %v5294_v5  ;;  %v9724_v5 = vld [vmem:[#allocation11 + $0x1e4] sm:$0xf0] }
 0x34b   :  { %5763 = vmatpush.bf16.msrb.mxu1 %v8734_v52  ;;  %v10440_v46 = vpop.f32.mrf.mxu1  ;;  %v8811_v52 = vld [vmem:[#allocation11 + $0x128] sm:$0xf0] }
 0x34c   :  { %5751 = vmatmul.bf16.vlgmr.msra.gmra.mxu3 %v5297_v11  ;;  %v9702_v11 = vld [vmem:[#allocation11 + $0x134] sm:$0xf0]  ;;  %5712 = vmatmul.bf16.vlgmr.msra.gmra.mxu1 %v5298_v12  ;;  %v8814_v37 = vor.u32 %v9699_v51, %v8811_v52 }
 0x34d   :  { %v8818_v63 = vor.u32 %v9702_v11, %v8817_v30  ;;  %v5083_v19 = vpop.f32.mrf.mxu0  ;;  %v8906_v30 = vor.u32 %v9724_v5, %v8905_v2 }
 0x34f   :  { %v10443_v1 = vpop.f32.mrf.mxu3  ;;  %5721 = vmatpush.bf16.msra.mxu2 %v8818_v63  ;;  %5731 = vmatpush.bf16.msrb.mxu0 %v8906_v30  ;;  %v9722_v63 = vld [vmem:[#allocation11 + $0x1d4] sm:$0xf0] }
 0x353   :  { %v5161_v17 = vpop.f32.mrf.mxu1  ;;  %5722 = vmatpush.bf16.msra.mxu2 %v8810_v34  ;;  %v8890_v34 = vor.u32 %v9720_v62, %v8889_v13 }
 0x357   :  { %v5148_v49 = vpop.f32.mrf.mxu3  ;;  %5723 = vmatpush.bf16.msra.mxu2 %v8802_v56 }
 0x358   :  { %v8881_v49 = vld [vmem:[#allocation11 + $0x1b0] sm:$0xf] }
 0x35b   :  { %5724 = vmatpush.bf16.msra.mxu2 %v8794_v27 }
 0x35c   :  { %5764 = vmatmul.bf16.vlgmr.msrb.gmra.mxu1 %v5298_v12  ;;  %v8897_v12 = vld [vmem:[#allocation11 + $0x1d0] sm:$0xf] }
 0x35d   :  { %v8898_v14 = vor.u32 %v9722_v63, %v8897_v12 }
 0x35f   :  { %5769 = vmatpush.bf16.msrb.mxu2 %v8854_v45  ;;  %5732 = vmatpush.bf16.msrb.mxu0 %v8898_v14 }
 0x361   :  { %v5172_v33 = vpop.f32.mrf.mxu2 }
 0x362   :  { %v5133_v8 = vpop.f32.mrf.mxu0 }
 0x363   :  { %5770 = vmatpush.bf16.msrb.mxu2 %v8846_v29  ;;  %v5134_v61 = vadd.f32 %v5133_v8, %v5121_v60  ;;  %5733 = vmatpush.bf16.msrb.mxu0 %v8890_v34  ;;  %v9711_v60 = vld [vmem:[#allocation11 + $0x184] sm:$0xf]  ;;  %v5365_v34 = vld [vmem:[#allocation13] sm:$0x3] }
 0x365   :  { %v5147_v15 = vadd.f32 %v10443_v1, %v5134_v61 }
 0x367   :  { %5771 = vmatpush.bf16.msrb.mxu2 %v8838_v40  ;;  %v5160_v11 = vadd.f32 %v10440_v46, %v5147_v15  ;;  %v9718_v46 = vld [vmem:[#allocation11 + $0x1b4] sm:$0xf0]  ;;  %v8857_v40 = vld [vmem:[#allocation11 + $0x180] sm:$0xf] }
 0x368   :  { %v8882_v56 = vor.u32 %v9718_v46, %v8881_v49 }
 0x369   :  { %v5174_v41 = vpop.f32.mrf.mxu2  ;;  %v5173_v18 = vadd.f32 %v5172_v33, %v5160_v11  ;;  %v9712_v33 = vld [vmem:[#allocation11 + $0x184] sm:$0xf0] }
 0x36a   :  { %v5135_v23 = vpop.f32.mrf.mxu0  ;;  %5734 = vmatpush.bf16.msrb.mxu0 %v8882_v56  ;;  %v9719_v41 = vld [vmem:[#allocation11 + $0x1c4] sm:$0xf] }
 0x36b   :  { %v5211_v36 = vpop.f32.mrf.mxu1  ;;  %5772 = vmatpush.bf16.msrb.mxu2 %v8830_v42  ;;  %v8907_v42 = vld [vmem:[#allocation11 + $0x1e8] sm:$0xf0]  ;;  %v9715_v23 = vld [vmem:[#allocation11 + $0x1a4] sm:$0xf] }
 0x36c   :  { %v8878_v53 = vor.u32 %v9715_v23, %v8875_v9 }
 0x36e   :  { %5735 = vmatpush.bf16.msrb.mxu0 %v8874_v21  ;;  %v9734_v21 = vld [vmem:[#allocation14 + $0x38] sm:$0xff] }
 0x36f   :  { %v5198_v6 = vpop.f32.mrf.mxu3  ;;  %5773 = vmatpush.bf16.msrb.mxu2 %v8822_v47  ;;  %5931 = vmatpush.bf16.msrb.mxu3 %v9734_v21 }
 0x370   :  { %v5199_v44 = vadd.f32 %v5198_v6, %v3592_v59  ;;  %v9725_v59 = vld [vmem:[#allocation11 + $0x1f4] sm:$0xf]  ;;  %v8910_v6 = vor.u32 %v9723_v39, %v8907_v42  ;;  %v9727_v39 = vld [vmem:[#allocation14] sm:$0xff] }
 0x371   :  { %v8918_v8 = vor.u32 %v9725_v59, %v8915_v38  ;;  %v9728_v59 = vld [vmem:[#allocation14 + $0x8] sm:$0xff] }
 0x372   :  { %v10446_v4 = vadd.f32 %v5211_v36, %v5199_v44  ;;  %5736 = vmatpush.bf16.msrb.mxu0 %v8866_v32  ;;  %v8858_v36 = vor.u32 %v9712_v33, %v8857_v40  ;;  %v9721_v44 = vld [vmem:[#allocation11 + $0x1d4] sm:$0xf]  ;;  %v9730_v32 = vld [vmem:[#allocation14 + $0x18] sm:$0xff]  ;;  %v9740_v38 = vld [vmem:[#allocation14 + $0x68] sm:$0xff] }
 0x373   :  { %v5213_v48 = vpop.f32.mrf.mxu1  ;;  %5774 = vmatpush.bf16.msrb.mxu2 %v8814_v37  ;;  %v8902_v55 = vor.u32 %v9721_v44, %v8899_v0  ;;  %v9717_v37 = vld [vmem:[#allocation11 + $0x1b4] sm:$0xf]  ;;  %v9736_v0 = vld [vmem:[#allocation14 + $0x48] sm:$0xff] }
 0x374   :  { %v8891_v48 = vld [vmem:[#allocation11 + $0x1c8] sm:$0xf0]  ;;  %v8886_v54 = vor.u32 %v9717_v37, %v8883_v35  ;;  %v9729_v33 = vld [vmem:[#allocation14 + $0x10] sm:$0xff]  ;;  %v9747_v35 = vld [vmem:[#allocation17 + $0x20] sm:$0xff] }
 0x375   :  { %v8894_v52 = vor.u32 %v9719_v41, %v8891_v48  ;;  %v9737_v44 = vld [vmem:[#allocation14 + $0x50] sm:$0xff] }
 0x376   :  { %5737 = vmatpush.bf16.msrb.mxu0 %v8858_v36  ;;  %v9749_v41 = vld [vmem:[#allocation17 + $0x30] sm:$0xff]  ;;  %v9748_v48 = vld [vmem:[#allocation17 + $0x28] sm:$0xff] }
 0x377   :  { %v5200_v50 = vpop.f32.mrf.mxu3  ;;  %5775 = vmatpush.bf16.msrb.mxu2 %v8806_v7  ;;  %v9713_v7 = vld [vmem:[#allocation11 + $0x194] sm:$0xf] }
 0x378   :  { %v8870_v57 = vor.u32 %v9713_v7, %v8867_v16 }
 0x37a   :  { %5782 = vmatpush.bf16.msra.mxu0 %v8918_v8  ;;  %v9739_v8 = vld [vmem:[#allocation14 + $0x60] sm:$0xff] }
 0x37b   :  { %5776 = vmatpush.bf16.msrb.mxu2 %v8798_v28  ;;  %v8859_v28 = vld [vmem:[#allocation11 + $0x188] sm:$0xf0] }
 0x37c   :  { %v8862_v15 = vor.u32 %v9711_v60, %v8859_v28  ;;  %v9746_v60 = vld [vmem:[#allocation17 + $0x18] sm:$0xff]  ;;  %v9745_v28 = vld [vmem:[#allocation17 + $0x10] sm:$0xff] }
 0x37e   :  { %5783 = vmatpush.bf16.msra.mxu0 %v8910_v6  ;;  %v9738_v6 = vld [vmem:[#allocation14 + $0x58] sm:$0xff] }
 0x380   :  { %v5185_v19 = vpop.f32.mrf.mxu0 }
 0x381   :  { %v5186_v1 = vadd.f32 %v5185_v19, %v5173_v18 }
 0x382   :  { %5784 = vmatpush.bf16.msra.mxu0 %v8902_v55  ;;  %v9735_v55 = vld [vmem:[#allocation14 + $0x40] sm:$0xff] }
 0x383   :  { %v5295_v10 = vmax.f32 %v5186_v1, 0.0 }
 0x384   :  { %v10452_v17 = vpop.f32.mrf.mxu2 }
 0x385   :  { %v5299_v3 = vpack.c.bf16 %v5295_v10, %v5295_v10  ;;  %v5225_v61 = vadd.f32 %v10452_v17, %v10446_v4  ;;  %v5367_v4 = vperm.slane %v5365_v34, 0 }
 0x386   :  { %5785 = vmatpush.bf16.msra.mxu0 %v8894_v52 }
 0x387   :  { %5725 = vmatmul.bf16.vlgmr.msra.gmra.mxu2 %v5299_v3 }
 0x388   :  { %v5187_v29 = vpop.f32.mrf.mxu0 }
 0x38a   :  { %5786 = vmatpush.bf16.msra.mxu0 %v8886_v54 }
 0x38b   :  { %v10454_v58 = vpop.f32.mrf.mxu1 }
 0x38c   :  { %v5226_v27 = vpop.f32.mrf.mxu2 }
 0x38d   :  { %v9742_v27 = vld [vmem:[#allocation14 + $0x78] sm:$0xff] }
 0x38e   :  { %5787 = vmatpush.bf16.msra.mxu0 %v8878_v53  ;;  %5944 = vmatpush.bf16.msra.mxu1 %v9742_v27 }
 0x38f   :  { %v10456_v20 = vpop.f32.mrf.mxu3 }
 0x392   :  { %5788 = vmatpush.bf16.msra.mxu0 %v8870_v57  ;;  %5945 = vmatpush.bf16.msra.mxu1 %v9741_v22 }
 0x393   :  { %v5265_v45 = vpop.f32.mrf.mxu1 }
 0x394   :  { %v9733_v45 = vld [vmem:[#allocation14 + $0x30] sm:$0xff] }
 0x395   :  { %5932 = vmatpush.bf16.msrb.mxu3 %v9733_v45 }
 0x396   :  { %5789 = vmatpush.bf16.msra.mxu0 %v8862_v15  ;;  %5946 = vmatpush.bf16.msra.mxu1 %v9740_v38  ;;  %v9743_v15 = vld [vmem:[#allocation17] sm:$0xff] }
 0x397   :  { %v5252_v31 = vpop.f32.mrf.mxu3  ;;  %5777 = vmatmul.bf16.vlgmr.msrb.gmra.mxu2 %v5299_v3 }
 0x398   :  { %v9731_v31 = vld [vmem:[#allocation14 + $0x20] sm:$0xff] }
 0x399   :  { %5933 = vmatpush.bf16.msrb.mxu3 %v9732_v25 }
 0x39a   :  { %5947 = vmatpush.bf16.msra.mxu1 %v9739_v8 }
 0x39d   :  { %5934 = vmatpush.bf16.msrb.mxu3 %v9731_v31 }
 0x39e   :  { %5948 = vmatpush.bf16.msra.mxu1 %v9738_v6 }
 0x3a1   :  { %5935 = vmatpush.bf16.msrb.mxu3 %v9730_v32 }
 0x3a2   :  { %5949 = vmatpush.bf16.msra.mxu1 %v9737_v44 }
 0x3a3   :  { %v5237_v51 = vpop.f32.mrf.mxu0 }
 0x3a4   :  { %v5276_v47 = vpop.f32.mrf.mxu2  ;;  %v5238_v2 = vadd.f32 %v5237_v51, %v5225_v61  ;;  %v9744_v61 = vld [vmem:[#allocation17 + $0x8] sm:$0xff] }
 0x3a5   :  { %5936 = vmatpush.bf16.msrb.mxu3 %v9729_v33 }
 0x3a6   :  { %v5251_v30 = vadd.f32 %v10456_v20, %v5238_v2  ;;  %v5368_v20 = vperm.slane %v5365_v34, 1  ;;  %5950 = vmatpush.bf16.msra.mxu1 %v9736_v0 }
 0x3a8   :  { %v5264_v11 = vadd.f32 %v10454_v58, %v5251_v30 }
 0x3a9   :  { %5937 = vmatpush.bf16.msrb.mxu3 %v9728_v59 }
 0x3aa   :  { %v5277_v63 = vadd.f32 %v5276_v47, %v5264_v11  ;;  %5951 = vmatpush.bf16.msra.mxu1 %v9735_v55  ;;  %v9750_v47 = vld [vmem:[#allocation17 + $0x38] sm:$0xff] }
 0x3ab   :  { %v5239_v43 = vpop.f32.mrf.mxu0  ;;  %6027 = vmatpush.bf16.msra.mxu2 %v9750_v47 }
 0x3ac   :  { %v5278_v50 = vpop.f32.mrf.mxu2 }
 0x3ad   :  { %5938 = vmatpush.bf16.msrb.mxu3 %v9727_v39 }
 0x3af   :  { %v5700_v5 = vpop.f32.mrf.mxu3  ;;  %6028 = vmatpush.bf16.msra.mxu2 %v9749_v41 }
 0x3b0   :  { %v5701_v10 = vadd.f32 %v5700_v5, %v5367_v4  ;;  %v9771_v5 = vld [vmem:[#allocation16] ss:$0 sm:$0xff] }
 0x3b3   :  { %6029 = vmatpush.bf16.msra.mxu2 %v9748_v48 }
 0x3b7   :  { %v5702_v12 = vpop.f32.mrf.mxu3  ;;  %6030 = vmatpush.bf16.msra.mxu2 %v9747_v35 }
 0x3bb   :  { %6031 = vmatpush.bf16.msra.mxu2 %v9746_v60 }
 0x3bf   :  { %6032 = vmatpush.bf16.msra.mxu2 %v9745_v28 }
 0x3c3   :  { %v5289_v14 = vpop.f32.mrf.mxu0  ;;  %6033 = vmatpush.bf16.msra.mxu2 %v9744_v61 }
 0x3c4   :  { %v5290_v18 = vadd.f32 %v5289_v14, %v5277_v63 }
 0x3c6   :  { %v5296_v13 = vmax.f32 %v5290_v18, 0.0 }
 0x3c7   :  { %6034 = vmatpush.bf16.msra.mxu2 %v9743_v15 }
 0x3c8   :  { %v5300_v62 = vpack.c.bf16 %v5296_v13, %v5296_v13 }
 0x3c9   :  { %v5713_v49 = vpop.f32.mrf.mxu1 }
 0x3ca   :  { %5738 = vmatmul.bf16.vlgmr.msrb.gmra.mxu0 %v5300_v62  ;;  %v5714_v46 = vadd.f32 %v5713_v49, %v5701_v10 }
 0x3cb   :  { %v5291_v1 = vpop.f32.mrf.mxu0 }
 0x3cf   :  { %v5752_v19 = vpop.f32.mrf.mxu3 }
 0x3d0   :  { %v5753_v3 = vadd.f32 %v5752_v19, %v5368_v20 }
 0x3d1   :  { %v5715_v56 = vpop.f32.mrf.mxu1 }
 0x3d7   :  { %v5754_v17 = vpop.f32.mrf.mxu3 }
 0x3d9   :  { %v5765_v58 = vpop.f32.mrf.mxu1 }
 0x3da   :  { %5790 = vmatmul.bf16.vlgmr.msra.gmra.mxu0 %v5300_v62  ;;  %v5766_v24 = vadd.f32 %v5765_v58, %v5753_v3  ;;  %v9772_v62 = vld [vmem:[#allocation19] ss:$0 sm:$0xff] }
 0x3e1   :  { %v5767_v26 = vpop.f32.mrf.mxu1 }
 0x40a   :  { %v5726_v29 = vpop.f32.mrf.mxu2 }
 0x40b   :  { %v5727_v51 = vadd.f32 %v5726_v29, %v5714_v46 }
 0x412   :  { %v5728_v40 = vpop.f32.mrf.mxu2 }
 0x41a   :  { %v5778_v36 = vpop.f32.mrf.mxu2 }
 0x41b   :  { %v5779_v53 = vadd.f32 %v5778_v36, %v5766_v24 }
 0x422   :  { %v5780_v42 = vpop.f32.mrf.mxu2 }
 0x447   :  { %v5739_v52 = vpop.f32.mrf.mxu0 }
 0x448   :  { %v5740_v37 = vadd.f32 %v5739_v52, %v5727_v51 }
 0x44a   :  { %v5795_v54 = vmax.f32 %v5740_v37, 0.0 }
 0x44c   :  { %v5797_v23 = vpack.c.bf16 %v5795_v54, %v5795_v54 }
 0x44e   :  { %5939 = vmatmul.bf16.vlgmr.msrb.gmra.mxu3 %v5797_v23 }
 0x44f   :  { %v5741_v9 = vpop.f32.mrf.mxu0 }
 0x457   :  { %v5791_v50 = vpop.f32.mrf.mxu0 }
 0x458   :  { %v5792_v43 = vadd.f32 %v5791_v50, %v5779_v53 }
 0x45a   :  { %v5796_v7 = vmax.f32 %v5792_v43, 0.0 }
 0x45c   :  { %v5798_v16 = vpack.c.bf16 %v5796_v7, %v5796_v7 }
 0x45e   :  { %5952 = vmatmul.bf16.vlgmr.msra.gmra.mxu1 %v5798_v16 }
 0x45f   :  { %v5793_v57 = vpop.f32.mrf.mxu0 }
 0x4d1   :  { %v5940_v2 = vpop.f32.mrf.mxu3 }
 0x4d2   :  { %v5941_v11 = vadd.f32 %v9771_v5, %v5940_v2 }
 0x4d9   :  { %v5942_v30 = vpop.f32.mrf.mxu3 }
 0x4db   :  { %v5953_v12 = vpop.f32.mrf.mxu1 }
 0x4dc   :  { %v5954_v63 = vadd.f32 %v5953_v12, %v5941_v11 }
 0x4de   :  { %v5957_v14 = vmax.f32 %v5954_v63, 0.0 }
 0x4e0   :  { %v5958_v18 = vpack.c.bf16 %v5957_v14, %v5957_v14 }
 0x4e2   :  { %6035 = vmatmul.bf16.vlgmr.msra.gmra.mxu2 %v5958_v18 }
 0x4e3   :  { %v5955_v13 = vpop.f32.mrf.mxu1 }
 0x565   :  { %v6036_v19 = vpop.f32.mrf.mxu2 }
 0x566   :  { %v6037_v34 = vadd.f32 %v9772_v62, %v6036_v19 }
 0x568   :  { %6040 = vst [vmem:[#allocation20] sm:$0xff] %v6037_v34 }
 0x569   :  { %6051 = dma.vmem_to_hbm [thread:$0]  %s6047_s10, 128, %s6049_s1, [#allocation4]  }
 0x56d   :  { %v6038_v1 = vpop.f32.mrf.mxu2 }
 0x56e   :  { %10076 = dma.done.wait [#allocation4], 128  }
 0x56f   :  { %10077 = vsyncadd [#allocation4], 4294967168 }
 0x570   :  { %6056 = vsyncpa [#allocation3], 1 }
 0x571   :  { %6057 = vsyncpa [#allocation6], 1 }
 0x572   :  { %6058 = vsyncpa [#allocation9], 1 }
 0x573   :  { %6059 = vsyncpa [#allocation12], 1 }
 0x574   :  { %6060 = vsyncpa [#allocation15], 1 }
 0x575   :  { %6061 = vsyncpa [#allocation18], 1 }
 0x576   :  { %6062 = vsyncpa [#allocation4], 1 }

</bundles_post_ra>
